<compile_context>
chip_gen: v5e
topology: v5e:2x2
jax: 0.10.0
libtpu: 0.0.40
codegen_flags: <defaults>
</compile_context>

<pallas_src>
import functools

import jax
import jax.numpy as jnp
from jax.experimental import pallas as pl
from jax.experimental.pallas import tpu as pltpu


# ----------------------------------------------------------------------------
# Pallas kernel: one (query-row-tile, image) grid step
# ----------------------------------------------------------------------------
def _cobi_kernel(xn_ref, yn_ref, o_ref, sp_ref, *, height, width, hw,
                 weight_sp, band_width):
    """xn_ref: (1, TQ, C)   y-mean-centred, channel-normalized x rows (query pixels)
       yn_ref: (1, C, HWP)  y-mean-centred, channel-normalized y (key pixels on lanes)
       o_ref : (1, 1, 1, 1) partial sum_i max_j cx_combine for this (tile, image)
       sp_ref: (TQ, HWP)    VMEM cache of weight_sp * cx_sp for the current row tile
    """
    t = pl.program_id(0)          # row-tile index  ("parallel")
    b = pl.program_id(1)          # image index     ("arbitrary", innermost)
    tq = xn_ref.shape[1]
    hwp = yn_ref.shape[2]

    eps_rel = 1e-5                # compute_relative_distance epsilon
    inv_h = 1.0 / band_width
    need_mask = (hw != hwp)       # static: HW was padded up to a lane multiple of 128

    # ---- spatial (bilateral) branch: batch-invariant, compute once per row tile ----
    @pl.when(b == 0)
    def _():
        pi = (t * tq + jax.lax.broadcasted_iota(jnp.int32, (tq, 1), 0)
              ).astype(jnp.float32)                                   # query pixel id
        pj = jax.lax.broadcasted_iota(jnp.int32, (1, hwp), 1)         # key pixel id
        pjf = pj.astype(jnp.float32)
        wf = float(width)
        ri = jnp.floor(pi / wf);  ci = pi - ri * wf
        rj = jnp.floor(pjf / wf); cj = pjf - rj * wf
        ri = ri / float(height + 1); rj = rj / float(height + 1)
        ci = ci / float(width + 1);  cj = cj / float(width + 1)
        d_sp = (ri - rj) ** 2 + (ci - cj) ** 2                        # (TQ, HWP) >= 0
        if need_mask:
            d_sp = jnp.where(pj < hw, d_sp, jnp.inf)                  # drop padded keys
        d_min = jnp.min(d_sp, axis=-1, keepdims=True)                 # (TQ, 1)
        coef = inv_h / (d_min + eps_rel)                              # per-row divide only
        w_sp = jnp.exp((d_min - d_sp) * coef)                         # padded cols -> 0
        sp_ref[...] = w_sp * (weight_sp / jnp.sum(w_sp, axis=-1, keepdims=True))

    # ---- feature (cosine) branch: one MXU matmul, d_feat never materialized --------
    sim = jnp.dot(xn_ref[0], yn_ref[0], preferred_element_type=jnp.float32)  # (TQ,HWP)
    if need_mask:
        lane = jax.lax.broadcasted_iota(jnp.int32, (1, hwp), 1)
        sim = jnp.where(lane < hw, sim, -jnp.inf)
    s_max = jnp.max(sim, axis=-1, keepdims=True)                      # d_min = 1 - s_max
    coef_f = inv_h / ((1.0 - s_max) + eps_rel)                        # per-row only
    w_f = jnp.exp((sim - s_max) * coef_f)                             # padded cols -> 0
    row_scale_f = (1.0 - weight_sp) / jnp.sum(w_f, axis=-1, keepdims=True)

    cx_comb = w_f * row_scale_f + sp_ref[...]
    k_max = jnp.max(cx_comb, axis=-1, keepdims=True)                  # (TQ, 1)
    if need_mask:
        row = t * tq + jax.lax.broadcasted_iota(jnp.int32, (tq, 1), 0)
        k_max = jnp.where(row < hw, k_max, 0.0)                       # drop padded rows

    o_ref[...] = jnp.sum(k_max, axis=0, keepdims=True).reshape(1, 1, 1, 1)


# ----------------------------------------------------------------------------
# Wrapper
# ----------------------------------------------------------------------------
def contextual_bilateral_loss(x, y, weight_sp=0.1, band_width=1.0):
    """CoBi loss (loss_type='cosine') for NCHW inputs x, y of equal shape."""
    assert x.shape == y.shape, "input tensors must have the same size."
    n, c, h, w = x.shape
    hw = h * w

    tq = 128                                    # v7x (64 MiB VMEM) friendly row tile
    hwp = ((hw + tq - 1) // tq) * tq            # pad key/query axis to lane multiple
    n_t = hwp // tq

    x = x.astype(jnp.float32)
    y = y.astype(jnp.float32)

    # y-mean centering + F.normalize(dim=1, eps=1e-12) fused here ONCE (not per tile).
    mu = jnp.mean(y, axis=(0, 2, 3), keepdims=True)

    def _center_normalize(v):
        v = v - mu
        nrm = jnp.sqrt(jnp.sum(v * v, axis=1, keepdims=True))
        return v / jnp.maximum(nrm, 1e-12)

    xn = _center_normalize(x).reshape(n, c, hw)
    yn = _center_normalize(y).reshape(n, c, hw)
    if hwp != hw:
        pad = ((0, 0), (0, 0), (0, hwp - hw))
        xn = jnp.pad(xn, pad)
        yn = jnp.pad(yn, pad)
    xq = jnp.transpose(xn, (0, 2, 1))           # (N, HWP, C): query pixels on rows

    kernel = functools.partial(_cobi_kernel, height=h, width=w, hw=hw,
                               weight_sp=float(weight_sp),
                               band_width=float(band_width))

    # VMEM budget: double-buffered (C,HWP) y block + x block + spatial cache + temps.
    need = 2 * c * hwp * 4 + 2 * tq * c * 4 + 7 * tq * hwp * 4 + (1 << 20)
    vmem_limit = int(min(max(need, 16 * 2**20), 100 * 2**20))

    if n == 1:
        # y block never changes across the grid -> single-buffer the resident operand.
        y_spec = pl.BlockSpec((1, c, hwp), lambda t, b: (b, 0, 0),
                              pipeline_mode=pl.Buffered(1))
    else:
        y_spec = pl.BlockSpec((1, c, hwp), lambda t, b: (b, 0, 0))

    partial_sums = pl.pallas_call(
        kernel,
        out_shape=jax.ShapeDtypeStruct((n_t, n, 1, 1), jnp.float32),
        grid=(n_t, n),
        in_specs=[
            pl.BlockSpec((1, tq, c), lambda t, b: (b, t, 0)),
            y_spec,
        ],
        out_specs=pl.BlockSpec((1, 1, 1, 1), lambda t, b: (t, b, 0, 0)),
        scratch_shapes=[pltpu.VMEM((tq, hwp), jnp.float32)],
        compiler_params=pltpu.CompilerParams(
            dimension_semantics=("parallel", "arbitrary"),
            vmem_limit_bytes=vmem_limit,
        ),
    )(xq, yn)

    # per-image: cx = mean_i max_j cx_combine ; loss = mean_b -log(cx + eps)
    cx = jnp.sum(partial_sums.reshape(n_t, n), axis=0) / float(hw)
    return jnp.mean(-jnp.log(cx + 1e-5))


# ----------------------------------------------------------------------------
# Pure-jnp reference (mirrors the PyTorch module, per-image spatial broadcast)
# ----------------------------------------------------------------------------
def _reference_cobi(x, y, weight_sp=0.1, band_width=1.0):
    n, c, h, w = x.shape
    hw = h * w

    rows = jnp.arange(h, dtype=jnp.float32) / (h + 1)
    cols = jnp.arange(w, dtype=jnp.float32) / (w + 1)
    rr, cc = jnp.meshgrid(rows, cols, indexing="ij")
    g = jnp.stack([rr.reshape(-1), cc.reshape(-1)], axis=0)          # (2, HW)
    g_s = jnp.sum(g * g, axis=0)
    d_sp = jnp.clip(g_s[None, :] - 2.0 * (g.T @ g) + g_s[:, None], 0.0)[None]

    def rel(d):
        return d / (jnp.min(d, axis=-1, keepdims=True) + 1e-5)

    def cx(dt):
        wgt = jnp.exp((1.0 - dt) / band_width)
        return wgt / jnp.sum(wgt, axis=-1, keepdims=True)

    cx_sp = cx(rel(d_sp))

    mu = jnp.mean(y, axis=(0, 2, 3), keepdims=True)

    def l2n(v):
        nrm = jnp.sqrt(jnp.sum(v * v, axis=1, keepdims=True))
        return v / jnp.maximum(nrm, 1e-12)

    xn = l2n(x - mu).reshape(n, c, hw)
    yn = l2n(y - mu).reshape(n, c, hw)
    d_feat = 1.0 - jnp.einsum("nci,ncj->nij", xn, yn)
    cx_feat = cx(rel(d_feat))

    cx_comb = (1.0 - weight_sp) * cx_feat + weight_sp * cx_sp
    k_max = jnp.max(cx_comb, axis=2, keepdims=True)
    cxm = jnp.mean(k_max, axis=1)
    return jnp.mean(-jnp.log(cxm + 1e-5))


# ----------------------------------------------------------------------------
if __name__ == "__main__":
    key = jax.random.PRNGKey(0)
    kx, ky = jax.random.split(key)

    batch, chan, spatial = 2, 4, 16
    x = jax.random.normal(kx, (batch, chan, spatial, spatial), jnp.float32)
    y = x + 0.3 * jax.random.normal(ky, (batch, chan, spatial, spatial), jnp.float32)

    loss_fn = jax.jit(contextual_bilateral_loss,
                      static_argnames=("weight_sp", "band_width"))
    loss = jax.block_until_ready(loss_fn(x, y))

    ref = jax.block_until_ready(jax.jit(_reference_cobi)(x, y))

    assert bool(jnp.isfinite(loss)), "loss is not finite"
    assert abs(float(loss) - float(ref)) <= 5e-3 * abs(float(ref)) + 1e-3, (
        f"kernel {float(loss):.6f} vs reference {float(ref):.6f}")
    print("KERNEL_OK")
</pallas_src>

<mosaic_0001>
module attributes {stable_mosaic.version = 11 : i64} {
  func.func @_cobi_kernel(%arg0: i32, %arg1: i32, %arg2: memref<1x128x4xf32, #tpu.memory_space<vmem>>, %arg3: memref<1x4x256xf32, #tpu.memory_space<vmem>>, %arg4: memref<1x1x1x1xf32, #tpu.memory_space<vmem>>, %arg5: memref<128x256xf32, #tpu.memory_space<vmem>>) attributes {dimension_semantics = [#tpu.dimension_semantics<parallel>, #tpu.dimension_semantics<arbitrary>], iteration_bounds = array<i64: 2, 2>, scalar_prefetch = 0 : i64, scratch_operands = 1 : i64, tpu.core_type = #tpu.core_type<tc>, window_params = [{transform_indices = @transform_0, window_bounds = array<i64: 1, 128, 4>}, {transform_indices = @transform_1, window_bounds = array<i64: 1, 4, 256>}, {transform_indices = @transform_2, window_bounds = array<i64: 1, 1, 1, 1>}]} {
    %c0_i32 = arith.constant 0 : i32
    %0 = arith.cmpi eq, %arg1, %c0_i32 : i32
    %1 = arith.extui %0 : i1 to i32
    %c0_i32_0 = arith.constant 0 : i32
    %2 = arith.cmpi ne, %1, %c0_i32_0 : i32
    scf.if %2 {
      %c128_i32 = arith.constant 128 : i32
      %35 = arith.muli %arg0, %c128_i32 : i32
      %36 = tpu.iota {dimensions = array<i32: 0>} : vector<128x1xi32>
      %37 = vector.broadcast %35 : i32 to vector<128x1xi32>
      %38 = arith.addi %37, %36 : vector<128x1xi32>
      %39 = arith.sitofp %38 : vector<128x1xi32> to vector<128x1xf32>
      %40 = tpu.iota {dimensions = array<i32: 1>} : vector<1x256xi32>
      %41 = arith.sitofp %40 : vector<1x256xi32> to vector<1x256xf32>
      %cst_20 = arith.constant 1.600000e+01 : f32
      %42 = vector.broadcast %cst_20 : f32 to vector<128x1xf32>
      %43 = arith.divf %39, %42 : vector<128x1xf32>
      %44 = math.floor %43 : vector<128x1xf32>
      %cst_21 = arith.constant 1.600000e+01 : f32
      %45 = vector.broadcast %cst_21 : f32 to vector<128x1xf32>
      %46 = arith.mulf %44, %45 : vector<128x1xf32>
      %47 = arith.subf %39, %46 : vector<128x1xf32>
      %cst_22 = arith.constant 1.600000e+01 : f32
      %48 = vector.broadcast %cst_22 : f32 to vector<1x256xf32>
      %49 = arith.divf %41, %48 : vector<1x256xf32>
      %50 = math.floor %49 : vector<1x256xf32>
      %cst_23 = arith.constant 1.600000e+01 : f32
      %51 = vector.broadcast %cst_23 : f32 to vector<1x256xf32>
      %52 = arith.mulf %50, %51 : vector<1x256xf32>
      %53 = arith.subf %41, %52 : vector<1x256xf32>
      %cst_24 = arith.constant 1.700000e+01 : f32
      %54 = vector.broadcast %cst_24 : f32 to vector<128x1xf32>
      %55 = arith.divf %44, %54 : vector<128x1xf32>
      %cst_25 = arith.constant 1.700000e+01 : f32
      %56 = vector.broadcast %cst_25 : f32 to vector<1x256xf32>
      %57 = arith.divf %50, %56 : vector<1x256xf32>
      %cst_26 = arith.constant 1.700000e+01 : f32
      %58 = vector.broadcast %cst_26 : f32 to vector<128x1xf32>
      %59 = arith.divf %47, %58 : vector<128x1xf32>
      %cst_27 = arith.constant 1.700000e+01 : f32
      %60 = vector.broadcast %cst_27 : f32 to vector<1x256xf32>
      %61 = arith.divf %53, %60 : vector<1x256xf32>
      %62 = vector.broadcast %55 : vector<128x1xf32> to vector<128x256xf32>
      %63 = vector.broadcast %57 : vector<1x256xf32> to vector<128x256xf32>
      %64 = arith.subf %62, %63 : vector<128x256xf32>
      %65 = arith.mulf %64, %64 : vector<128x256xf32>
      %66 = vector.broadcast %59 : vector<128x1xf32> to vector<128x256xf32>
      %67 = vector.broadcast %61 : vector<1x256xf32> to vector<128x256xf32>
      %68 = arith.subf %66, %67 : vector<128x256xf32>
      %69 = arith.mulf %68, %68 : vector<128x256xf32>
      %70 = arith.addf %65, %69 : vector<128x256xf32>
      %cst_28 = arith.constant dense<0x7F800000> : vector<128xf32>
      %71 = vector.multi_reduction <minimumf>, %70, %cst_28 [1] : vector<128x256xf32> to vector<128xf32>
      %72 = vector.shape_cast %71 : vector<128xf32> to vector<128x1xf32>
      %cst_29 = arith.constant 9.99999974E-6 : f32
      %73 = vector.broadcast %cst_29 : f32 to vector<128x1xf32>
      %74 = arith.addf %72, %73 : vector<128x1xf32>
      %cst_30 = arith.constant 1.000000e+00 : f32
      %75 = vector.broadcast %cst_30 : f32 to vector<128x1xf32>
      %76 = arith.divf %75, %74 : vector<128x1xf32>
      %77 = vector.broadcast %72 : vector<128x1xf32> to vector<128x256xf32>
      %78 = arith.subf %77, %70 : vector<128x256xf32>
      %79 = vector.broadcast %76 : vector<128x1xf32> to vector<128x256xf32>
      %80 = arith.mulf %78, %79 : vector<128x256xf32>
      %81 = math.exp %80 : vector<128x256xf32>
      %cst_31 = arith.constant dense<0.000000e+00> : vector<128xf32>
      %82 = vector.multi_reduction <add>, %81, %cst_31 [1] : vector<128x256xf32> to vector<128xf32>
      %83 = vector.shape_cast %82 : vector<128xf32> to vector<128x1xf32>
      %cst_32 = arith.constant 1.000000e-01 : f32
      %84 = vector.broadcast %cst_32 : f32 to vector<128x1xf32>
      %85 = arith.divf %84, %83 : vector<128x1xf32>
      %86 = vector.broadcast %85 : vector<128x1xf32> to vector<128x256xf32>
      %87 = arith.mulf %81, %86 : vector<128x256xf32>
      %c0_33 = arith.constant 0 : index
      %c0_34 = arith.constant 0 : index
      %88 = vector.load %arg5[%c0_33, %c0_34] : memref<128x256xf32, #tpu.memory_space<vmem>>, vector<128x256xf32>
      tpu.vector_store %arg5[%c0_33, %c0_34], %87 {strides = array<i32>} : memref<128x256xf32, #tpu.memory_space<vmem>>, vector<128x256xf32>,
    } else {
    }
    %c0 = arith.constant 0 : index
    %c0_1 = arith.constant 0 : index
    %c0_2 = arith.constant 0 : index
    %3 = vector.load %arg2[%c0, %c0_1, %c0_2] : memref<1x128x4xf32, #tpu.memory_space<vmem>>, vector<1x128x4xf32>
    %4 = vector.shape_cast %3 : vector<1x128x4xf32> to vector<128x4xf32>
    %c0_3 = arith.constant 0 : index
    %c0_4 = arith.constant 0 : index
    %c0_5 = arith.constant 0 : index
    %5 = vector.load %arg3[%c0_3, %c0_4, %c0_5] : memref<1x4x256xf32, #tpu.memory_space<vmem>>, vector<1x4x256xf32>
    %6 = vector.shape_cast %5 : vector<1x4x256xf32> to vector<4x256xf32>
    %cst = arith.constant dense<0.000000e+00> : vector<128x256xf32>
    %7 = tpu.matmul %4, %6, %cst {dimension_numbers = #tpu.dot_dimension_numbers<[1], [0], [0], [1], [0, 0, 1, 1], [], []>} : vector<128x4xf32>, vector<4x256xf32>, vector<128x256xf32> -> vector<128x256xf32>
    %cst_6 = arith.constant dense<0xFF800000> : vector<128xf32>
    %8 = vector.multi_reduction <maximumf>, %7, %cst_6 [1] : vector<128x256xf32> to vector<128xf32>
    %9 = vector.shape_cast %8 : vector<128xf32> to vector<128x1xf32>
    %cst_7 = arith.constant 1.000000e+00 : f32
    %10 = vector.broadcast %cst_7 : f32 to vector<128x1xf32>
    %11 = arith.subf %10, %9 : vector<128x1xf32>
    %cst_8 = arith.constant 9.99999974E-6 : f32
    %12 = vector.broadcast %cst_8 : f32 to vector<128x1xf32>
    %13 = arith.addf %11, %12 : vector<128x1xf32>
    %cst_9 = arith.constant 1.000000e+00 : f32
    %14 = vector.broadcast %cst_9 : f32 to vector<128x1xf32>
    %15 = arith.divf %14, %13 : vector<128x1xf32>
    %16 = vector.broadcast %9 : vector<128x1xf32> to vector<128x256xf32>
    %17 = arith.subf %7, %16 : vector<128x256xf32>
    %18 = vector.broadcast %15 : vector<128x1xf32> to vector<128x256xf32>
    %19 = arith.mulf %17, %18 : vector<128x256xf32>
    %20 = math.exp %19 : vector<128x256xf32>
    %cst_10 = arith.constant dense<0.000000e+00> : vector<128xf32>
    %21 = vector.multi_reduction <add>, %20, %cst_10 [1] : vector<128x256xf32> to vector<128xf32>
    %22 = vector.shape_cast %21 : vector<128xf32> to vector<128x1xf32>
    %cst_11 = arith.constant 0.899999976 : f32
    %23 = vector.broadcast %cst_11 : f32 to vector<128x1xf32>
    %24 = arith.divf %23, %22 : vector<128x1xf32>
    %25 = vector.broadcast %24 : vector<128x1xf32> to vector<128x256xf32>
    %26 = arith.mulf %20, %25 : vector<128x256xf32>
    %c0_12 = arith.constant 0 : index
    %c0_13 = arith.constant 0 : index
    %27 = vector.load %arg5[%c0_12, %c0_13] : memref<128x256xf32, #tpu.memory_space<vmem>>, vector<128x256xf32>
    %28 = arith.addf %26, %27 : vector<128x256xf32>
    %cst_14 = arith.constant dense<0xFF800000> : vector<128xf32>
    %29 = vector.multi_reduction <maximumf>, %28, %cst_14 [1] : vector<128x256xf32> to vector<128xf32>
    %30 = vector.shape_cast %29 : vector<128xf32> to vector<128x1xf32>
    %cst_15 = arith.constant dense<0.000000e+00> : vector<1xf32>
    %31 = vector.multi_reduction <add>, %30, %cst_15 [0] : vector<128x1xf32> to vector<1xf32>
    %32 = vector.shape_cast %31 : vector<1xf32> to vector<1x1xf32>
    %33 = vector.shape_cast %32 : vector<1x1xf32> to vector<1x1x1x1xf32>
    %c0_16 = arith.constant 0 : index
    %c0_17 = arith.constant 0 : index
    %c0_18 = arith.constant 0 : index
    %c0_19 = arith.constant 0 : index
    %34 = vector.load %arg4[%c0_16, %c0_17, %c0_18, %c0_19] : memref<1x1x1x1xf32, #tpu.memory_space<vmem>>, vector<1x1x1x1xf32>
    tpu.vector_store %arg4[%c0_16, %c0_17, %c0_18, %c0_19], %33 {strides = array<i32>} : memref<1x1x1x1xf32, #tpu.memory_space<vmem>>, vector<1x1x1x1xf32>,
    return
  }
  func.func @transform_0(%arg0: i32, %arg1: i32) -> (i32, i32, i32) {
    %c0_i32 = arith.constant 0 : i32
    %c0_i32_0 = arith.constant 0 : i32
    return %arg1, %arg0, %c0_i32 : i32, i32, i32
  }
  func.func @transform_1(%arg0: i32, %arg1: i32) -> (i32, i32, i32) {
    %c0_i32 = arith.constant 0 : i32
    %c0_i32_0 = arith.constant 0 : i32
    %c0_i32_1 = arith.constant 0 : i32
    return %arg1, %c0_i32, %c0_i32_0 : i32, i32, i32
  }
  func.func @transform_2(%arg0: i32, %arg1: i32) -> (i32, i32, i32, i32) {
    %c0_i32 = arith.constant 0 : i32
    %c0_i32_0 = arith.constant 0 : i32
    %c0_i32_1 = arith.constant 0 : i32
    return %arg0, %arg1, %c0_i32, %c0_i32_0 : i32, i32, i32, i32
  }
}

</mosaic_0001>

<bundles_post_ra>
// kernel: contextual_bilateral_loss.1
= control target key start
LH: loop header
LB: loop body
LE: loop exit
PB: predicated region body
PF: predicated region fallthrough
CT: control target
= control target key end

     0   :  { %s2935_s9 = smov 0   ;;  %s2937_s10 = smov 0   ;;  %s5028_s0 = inlined_call_operand.vmem [shape: f32[2,256,4], index: 0, kind: input, shape index: {}]   ;;  %s5029_s1 = inlined_call_operand.vmem [shape: f32[2,4,256], index: 1, kind: input, shape index: {}]   ;;  %s5030_s2 = inlined_call_operand.vmem [shape: f32[2,2,1,1], index: 2, kind: output, shape index: {}]  }
   0x1   :  { %s2939_s11 = smov 0   ;;  %s2941_s12 = smov 0  }
   0x2   :  { %s2943_s13 = smov 0  }
   0x3 LB: > { %s21_s14 = sadd.s32 1, %s2908_s11  ;;  %s24_s15 = sadd.s32 1, %s2912_s12  ;;  %s2916_s13 = sphi %s2943_s13, %s12_s13   ;;  %s2912_s12 = sphi %s2941_s12, %s5176_s12   ;;  %s2908_s11 = sphi %s2939_s11, %s5175_s11   ;;  %s2904_s10 = sphi %s2937_s10, %s5174_s10   ;;  %s2900_s9 = sphi %s2935_s9, %s5173_s9  }
   0x4   : > { %p22_p0 = scmp.ge.s32.totalorder %s21_s14, 2  ;;  %p2528_p1 = scmp.ge.s32.totalorder %s2916_s13, 1 }
   0x5   : > { %p143_p2 = scmp.lt.s32.totalorder %s2916_s13, 5 }
   0x6   : > { %s5178_s14 = smov (%p22_p0, %s21_s14), 0  ;;  %s5180_s15 = smov (!%p22_p0, %s24_s15), %s2912_s12 }
   0x7   : > { %p144_p3 = pnand %p2528_p1, %p143_p2  ;;  %p26_p4 = scmp.ge.s32.totalorder %s5180_s15, 2 }
   0x9   : > { %s5182_s15 = smov (%p26_p4, %s5180_s15), 0  ;;  %147 = sbr.rel (%p144_p3) target bundleno = 1115 (0x45b), region = 28 }
   0xe   : > { %s2529_s16 = sshll.u32 %s2904_s10, 4  ;;  %p177_p5 = scmp.lt.s32.totalorder %s2900_s9, 1 }
   0xf   : > { %p179_p6 = scmp.lt.s32.totalorder %s2529_s16, 31  ;;  %p191_p7 = scmp.lt.s32.totalorder %s2904_s10, 1 }
  0x10   : > { %s178_s17 = scalar_select %p177_p5, %s2900_s9, 1 }
  0x11   : > { %s5184_s16 = smov (!%p179_p6, %s2529_s16), 31  ;;  %p2535_p8 = scmp.ne.s32.totalorder %s2900_s9, 0 }
  0x12   : > { %s2530_s18 = sshll.u32 %s178_s17, 5  ;;  %s2573_s19 = sshll.u32 %s178_s17, 3 }
  0x13   : > { %s182_s20 = sadd.s32 %s2530_s18, %s5184_s16  ;;  %s2976_s23 = scalar_lea.vmem %s5029_s1, %s2573_s19 }
  0x14   : > { %s2531_s24 = sshll.u32 %s182_s20, 3  ;;  %s2536_s6 = sshll.u32 (!%p2535_p8), %s2904_s10, 7 }
  0x15   : > { %s2981_s27 = scalar_lea.vmem %s5028_s0, %s2531_s24 }
  0x16   : > { %s192_s28 = scalar_select %p191_p7, %s2904_s10, 1 }
  0x17   : > { %201 = sbr.rel (%p2535_p8) target bundleno = 442 (0x1ba), region = 32 }
  0x18   : > { %s2534_s29 = sshll.u32 %s192_s28, 1 }
  0x19   : > { %s2984_s30 = sadd.s32 %s2534_s29, %s178_s17 }
  0x1a   : > { %s197_s5 = scalar_lea.vmem %s5030_s2, %s2984_s30 }
  0x1c   : > { %v203_v0 = vlaneseq  ;;  %v2918_v1 = vmov 16.0   ;;  %v2919_v4 = vmov 17.0   ;;  %v2997_v6 = vstv %s2536_s6 }
  0x1d   : > { %2618 = vrcp.f32 %v2918_v1 }
  0x1e   : > { %v2992_v2 = vshrl.u32 %v203_v0, 7  ;;  %v2994_v3 = vand.u32 127, %v203_v0  ;;  %2620 = vrcp.f32 %v2919_v4 }
  0x20   : > { %v208_v5 = vadd.s32 32, %v2992_v2  ;;  %v3000_v7 = vadd.s32 128, %v2994_v3  ;;  %v206_v8 = vadd.s32 16, %v2992_v2  ;;  %v209_v9 = vadd.s32 40, %v2992_v2 }
  0x21   : > { %v207_v10 = vadd.s32 24, %v2992_v2  ;;  %v205_v12 = vadd.s32 8, %v2992_v2  ;;  %v212_v13 = vadd.s32 64, %v2992_v2  ;;  %v3010_v17 = vadd.s32 %v2997_v6, %v2992_v2 }
  0x22   : > { %v225_v15 = vadd.s32 %v2997_v6, %v208_v5  ;;  %v256_v18 = vcvt.s32.f32 %v2994_v3  ;;  %v257_v19 = vcvt.s32.f32 %v3000_v7  ;;  %v223_v21 = vadd.s32 %v2997_v6, %v206_v8 }
  0x23   : > { %v2619_v11 = vpop.eup %2618  ;;  %v3016_v23 = vadd.s32 %v2997_v6, %v209_v9  ;;  %v3019_v24 = vadd.s32 %v2997_v6, %v207_v10  ;;  %v211_v25 = vadd.s32 56, %v2992_v2  ;;  %v3023_v27 = vadd.s32 %v2997_v6, %v205_v12 }
  0x24   : > { %v2621_v14 = vpop.eup %2620  ;;  %v259_v16 = vmul.f32 16.0, %v2619_v11  ;;  %v3026_v28 = vadd.s32 %v2997_v6, %v212_v13  ;;  %v210_v29 = vadd.s32 48, %v2992_v2  ;;  %v241_v30 = vcvt.s32.f32 %v225_v15 }
  0x25   : > { %v338_v20 = vmul.f32 17.0, %v2621_v14  ;;  %v237_v32 = vcvt.s32.f32 %v3010_v17  ;;  %v3031_v33 = vadd.s32 %v2997_v6, %v211_v25  ;;  %vm263_vm0 = vweird.f32 %v2619_v11 }
  0x26   : > { %v260_v22 = vsub.f32 1.0, %v259_v16  ;;  %v239_v35 = vcvt.s32.f32 %v223_v21  ;;  %v3034_v36 = vadd.s32 %v2997_v6, %v210_v29  ;;  %vm342_vm1 = vweird.f32 %v2621_v14 }
  0x27   : > { %v339_v26 = vsub.f32 1.0, %v338_v20  ;;  %v242_v38 = vcvt.s32.f32 %v3016_v23  ;;  %v240_v39 = vcvt.s32.f32 %v3019_v24  ;;  %v238_v41 = vcvt.s32.f32 %v3023_v27 }
  0x28   : > { %v261_v31 = vmul.f32 %v2619_v11, %v260_v22  ;;  %v245_v42 = vcvt.s32.f32 %v3026_v28  ;;  %v244_v44 = vcvt.s32.f32 %v3031_v33  ;;  %v243_v45 = vcvt.s32.f32 %v3034_v36 }
  0x29   : > { %v340_v34 = vmul.f32 %v2621_v14, %v339_v26  ;;  %v3045_v46 = vadd.s32 88, %v2992_v2 }
  0x2a   : > { %v262_v37 = vadd.f32 %v2619_v11, %v261_v31 }
  0x2b   : > { %v341_v40 = vadd.f32 %v2621_v14, %v340_v34 }
  0x2c   : > { %v3040_v43 = vsel %vm263_vm0, %v2619_v11, %v262_v37 }
  0x2d   : > { %v269_v47 = vmul.f32 %v3040_v43, %v241_v30  ;;  %v329_v48 = vmul.f32 %v3040_v43, %v256_v18  ;;  %v330_v49 = vmul.f32 %v3040_v43, %v257_v19  ;;  %v3050_v50 = vsel %vm342_vm1, %v2621_v14, %v341_v40 }
  0x2e   : > { %v267_v51 = vmul.f32 %v3040_v43, %v239_v35  ;;  %v265_v52 = vmul.f32 %v3040_v43, %v237_v32  ;;  %v270_v53 = vmul.f32 %v3040_v43, %v242_v38  ;;  %v3060_v54 = vmul.f32 %v3040_v43, %v240_v39 }
  0x2f   : > { %v285_v55 = vfloor.f32 %v269_v47  ;;  %v331_v56 = vfloor.f32 %v329_v48  ;;  %v332_v57 = vfloor.f32 %v330_v49  ;;  %v3065_v58 = vmul.f32 %v3040_v43, %v238_v41 }
  0x30   : > { %v283_v59 = vfloor.f32 %v267_v51  ;;  %v281_v60 = vfloor.f32 %v265_v52  ;;  %v286_v61 = vfloor.f32 %v270_v53  ;;  %v284_v62 = vfloor.f32 %v3060_v54 }
  0x31   : > { %v301_v63 = vmul.f32 16.0, %v285_v55  ;;  %v333_v0 = vmul.f32 16.0, %v331_v56  ;;  %v334_v1 = vmul.f32 16.0, %v332_v57  ;;  %v348_v3 = vmul.f32 %v3050_v50, %v285_v55 }
  0x32   : > { %v3070_v4 = vmul.f32 %v3050_v50, %v331_v56  ;;  %v3073_v5 = vmul.f32 %v3050_v50, %v332_v57  ;;  %v299_v7 = vmul.f32 16.0, %v283_v59  ;;  %v346_v8 = vmul.f32 %v3050_v50, %v283_v59 }
  0x33   : > { %v317_v9 = vsub.f32 %v241_v30, %v301_v63  ;;  %v335_v10 = vsub.f32 %v256_v18, %v333_v0  ;;  %v336_v11 = vsub.f32 %v257_v19, %v334_v1  ;;  %v297_v12 = vmul.f32 16.0, %v281_v60 }
  0x34   : > { %v388_v13 = vsub.f32 %v348_v3, %v3070_v4  ;;  %v389_v14 = vsub.f32 %v348_v3, %v3073_v5  ;;  %v315_v15 = vsub.f32 %v239_v35, %v299_v7  ;;  %v384_v16 = vsub.f32 %v346_v8, %v3070_v4 }
  0x35   : > { %v366_v17 = vmul.f32 %v3050_v50, %v317_v9  ;;  %v3081_v20 = vmul.f32 %v3050_v50, %v335_v10  ;;  %v3084_v21 = vmul.f32 %v3050_v50, %v336_v11  ;;  %v385_v22 = vsub.f32 %v346_v8, %v3073_v5 }
  0x36   : > { %v420_v18 = vmul.f32 %v388_v13, %v388_v13  ;;  %v421_v19 = vmul.f32 %v389_v14, %v389_v14  ;;  %v364_v25 = vmul.f32 %v3050_v50, %v315_v15  ;;  %v416_v26 = vmul.f32 %v384_v16, %v384_v16 }
  0x37   : > { %v452_v29 = vsub.f32 %v366_v17, %v3081_v20  ;;  %v453_v30 = vsub.f32 %v366_v17, %v3084_v21  ;;  %v417_v31 = vmul.f32 %v385_v22, %v385_v22  ;;  %v313_v34 = vsub.f32 %v237_v32, %v297_v12 }
  0x38   : > { %v448_v35 = vsub.f32 %v364_v25, %v3081_v20  ;;  %v449_v37 = vsub.f32 %v364_v25, %v3084_v21  ;;  %v344_v40 = vmul.f32 %v3050_v50, %v281_v60  ;;  %v302_v47 = vmul.f32 16.0, %v286_v61 }
  0x39   : > { %v484_v48 = vmul.f32 %v452_v29, %v452_v29  ;;  %v485_v49 = vmul.f32 %v453_v30, %v453_v30  ;;  %v362_v51 = vmul.f32 %v3050_v50, %v313_v34  ;;  %v349_v52 = vmul.f32 %v3050_v50, %v286_v61 }
  0x3a   : > { %v480_v53 = vmul.f32 %v448_v35, %v448_v35  ;;  %v481_v54 = vmul.f32 %v449_v37, %v449_v37  ;;  %v380_v55 = vsub.f32 %v344_v40, %v3070_v4  ;;  %v381_v56 = vsub.f32 %v344_v40, %v3073_v5 }
  0x3b   : > { %v3097_v32 = vadd.f32 %v484_v48, %v420_v18  ;;  %v3099_v57 = vadd.f32 %v485_v49, %v421_v19  ;;  %v444_v59 = vsub.f32 %v362_v51, %v3081_v20  ;;  %v445_v60 = vsub.f32 %v362_v51, %v3084_v21 }
  0x3c   : > { %v3103_v63 = vadd.f32 %v480_v53, %v416_v26  ;;  %v3105_v0 = vadd.f32 %v481_v54, %v417_v31  ;;  %v412_v1 = vmul.f32 %v380_v55, %v380_v55  ;;  %v413_v61 = vmul.f32 %v381_v56, %v381_v56 }
  0x3d   : > { %v552_v3 = vmin.f32 %v3097_v32, %v3099_v57  ;;  %v476_v7 = vmul.f32 %v444_v59, %v444_v59  ;;  %v477_v8 = vmul.f32 %v445_v60, %v445_v60  ;;  %v318_v9 = vsub.f32 %v242_v38, %v302_v47 }
  0x3e   : > { %v546_v10 = vmin.f32 %v3103_v63, %v3105_v0  ;;  %v390_v11 = vsub.f32 %v349_v52, %v3070_v4  ;;  %v391_v12 = vsub.f32 %v349_v52, %v3073_v5  ;;  %v300_v13 = vmul.f32 16.0, %v284_v62 }
  0x3f   : > { %553 = vmin.xlane.f32.xlu2 %v552_v3  ;;  %v3115_v14 = vadd.f32 %v476_v7, %v412_v1  ;;  %v3117_v15 = vadd.f32 %v477_v8, %v413_v61  ;;  %v367_v16 = vmul.f32 %v3050_v50, %v318_v9  ;;  %v347_v17 = vmul.f32 %v3050_v50, %v284_v62 }
  0x40   : > { %547 = vmin.xlane.f32.xlu1 %v546_v10  ;;  %v422_v23 = vmul.f32 %v390_v11, %v390_v11  ;;  %v423_v38 = vmul.f32 %v391_v12, %v391_v12  ;;  %v316_v22 = vsub.f32 %v240_v39, %v300_v13  ;;  %v282_v18 = vfloor.f32 %v3065_v58 }
  0x41   : > { %v540_v19 = vmin.f32 %v3115_v14, %v3117_v15  ;;  %v454_v25 = vsub.f32 %v367_v16, %v3081_v20  ;;  %v455_v26 = vsub.f32 %v367_v16, %v3084_v21  ;;  %v386_v29 = vsub.f32 %v347_v17, %v3070_v4 }
  0x42   : > { %v365_v30 = vmul.f32 %v3050_v50, %v316_v22  ;;  %v387_v62 = vsub.f32 %v347_v17, %v3073_v5  ;;  %v298_v31 = vmul.f32 16.0, %v282_v18  ;;  %v345_v34 = vmul.f32 %v3050_v50, %v282_v18 }
  0x43   : > { %541 = vmin.xlane.f32.xlu0 %v540_v19  ;;  %v486_v24 = vmul.f32 %v454_v25, %v454_v25  ;;  %v487_v39 = vmul.f32 %v455_v26, %v455_v26  ;;  %v418_v58 = vmul.f32 %v386_v29, %v386_v29  ;;  %v273_v35 = vmul.f32 %v3040_v43, %v245_v42 }
  0x44   : > { %v419_v37 = vmul.f32 %v387_v62, %v387_v62  ;;  %v450_v40 = vsub.f32 %v365_v30, %v3081_v20  ;;  %v451_v47 = vsub.f32 %v365_v30, %v3084_v21  ;;  %v314_v48 = vsub.f32 %v238_v41, %v298_v31 }
  0x45   : > { %v3139_v49 = vadd.f32 %v486_v24, %v422_v23  ;;  %v3141_v51 = vadd.f32 %v487_v39, %v423_v38  ;;  %v382_v52 = vsub.f32 %v345_v34, %v3070_v4  ;;  %v383_v53 = vsub.f32 %v345_v34, %v3073_v5 }
  0x46   : > { %v482_v54 = vmul.f32 %v450_v40, %v450_v40  ;;  %v483_v55 = vmul.f32 %v451_v47, %v451_v47  ;;  %v363_v56 = vmul.f32 %v3050_v50, %v314_v48  ;;  %v289_v59 = vfloor.f32 %v273_v35 }
  0x47   : > { %v555_v60 = vmin.f32 %v3139_v49, %v3141_v51  ;;  %v414_v1 = vmul.f32 %v382_v52, %v382_v52  ;;  %v415_v61 = vmul.f32 %v383_v53, %v383_v53  ;;  %v272_v27 = vmul.f32 %v3040_v43, %v244_v44 }
  0x48   : > { %v3151_v41 = vadd.f32 %v482_v54, %v418_v58  ;;  %v3153_v3 = vadd.f32 %v483_v55, %v419_v37  ;;  %v446_v7 = vsub.f32 %v363_v56, %v3081_v20  ;;  %v447_v8 = vsub.f32 %v363_v56, %v3084_v21 }
  0x49   : > { %556 = vmin.xlane.f32.xlu2 %v555_v60  ;;  %v305_v9 = vmul.f32 16.0, %v289_v59  ;;  %v352_v10 = vmul.f32 %v3050_v50, %v289_v59  ;;  %v288_v11 = vfloor.f32 %v272_v27  ;;  %v271_v12 = vmul.f32 %v3040_v43, %v243_v45 }
  0x4a   : > { %v549_v13 = vmin.f32 %v3151_v41, %v3153_v3  ;;  %v478_v16 = vmul.f32 %v446_v7, %v446_v7  ;;  %v479_v17 = vmul.f32 %v447_v8, %v447_v8  ;;  %v232_v23 = vadd.s32 %v2997_v6, %v3045_v46 }
  0x4b   : > { %v321_v38 = vsub.f32 %v245_v42, %v305_v9  ;;  %v396_v22 = vsub.f32 %v352_v10, %v3070_v4  ;;  %v397_v18 = vsub.f32 %v352_v10, %v3073_v5  ;;  %v304_v19 = vmul.f32 16.0, %v288_v11 }
  0x4c   : > { %550 = vmin.xlane.f32.xlu1 %v549_v13  ;;  %v3169_v25 = vadd.f32 %v478_v16, %v414_v1  ;;  %v3171_v26 = vadd.f32 %v479_v17, %v415_v61  ;;  %v351_v29 = vmul.f32 %v3050_v50, %v288_v11  ;;  %v287_v30 = vfloor.f32 %v271_v12 }
  0x4d   : > { %v370_v62 = vmul.f32 %v3050_v50, %v321_v38  ;;  %v428_v31 = vmul.f32 %v396_v22, %v396_v22  ;;  %v429_v46 = vmul.f32 %v397_v18, %v397_v18  ;;  %v320_v28 = vsub.f32 %v244_v44, %v304_v19 }
  0x4e   : > { %v543_v42 = vmin.f32 %v3169_v25, %v3171_v26  ;;  %v394_v34 = vsub.f32 %v351_v29, %v3070_v4  ;;  %v395_v24 = vsub.f32 %v351_v29, %v3073_v5  ;;  %v303_v39 = vmul.f32 16.0, %v287_v30 }
  0x4f   : > { %v460_v58 = vsub.f32 %v370_v62, %v3081_v20  ;;  %v461_v35 = vsub.f32 %v370_v62, %v3084_v21  ;;  %v369_v37 = vmul.f32 %v3050_v50, %v320_v28  ;;  %v350_v40 = vmul.f32 %v3050_v50, %v287_v30 }
  0x50   : > { %544 = vmin.xlane.f32.xlu0 %v543_v42  ;;  %v426_v47 = vmul.f32 %v394_v34, %v394_v34  ;;  %v427_v33 = vmul.f32 %v395_v24, %v395_v24  ;;  %v319_v44 = vsub.f32 %v243_v45, %v303_v39  ;;  %v248_v48 = vcvt.s32.f32 %v232_v23 }
  0x51   : > { %v492_v52 = vmul.f32 %v460_v58, %v460_v58  ;;  %v493_v53 = vmul.f32 %v461_v35, %v461_v35  ;;  %v458_v54 = vsub.f32 %v369_v37, %v3081_v20  ;;  %v459_v55 = vsub.f32 %v369_v37, %v3084_v21 }
  0x52   : > { %v368_v56 = vmul.f32 %v3050_v50, %v319_v44  ;;  %v392_v59 = vsub.f32 %v350_v40, %v3070_v4  ;;  %v393_v60 = vsub.f32 %v350_v40, %v3073_v5  ;;  %v276_v1 = vmul.f32 %v3040_v43, %v248_v48 }
  0x53   : > { %v3193_v61 = vadd.f32 %v492_v52, %v428_v31  ;;  %v3195_v27 = vadd.f32 %v493_v53, %v429_v46  ;;  %v490_v36 = vmul.f32 %v458_v54, %v458_v54  ;;  %v491_v45 = vmul.f32 %v459_v55, %v459_v55 }
  0x54   : > { %v424_v7 = vmul.f32 %v392_v59, %v392_v59  ;;  %v425_v8 = vmul.f32 %v393_v60, %v393_v60  ;;  %v456_v9 = vsub.f32 %v368_v56, %v3081_v20  ;;  %v457_v10 = vsub.f32 %v368_v56, %v3084_v21 }
  0x55   : > { %v564_v11 = vmin.f32 %v3193_v61, %v3195_v27  ;;  %v3201_v12 = vadd.f32 %v490_v36, %v426_v47  ;;  %v3203_v13 = vadd.f32 %v491_v45, %v427_v33  ;;  %v292_v16 = vfloor.f32 %v276_v1 }
  0x56   : > { %v488_v17 = vmul.f32 %v456_v9, %v456_v9  ;;  %v489_v23 = vmul.f32 %v457_v10, %v457_v10  ;;  %v214_v38 = vadd.s32 80, %v2992_v2  ;;  %v213_v22 = vadd.s32 72, %v2992_v2 }
  0x57   : > { %565 = vmin.xlane.f32.xlu2 %v564_v11  ;;  %v561_v18 = vmin.f32 %v3201_v12, %v3203_v13  ;;  %v308_v19 = vmul.f32 16.0, %v292_v16  ;;  %v355_v29 = vmul.f32 %v3050_v50, %v292_v16  ;;  %v218_v30 = vadd.s32 112, %v2992_v2 }
  0x58   : > { %v3211_v62 = vadd.f32 %v488_v17, %v424_v7  ;;  %v3213_v31 = vadd.f32 %v489_v23, %v425_v8  ;;  %v231_v46 = vadd.s32 %v2997_v6, %v214_v38  ;;  %v230_v28 = vadd.s32 %v2997_v6, %v213_v22 }
  0x59   : > { %562 = vmin.xlane.f32.xlu1 %v561_v18  ;;  %v324_v42 = vsub.f32 %v248_v48, %v308_v19  ;;  %v402_v34 = vsub.f32 %v355_v29, %v3070_v4  ;;  %v403_v24 = vsub.f32 %v355_v29, %v3073_v5  ;;  %v235_v39 = vadd.s32 %v2997_v6, %v218_v30 }
  0x5a   : > { %v558_v58 = vmin.f32 %v3211_v62, %v3213_v31  ;;  %v247_v35 = vcvt.s32.f32 %v231_v46  ;;  %v246_v37 = vcvt.s32.f32 %v230_v28  ;;  %v217_v40 = vadd.s32 104, %v2992_v2 }
  0x5b   : > { %v373_v47 = vmul.f32 %v3050_v50, %v324_v42  ;;  %v434_v33 = vmul.f32 %v402_v34, %v402_v34  ;;  %v435_v44 = vmul.f32 %v403_v24, %v403_v24  ;;  %v251_v52 = vcvt.s32.f32 %v235_v39 }
  0x5c   : > { %559 = vmin.xlane.f32.xlu0 %v558_v58  ;;  %v275_v48 = vmul.f32 %v3040_v43, %v247_v35  ;;  %v274_v53 = vmul.f32 %v3040_v43, %v246_v37  ;;  %v3227_v54 = vadd.s32 %v2997_v6, %v217_v40  ;;  %v216_v55 = vadd.s32 96, %v2992_v2 }
  0x5d   : > { %v466_v56 = vsub.f32 %v373_v47, %v3081_v20  ;;  %v467_v59 = vsub.f32 %v373_v47, %v3084_v21  ;;  %v279_v60 = vmul.f32 %v3040_v43, %v251_v52  ;;  %v219_v1 = vadd.s32 120, %v2992_v2 }
  0x5e   : > { %v291_v36 = vfloor.f32 %v275_v48  ;;  %v290_v45 = vfloor.f32 %v274_v53  ;;  %v250_v7 = vcvt.s32.f32 %v3227_v54  ;;  %v3236_v8 = vadd.s32 %v2997_v6, %v216_v55 }
  0x5f   : > { %v498_v9 = vmul.f32 %v466_v56, %v466_v56  ;;  %v499_v10 = vmul.f32 %v467_v59, %v467_v59  ;;  %v295_v11 = vfloor.f32 %v279_v60  ;;  %v3239_v16 = vadd.s32 %v2997_v6, %v219_v1 }
  0x60   : > { %v307_v17 = vmul.f32 16.0, %v291_v36  ;;  %v354_v23 = vmul.f32 %v3050_v50, %v291_v36  ;;  %v306_v38 = vmul.f32 16.0, %v290_v45  ;;  %v353_v22 = vmul.f32 %v3050_v50, %v290_v45 }
  0x61   : > { %v3243_v2 = vadd.f32 %v498_v9, %v434_v33  ;;  %v3245_v18 = vadd.f32 %v499_v10, %v435_v44  ;;  %v311_v19 = vmul.f32 16.0, %v295_v11  ;;  %v358_v29 = vmul.f32 %v3050_v50, %v295_v11 }
  0x62   : > { %v323_v30 = vsub.f32 %v247_v35, %v307_v17  ;;  %v400_v46 = vsub.f32 %v354_v23, %v3070_v4  ;;  %v401_v28 = vsub.f32 %v354_v23, %v3073_v5  ;;  %v322_v6 = vsub.f32 %v246_v37, %v306_v38 }
  0x63   : > { %v573_v42 = vmin.f32 %v3243_v2, %v3245_v18  ;;  %v398_v34 = vsub.f32 %v353_v22, %v3070_v4  ;;  %v399_v24 = vsub.f32 %v353_v22, %v3073_v5  ;;  %v327_v39 = vsub.f32 %v251_v52, %v311_v19 }
  0x64   : > { %v372_v58 = vmul.f32 %v3050_v50, %v323_v30  ;;  %v432_v40 = vmul.f32 %v400_v46, %v400_v46  ;;  %v433_v47 = vmul.f32 %v401_v28, %v401_v28  ;;  %v371_v33 = vmul.f32 %v3050_v50, %v322_v6 }
  0x65   : > { %574 = vmin.xlane.f32.xlu2 %v573_v42  ;;  %v430_v35 = vmul.f32 %v398_v34, %v398_v34  ;;  %v431_v44 = vmul.f32 %v399_v24, %v399_v24  ;;  %v376_v48 = vmul.f32 %v3050_v50, %v327_v39  ;;  %v408_v37 = vsub.f32 %v358_v29, %v3070_v4 }
  0x66   : > { %v464_v53 = vsub.f32 %v372_v58, %v3081_v20  ;;  %v465_v55 = vsub.f32 %v372_v58, %v3084_v21  ;;  %v462_v56 = vsub.f32 %v371_v33, %v3081_v20  ;;  %v463_v52 = vsub.f32 %v371_v33, %v3084_v21 }
  0x67   : > { %v409_v59 = vsub.f32 %v358_v29, %v3073_v5  ;;  %v440_v60 = vmul.f32 %v408_v37, %v408_v37  ;;  %v472_v1 = vsub.f32 %v376_v48, %v3081_v20  ;;  %v473_v36 = vsub.f32 %v376_v48, %v3084_v21 }
  0x68   : > { %v496_v45 = vmul.f32 %v464_v53, %v464_v53  ;;  %v497_v9 = vmul.f32 %v465_v55, %v465_v55  ;;  %v494_v10 = vmul.f32 %v462_v56, %v462_v56  ;;  %v495_v11 = vmul.f32 %v463_v52, %v463_v52 }
  0x69   : > { %v441_v17 = vmul.f32 %v409_v59, %v409_v59  ;;  %v504_v23 = vmul.f32 %v472_v1, %v472_v1  ;;  %v505_v38 = vmul.f32 %v473_v36, %v473_v36  ;;  %v278_v22 = vmul.f32 %v3040_v43, %v250_v7 }
  0x6a   : > { %v3268_v19 = vadd.f32 %v496_v45, %v432_v40  ;;  %v3270_v30 = vadd.f32 %v497_v9, %v433_v47  ;;  %v3272_v29 = vadd.f32 %v494_v10, %v430_v35  ;;  %v3274_v46 = vadd.f32 %v495_v11, %v431_v44 }
  0x6b   : > { %v3276_v28 = vadd.f32 %v504_v23, %v440_v60  ;;  %v3278_v6 = vadd.f32 %v505_v38, %v441_v17  ;;  %v294_v42 = vfloor.f32 %v278_v22  ;;  %v249_v34 = vcvt.s32.f32 %v3236_v8 }
  0x6c   : > { %v570_v24 = vmin.f32 %v3268_v19, %v3270_v30  ;;  %v567_v39 = vmin.f32 %v3272_v29, %v3274_v46  ;;  %v252_v58 = vcvt.s32.f32 %v3239_v16 }
  0x6d   : > { %v582_v40 = vmin.f32 %v3276_v28, %v3278_v6  ;;  %v310_v47 = vmul.f32 16.0, %v294_v42  ;;  %v357_v33 = vmul.f32 %v3050_v50, %v294_v42  ;;  %v277_v35 = vmul.f32 %v3040_v43, %v249_v34 }
  0x6e   : > { %571 = vmin.xlane.f32.xlu1 %v570_v24  ;;  %568 = vmin.xlane.f32.xlu0 %v567_v39  ;;  %v280_v8 = vmul.f32 %v3040_v43, %v252_v58 }
  0x6f   : > { %583 = vmin.xlane.f32.xlu2 %v582_v40  ;;  %v326_v44 = vsub.f32 %v250_v7, %v310_v47  ;;  %v406_v48 = vsub.f32 %v357_v33, %v3070_v4  ;;  %v407_v16 = vsub.f32 %v357_v33, %v3073_v5  ;;  %v293_v37 = vfloor.f32 %v277_v35 }
  0x70   : > { %v296_v53 = vfloor.f32 %v280_v8 }
  0x71   : > { %v375_v55 = vmul.f32 %v3050_v50, %v326_v44  ;;  %v309_v56 = vmul.f32 16.0, %v293_v37  ;;  %v438_v52 = vmul.f32 %v406_v48, %v406_v48  ;;  %v356_v59 = vmul.f32 %v3050_v50, %v293_v37 }
  0x72   : > { %v312_v60 = vmul.f32 16.0, %v296_v53  ;;  %v359_v1 = vmul.f32 %v3050_v50, %v296_v53  ;;  %v439_v43 = vmul.f32 %v407_v16, %v407_v16 }
  0x73   : > { %v470_v36 = vsub.f32 %v375_v55, %v3081_v20  ;;  %v471_v54 = vsub.f32 %v375_v55, %v3084_v21  ;;  %v325_v7 = vsub.f32 %v249_v34, %v309_v56  ;;  %v404_v45 = vsub.f32 %v356_v59, %v3070_v4 }
  0x74   : > { %v405_v9 = vsub.f32 %v356_v59, %v3073_v5  ;;  %v328_v10 = vsub.f32 %v252_v58, %v312_v60  ;;  %v410_v11 = vsub.f32 %v359_v1, %v3070_v4  ;;  %v411_v39 = vsub.f32 %v359_v1, %v3073_v5 }
  0x75   : > { %v502_v17 = vmul.f32 %v470_v36, %v470_v36  ;;  %v503_v23 = vmul.f32 %v471_v54, %v471_v54  ;;  %v374_v38 = vmul.f32 %v3050_v50, %v325_v7  ;;  %v436_v22 = vmul.f32 %v404_v45, %v404_v45 }
  0x76   : > { %v437_v42 = vmul.f32 %v405_v9, %v405_v9  ;;  %v377_v24 = vmul.f32 %v3050_v50, %v328_v10  ;;  %v442_v33 = vmul.f32 %v410_v11, %v410_v11  ;;  %v443_v37 = vmul.f32 %v411_v39, %v411_v39 }
  0x77   : > { %v3306_v40 = vadd.f32 %v502_v17, %v438_v52  ;;  %v3308_v34 = vadd.f32 %v503_v23, %v439_v43  ;;  %v468_v47 = vsub.f32 %v374_v38, %v3081_v20  ;;  %v469_v58 = vsub.f32 %v374_v38, %v3084_v21 }
  0x78   : > { %v474_v4 = vsub.f32 %v377_v24, %v3081_v20  ;;  %v475_v35 = vsub.f32 %v377_v24, %v3084_v21 }
  0x79   : > { %v579_v8 = vmin.f32 %v3306_v40, %v3308_v34  ;;  %v500_v44 = vmul.f32 %v468_v47, %v468_v47  ;;  %v501_v50 = vmul.f32 %v469_v58, %v469_v58 }
  0x7a   : > { %v506_v48 = vmul.f32 %v474_v4, %v474_v4  ;;  %v507_v53 = vmul.f32 %v475_v35, %v475_v35 }
  0x7b   : > { %580 = vmin.xlane.f32.xlu1 %v579_v8  ;;  %v3316_v5 = vadd.f32 %v500_v44, %v436_v22  ;;  %v3318_v16 = vadd.f32 %v501_v50, %v437_v42 }
  0x7c   : > { %v3320_v55 = vadd.f32 %v506_v48, %v442_v33  ;;  %v3324_v21 = vadd.f32 %v507_v53, %v443_v37 }
  0x7d   : > { %v576_v20 = vmin.f32 %v3316_v5, %v3318_v16 }
  0x7e   : > { %v585_v56 = vmin.f32 %v3320_v55, %v3324_v21 }
  0x7f   : > { %577 = vmin.xlane.f32.xlu0 %v576_v20 }
  0x87   : > { %586 = vmin.xlane.f32.xlu0 %v585_v56 }
  0xb2   : > { %v3328_v52 = vpop.xlane.xlu2 %553 }
  0xb3   : > { %v592_v59 = vadd.f32 1e-05, %v3328_v52  ;;  %v3331_v60 = vpop.xlane.xlu1 %547 }
  0xb4   : > { %v590_v1 = vadd.f32 1e-05, %v3331_v60  ;;  %v849_v44 = vsub.f32 %v3331_v60, %v3105_v0 }
  0xb5   : > { %2622 = vrcp.f32 %v592_v59  ;;  %vm669_vm2 = vweird.f32 %v592_v59  ;;  %v675_v39 = vand.u32 2147483648, %v592_v59  ;;  %v673_v4 = vand.u32 2147483647, %v592_v59 }
  0xb6   : > { %2624 = vrcp.f32 %v590_v1  ;;  %v3334_v43 = vpop.xlane.xlu0 %541  ;;  %v645_v35 = vand.u32 2147483648, %v590_v1  ;;  %vm639_vm6 = vweird.f32 %v590_v1  ;;  %v643_v48 = vand.u32 2147483647, %v590_v1 }
  0xb7   : > { %v588_v36 = vadd.f32 1e-05, %v3334_v43  ;;  %vm674_vm9 = vcmp.eq.f32.partialorder %v673_v4, 8.507059e+37 }
  0xb8   : > { %vm644_vm11 = vcmp.eq.f32.partialorder %v643_v48, 8.507059e+37 }
  0xb9   : > { %2626 = vrcp.f32 %v588_v36  ;;  %v615_v56 = vand.u32 2147483648, %v588_v36  ;;  %vm609_vm10 = vweird.f32 %v588_v36 }
  0xbb   : > { %v2623_v54 = vpop.eup %2622 }
  0xbc   : > { %v2625_v7 = vpop.eup %2624  ;;  %v665_v45 = vmul.f32 %v2623_v54, %v592_v59  ;;  %v3337_v9 = vpop.xlane.xlu2 %556  ;;  %vm670_vm3 = vweird.f32 %v2623_v54 }
  0xbd   : > { %v635_v10 = vmul.f32 %v2625_v7, %v590_v1  ;;  %v3340_v11 = vadd.f32 1e-05, %v3337_v9  ;;  %vm640_vm4 = vweird.f32 %v2625_v7  ;;  %vm3348_vm5 = vmor %vm669_vm2, %vm670_vm3  ;;  %v646_v1 = vor.u32 1.1754944e-38, %v645_v35 }
  0xbe   : > { %v666_v17 = vsub.f32 1.0, %v665_v45  ;;  %vm3355_vm7 = vmor %vm639_vm6, %vm640_vm4  ;;  %v676_v45 = vor.u32 1.1754944e-38, %v675_v39  ;;  %v616_v39 = vor.u32 1.1754944e-38, %v615_v56 }
  0xbf   : > { %v2627_v23 = vpop.eup %2626  ;;  %v636_v38 = vsub.f32 1.0, %v635_v10  ;;  %2628 = vrcp.f32 %v3340_v11  ;;  %v3343_v22 = vpop.xlane.xlu1 %550  ;;  %vm684_vm14 = vweird.f32 %v3340_v11 }
  0xc0   : > { %v667_v42 = vmul.f32 %v2623_v54, %v666_v17  ;;  %v605_v24 = vmul.f32 %v2627_v23, %v588_v36  ;;  %v3346_v58 = vadd.f32 1e-05, %v3343_v22  ;;  %vm610_vm8 = vweird.f32 %v2627_v23 }
  0xc1   : > { %v637_v47 = vmul.f32 %v2625_v7, %v636_v38  ;;  %v613_v17 = vand.u32 2147483647, %v588_v36  ;;  %vm611_vm12 = vmor %vm609_vm10, %vm610_vm8 }
  0xc2   : > { %v668_v33 = vadd.f32 %v2623_v54, %v667_v42  ;;  %v606_v8 = vsub.f32 1.0, %v605_v24  ;;  %2630 = vrcp.f32 %v3346_v58  ;;  %v852_v24 = vsub.f32 %v3328_v52, %v3097_v32 }
  0xc3   : > { %v638_v50 = vadd.f32 %v2625_v7, %v637_v47  ;;  %vm614_vm13 = vcmp.eq.f32.partialorder %v613_v17, 8.507059e+37  ;;  %v3371_v36 = vpop.xlane.xlu0 %544  ;;  %vm654_vm3 = vweird.f32 %v3346_v58 }
  0xc4   : > { %v672_v37 = vsel %vm3348_vm5, %v2623_v54, %v668_v33  ;;  %v607_v20 = vmul.f32 %v2627_v23, %v606_v8 }
  0xc5   : > { %v3359_v59 = vpop.eup %2628  ;;  %v642_v10 = vsel %vm3355_vm7, %v2625_v7, %v638_v50  ;;  %v677_v42 = vsel %vm674_vm9, %v676_v45, %v672_v37  ;;  %v848_v7 = vsub.f32 %v3331_v60, %v3103_v63  ;;  %v844_v37 = vsub.f32 %v3334_v43, %v3115_v14 }
  0xc6   : > { %v608_v38 = vadd.f32 %v2627_v23, %v607_v20  ;;  %v680_v54 = vmul.f32 %v3359_v59, %v3340_v11  ;;  %v647_v47 = vsel %vm644_vm11, %v646_v1, %v642_v10  ;;  %v884_v35 = vmul.f32 %v852_v24, %v677_v42 }
  0xc7   : > { %v880_v48 = vmul.f32 %v848_v7, %v647_v47  ;;  %v845_v63 = vsub.f32 %v3334_v43, %v3117_v15  ;;  %v881_v20 = vmul.f32 %v849_v44, %v647_v47  ;;  %v3387_v60 = vadd.f32 1e-05, %v3371_v36 }
  0xc8   : > { %v612_v33 = vsel %vm611_vm12, %v2627_v23, %v608_v38  ;;  %v3367_v8 = vpop.eup %2630  ;;  %v681_v4 = vsub.f32 1.0, %v680_v54  ;;  %v853_v23 = vsub.f32 %v3328_v52, %v3099_v57  ;;  %v688_v10 = vand.u32 2147483647, %v3340_v11 }
  0xc9   : > { %v617_v50 = vsel %vm614_vm13, %v616_v39, %v612_v33  ;;  %v650_v32 = vmul.f32 %v3367_v8, %v3346_v58  ;;  %v854_v57 = vsub.f32 %v3337_v9, %v3139_v49  ;;  %v855_v14 = vsub.f32 %v3337_v9, %v3141_v51 }
  0xca   : > { %v3383_v53 = vpop.xlane.xlu2 %565  ;;  %v682_v56 = vmul.f32 %v3359_v59, %v681_v4  ;;  %v876_v45 = vmul.f32 %v844_v37, %v617_v50  ;;  %v924_v52 = vmul.f32 1.442695, %v884_v35  ;;  %v877_v15 = vmul.f32 %v845_v63, %v617_v50 }
  0xcb   : > { %v651_v0 = vsub.f32 1.0, %v650_v32  ;;  %v3396_v17 = vadd.f32 1e-05, %v3383_v53  ;;  %v885_v1 = vmul.f32 %v853_v23, %v677_v42  ;;  %v916_v38 = vmul.f32 1.442695, %v880_v48 }
  0xcc   : > { %v690_v54 = vand.u32 2147483648, %v3340_v11  ;;  %v918_v24 = vmul.f32 1.442695, %v881_v20  ;;  %v683_v47 = vadd.f32 %v3359_v59, %v682_v56  ;;  %vm685_vm15 = vweird.f32 %v3359_v59  ;;  %v3410_v39 = vpop.xlane.xlu1 %562 }
  0xcd   : > { %v652_v43 = vmul.f32 %v3367_v8, %v651_v0  ;;  %2632 = vrcp.f32 %v3387_v60  ;;  %v908_v49 = vmul.f32 1.442695, %v876_v45  ;;  %vm3403_vm0 = vcmp.eq.f32.partialorder %v688_v10, 8.507059e+37  ;;  %vm3416_vm2 = vmor %vm684_vm14, %vm685_vm15 }
  0xce   : > { %v850_v42 = vsub.f32 %v3343_v22, %v3151_v41  ;;  %2634 = vrcp.f32 %v3396_v17  ;;  %v910_v7 = vmul.f32 1.442695, %v877_v15  ;;  %vm655_vm1 = vweird.f32 %v3367_v8 }
  0xcf   : > { %2636 = vpow2.f32 %v924_v52  ;;  %v653_v4 = vadd.f32 %v3367_v8, %v652_v43  ;;  %v658_v41 = vand.u32 2147483647, %v3346_v58  ;;  %v660_v44 = vand.u32 2147483648, %v3346_v58  ;;  %v3423_v50 = vpop.xlane.xlu0 %559  ;;  %vm3431_vm4 = vmor %vm654_vm3, %vm655_vm1 }
  0xd0   : > { %2638 = vpow2.f32 %v916_v38  ;;  %v926_v32 = vmul.f32 1.442695, %v885_v1  ;;  %v687_v23 = vsel %vm3416_vm2, %v3359_v59, %v683_v47  ;;  %v3429_v11 = vadd.f32 1e-05, %v3410_v39 }
  0xd1   : > { %2640 = vpow2.f32 %v918_v24  ;;  %v691_v48 = vor.u32 1.1754944e-38, %v690_v54  ;;  %v851_v58 = vsub.f32 %v3343_v22, %v3153_v3  ;;  %v628_v63 = vand.u32 2147483647, %v3387_v60 }
  0xd2   : > { %2642 = vpow2.f32 %v908_v49  ;;  %v657_v59 = vsel %vm3431_vm4, %v3367_v8, %v653_v4  ;;  %v630_v56 = vand.u32 2147483648, %v3387_v60  ;;  %v3445_v0 = vadd.f32 1e-05, %v3423_v50 }
  0xd3   : > { %v3438_v20 = vpop.eup %2632  ;;  %2644 = vpow2.f32 %v910_v7  ;;  %v692_v10 = vsel %vm3403_vm0, %v691_v48, %v687_v23  ;;  %v661_v3 = vor.u32 1.1754944e-38, %v660_v44  ;;  %vm659_vm5 = vcmp.eq.f32.partialorder %v658_v41, 8.507059e+37 }
  0xd4   : > { %v3447_v45 = vpop.eup %2634  ;;  %v620_v22 = vmul.f32 %v3438_v20, %v3387_v60  ;;  %2646 = vrcp.f32 %v3429_v11  ;;  %v846_v8 = vsub.f32 %v3371_v36, %v3169_v25  ;;  %vm624_vm6 = vweird.f32 %v3387_v60 }
  0xd5   : > { %v3454_v52 = vpop.eup %2636  ;;  %2648 = vpow2.f32 %v926_v32  ;;  %v725_v15 = vmul.f32 %v3447_v45, %v3396_v17  ;;  %v662_v1 = vsel %vm659_vm5, %v661_v3, %v657_v59  ;;  %v847_v54 = vsub.f32 %v3371_v36, %v3171_v26 }
  0xd6   : > { %v3460_v43 = vpop.eup %2638  ;;  %v621_v38 = vsub.f32 1.0, %v620_v22  ;;  %v886_v49 = vmul.f32 %v854_v57, %v692_v10  ;;  %vm3469_vm7 = vcmp.eq.f32.partialorder %v628_v63, 8.507059e+37  ;;  %v631_v7 = vor.u32 1.1754944e-38, %v630_v56 }
  0xd7   : > { %v3467_v47 = vpop.eup %2640  ;;  %v726_v4 = vsub.f32 1.0, %v725_v15  ;;  %2650 = vrcp.f32 %v3445_v0  ;;  %v887_v41 = vmul.f32 %v855_v14, %v692_v10  ;;  %vm729_vm8 = vweird.f32 %v3396_v17 }
  0xd8   : > { %v3465_v24 = vpop.xlane.xlu2 %574  ;;  %v3474_v35 = vpop.eup %2642  ;;  %v622_v44 = vmul.f32 %v3438_v20, %v621_v38  ;;  %v733_v57 = vand.u32 2147483647, %v3396_v17  ;;  %v882_v23 = vmul.f32 %v850_v42, %v662_v1  ;;  %vm625_vm9 = vweird.f32 %v3438_v20 }
  0xd9   : > { %v3482_v32 = vpop.eup %2644  ;;  %v727_v48 = vmul.f32 %v3447_v45, %v726_v4  ;;  %v3487_v37 = vadd.f32 1e-05, %v3465_v24  ;;  %v735_v9 = vand.u32 2147483648, %v3396_v17  ;;  %v860_v14 = vsub.f32 %v3383_v53, %v3193_v61  ;;  %vm3508_vm10 = vmor %vm624_vm6, %vm625_vm9 }
  0xda   : > { %v3489_v63 = vpop.eup %2646  ;;  %v623_v51 = vadd.f32 %v3438_v20, %v622_v44  ;;  %v978_v59 = vadd.f32 %v3467_v47, %v3460_v43  ;;  %v928_v56 = vmul.f32 1.442695, %v886_v49  ;;  %v861_v10 = vsub.f32 %v3383_v53, %v3195_v27 }
  0xdb   : > { %v3497_v42 = vpop.eup %2648  ;;  %v710_v3 = vmul.f32 %v3489_v63, %v3429_v11  ;;  %2652 = vrcp.f32 %v3487_v37  ;;  %v930_v22 = vmul.f32 1.442695, %v887_v41  ;;  %v883_v15 = vmul.f32 %v851_v58, %v662_v1 }
  0xdc   : > { %v728_v38 = vadd.f32 %v3447_v45, %v727_v48  ;;  %vm730_vm11 = vweird.f32 %v3447_v45  ;;  %979 = vadd.xlane.f32.xlu0 %v978_v59  ;;  %v920_v53 = vmul.f32 1.442695, %v882_v23  ;;  %v627_v58 = vsel %vm3508_vm10, %v3438_v20, %v623_v51 }
  0xdd   : > { %v3514_v27 = vpop.eup %2650  ;;  %v711_v1 = vsub.f32 1.0, %v710_v3  ;;  %v972_v60 = vadd.f32 %v3482_v32, %v3474_v35  ;;  %vm3521_vm12 = vcmp.eq.f32.partialorder %v733_v57, 8.507059e+37  ;;  %v736_v4 = vor.u32 1.1754944e-38, %v735_v9  ;;  %vm3530_vm13 = vmor %vm729_vm8, %vm730_vm11 }
  0xde   : > { %v720_v41 = vand.u32 2147483648, %v3429_v11  ;;  %v695_v44 = vmul.f32 %v3514_v27, %v3445_v0  ;;  %2654 = vpow2.f32 %v928_v56  ;;  %vm714_vm14 = vweird.f32 %v3429_v11 }
  0xdf   : > { %v712_v20 = vmul.f32 %v3489_v63, %v711_v1  ;;  %vm715_vm15 = vweird.f32 %v3489_v63  ;;  %973 = vadd.xlane.f32.xlu1 %v972_v60  ;;  %2656 = vpow2.f32 %v930_v22  ;;  %v632_v57 = vsel %vm3469_vm7, %v631_v7, %v627_v58 }
  0xe0   : > { %v732_v48 = vsel %vm3530_vm13, %v3447_v45, %v728_v38  ;;  %v696_v17 = vsub.f32 1.0, %v695_v44  ;;  %2658 = vpow2.f32 %v920_v53  ;;  %v922_v59 = vmul.f32 1.442695, %v883_v15  ;;  %vm3548_vm0 = vmor %vm714_vm14, %vm715_vm15 }
  0xe1   : > { %v3542_v51 = vpop.xlane.xlu1 %571  ;;  %v3544_v9 = vpop.eup %2652  ;;  %v713_v56 = vadd.f32 %v3489_v63, %v712_v20  ;;  %v718_v3 = vand.u32 2147483647, %v3429_v11  ;;  %v721_v33 = vor.u32 1.1754944e-38, %v720_v41  ;;  %v705_v45 = vand.u32 2147483648, %v3445_v0 }
  0xe2   : > { %v697_v7 = vmul.f32 %v3514_v27, %v696_v17  ;;  %v770_v61 = vmul.f32 %v3544_v9, %v3487_v37  ;;  %v878_v15 = vmul.f32 %v846_v8, %v632_v57  ;;  %v737_v38 = vsel %vm3521_vm12, %v736_v4, %v732_v48 }
  0xe3   : > { %v717_v11 = vsel %vm3548_vm0, %v3489_v63, %v713_v56  ;;  %v3565_v53 = vadd.f32 1e-05, %v3542_v51  ;;  %v879_v58 = vmul.f32 %v847_v54, %v632_v57  ;;  %vm700_vm1 = vweird.f32 %v3514_v27  ;;  %v3581_v54 = vpop.xlane.xlu0 %568 }
  0xe4   : > { %v698_v1 = vadd.f32 %v3514_v27, %v697_v7  ;;  %v771_v25 = vsub.f32 1.0, %v770_v61  ;;  %v3572_v8 = vpop.eup %2654  ;;  %2660 = vpow2.f32 %v922_v59  ;;  %vm719_vm2 = vcmp.eq.f32.partialorder %v718_v3, 8.507059e+37 }
  0xe5   : > { %v858_v60 = vsub.f32 %v3410_v39, %v3201_v12  ;;  %vm699_vm3 = vweird.f32 %v3445_v0  ;;  %v3577_v63 = vpop.eup %2656  ;;  %v892_v49 = vmul.f32 %v860_v14, %v737_v38  ;;  %v722_v4 = vsel %vm719_vm2, %v721_v33, %v717_v11 }
  0xe6   : > { %v703_v26 = vand.u32 2147483647, %v3445_v0  ;;  %v772_v36 = vmul.f32 %v3544_v9, %v771_v25  ;;  %v3583_v41 = vpop.eup %2658  ;;  %v893_v44 = vmul.f32 %v861_v10, %v737_v38  ;;  %v859_v23 = vsub.f32 %v3410_v39, %v3203_v13  ;;  %vm3589_vm4 = vmor %vm699_vm3, %vm700_vm1 }
  0xe7   : > { %v706_v14 = vor.u32 1.1754944e-38, %v705_v45  ;;  %2662 = vrcp.f32 %v3565_v53  ;;  %v912_v0 = vmul.f32 1.442695, %v878_v15  ;;  %v914_v20 = vmul.f32 1.442695, %v879_v58  ;;  %v3616_v45 = vpop.xlane.xlu2 %583 }
  0xe8   : > { %v702_v57 = vsel %vm3589_vm4, %v3514_v27, %v698_v1  ;;  %vm774_vm5 = vweird.f32 %v3487_v37  ;;  %v890_v10 = vmul.f32 %v858_v60, %v722_v4  ;;  %v773_v13 = vadd.f32 %v3544_v9, %v772_v36 }
  0xe9   : > { %vm775_vm6 = vweird.f32 %v3544_v9  ;;  %v3601_v39 = vadd.f32 1e-05, %v3581_v54  ;;  %v940_v48 = vmul.f32 1.442695, %v892_v49  ;;  %vm704_vm7 = vcmp.eq.f32.partialorder %v703_v26, 8.507059e+37 }
  0xea   : > { %v778_v17 = vand.u32 2147483647, %v3487_v37  ;;  %v780_v59 = vand.u32 2147483648, %v3487_v37  ;;  %v3605_v56 = vpop.eup %2660  ;;  %v942_v3 = vmul.f32 1.442695, %v893_v44  ;;  %v891_v27 = vmul.f32 %v859_v23, %v722_v4  ;;  %vm3612_vm8 = vmor %vm774_vm5, %vm775_vm6 }
  0xeb   : > { %v707_v22 = vsel %vm704_vm7, %v706_v14, %v702_v57  ;;  %2664 = vrcp.f32 %v3601_v39  ;;  %v856_v33 = vsub.f32 %v3423_v50, %v3211_v62  ;;  %v936_v15 = vmul.f32 1.442695, %v890_v10 }
  0xec   : > { %2666 = vpow2.f32 %v912_v0  ;;  %v777_v38 = vsel %vm3612_vm8, %v3544_v9, %v773_v13  ;;  %v857_v62 = vsub.f32 %v3423_v50, %v3213_v31  ;;  %v781_v58 = vor.u32 1.1754944e-38, %v780_v59 }
  0xed   : > { %v3618_v61 = vpop.eup %2662  ;;  %2668 = vpow2.f32 %v914_v20  ;;  %v888_v37 = vmul.f32 %v856_v33, %v707_v22  ;;  %v938_v1 = vmul.f32 1.442695, %v891_v27  ;;  %vm779_vm9 = vcmp.eq.f32.partialorder %v778_v17, 8.507059e+37 }
  0xee   : > { %v3623_v11 = vpop.xlane.xlu1 %580  ;;  %2670 = vpow2.f32 %v940_v48  ;;  %v3628_v25 = vadd.f32 1e-05, %v3616_v45  ;;  %v889_v60 = vmul.f32 %v857_v62, %v707_v22  ;;  %v782_v49 = vsel %vm779_vm9, %v781_v58, %v777_v38 }
  0xef   : > { %2672 = vpow2.f32 %v942_v3  ;;  %v755_v4 = vmul.f32 %v3618_v61, %v3565_v53  ;;  %v3633_v9 = vadd.f32 1e-05, %v3623_v11  ;;  %v866_v31 = vsub.f32 %v3465_v24, %v3243_v2 }
  0xf0   : > { %2674 = vpow2.f32 %v936_v15  ;;  %v867_v50 = vsub.f32 %v3465_v24, %v3245_v18  ;;  %v932_v23 = vmul.f32 1.442695, %v888_v37  ;;  %v765_v12 = vand.u32 2147483648, %v3565_v53 }
  0xf1   : > { %v2665_v36 = vpop.eup %2664  ;;  %2676 = vrcp.f32 %v3628_v25  ;;  %v898_v20 = vmul.f32 %v866_v31, %v782_v49  ;;  %v763_v57 = vand.u32 2147483647, %v3565_v53  ;;  %v864_v2 = vsub.f32 %v3542_v51, %v3268_v19 }
  0xf2   : > { %v3635_v26 = vpop.xlane.xlu0 %577  ;;  %v3641_v44 = vpop.eup %2666  ;;  %v740_v14 = vmul.f32 %v2665_v36, %v3601_v39  ;;  %2678 = vrcp.f32 %v3633_v9  ;;  %v934_v24 = vmul.f32 1.442695, %v889_v60  ;;  %v756_v10 = vsub.f32 1.0, %v755_v4 }
  0xf3   : > { %v3646_v0 = vpop.eup %2668  ;;  %2680 = vpow2.f32 %v938_v1  ;;  %vm759_vm10 = vweird.f32 %v3565_v53  ;;  %v899_v17 = vmul.f32 %v867_v50, %v782_v49  ;;  %v748_v59 = vand.u32 2147483647, %v3601_v39 }
  0xf4   : > { %v3652_v18 = vpop.eup %2670  ;;  %v741_v13 = vsub.f32 1.0, %v740_v14  ;;  %v750_v3 = vand.u32 2147483648, %v3601_v39  ;;  %v3660_v27 = vadd.f32 1e-05, %v3635_v26  ;;  %2682 = vpow2.f32 %v932_v23 }
  0xf5   : > { %v3655_v48 = vpop.eup %2672  ;;  %v3662_v22 = vor.u32 1.1754944e-38, %v765_v12  ;;  %vm745_vm11 = vweird.f32 %v2665_v36  ;;  %v952_v15 = vmul.f32 1.442695, %v898_v20  ;;  %v865_v38 = vsub.f32 %v3542_v51, %v3270_v30 }
  0xf6   : > { %v742_v33 = vmul.f32 %v2665_v36, %v741_v13  ;;  %v3664_v7 = vpop.eup %2674  ;;  %vm744_vm12 = vweird.f32 %v3601_v39  ;;  %2684 = vrcp.f32 %v3660_v27  ;;  %v757_v37 = vmul.f32 %v3618_v61, %v756_v10 }
  0xf7   : > { %v2677_v62 = vpop.eup %2676  ;;  %2686 = vpow2.f32 %v934_v24  ;;  %vm760_vm13 = vweird.f32 %v3618_v61  ;;  %v954_v60 = vmul.f32 1.442695, %v899_v17  ;;  %vm3674_vm14 = vmor %vm744_vm12, %vm745_vm11  ;;  %vm3678_vm15 = vcmp.eq.f32.partialorder %v748_v59, 8.507059e+37 }
  0xf8   : > { %v743_v58 = vadd.f32 %v2665_v36, %v742_v33  ;;  %v3672_v1 = vpop.eup %2678  ;;  %v751_v39 = vor.u32 1.1754944e-38, %v750_v3  ;;  %v815_v31 = vmul.f32 %v2677_v62, %v3628_v25  ;;  %vm3685_vm0 = vcmp.eq.f32.partialorder %v763_v57, 8.507059e+37  ;;  %vm3725_vm4 = vmor %vm759_vm10, %vm760_vm13 }
  0xf9   : > { %v3683_v50 = vpop.eup %2680  ;;  %v862_v14 = vsub.f32 %v3581_v54, %v3272_v29  ;;  %v823_v20 = vand.u32 2147483647, %v3628_v25  ;;  %v825_v24 = vand.u32 2147483648, %v3628_v25  ;;  %2688 = vpow2.f32 %v952_v15 }
  0xfa   : > { %v747_v12 = vsel %vm3674_vm14, %v2665_v36, %v743_v58  ;;  %v3695_v10 = vpop.xlane.xlu0 %586  ;;  %v863_v13 = vsub.f32 %v3581_v54, %v3274_v46  ;;  %v816_v57 = vsub.f32 1.0, %v815_v31  ;;  %v872_v17 = vsub.f32 %v3616_v45, %v3276_v28  ;;  %v3701_v59 = vpop.eup %2682 }
  0xfb   : > { %v758_v36 = vadd.f32 %v3618_v61, %v757_v37  ;;  %v752_v29 = vsel %vm3678_vm15, %v751_v39, %v747_v12  ;;  %v873_v3 = vsub.f32 %v3616_v45, %v3278_v6  ;;  %v800_v33 = vmul.f32 %v3672_v1, %v3633_v9 }
  0xfc   : > { %v2685_v15 = vpop.eup %2684  ;;  %v817_v58 = vmul.f32 %v2677_v62, %v816_v57  ;;  %vm819_vm1 = vweird.f32 %v3628_v25  ;;  %vm820_vm2 = vweird.f32 %v2677_v62  ;;  %v3712_v46 = vadd.f32 1e-05, %v3695_v10 }
  0xfd   : > { %v3714_v28 = vpop.eup %2686  ;;  %2690 = vpow2.f32 %v954_v60  ;;  %vm3716_vm3 = vcmp.eq.f32.partialorder %v823_v20, 8.507059e+37  ;;  %v826_v37 = vor.u32 1.1754944e-38, %v825_v24  ;;  %v785_v6 = vmul.f32 %v2685_v15, %v3660_v27  ;;  %vm821_vm5 = vmor %vm819_vm1, %vm820_vm2 }
  0xfe   : > { %v894_v25 = vmul.f32 %v862_v14, %v752_v29  ;;  %v818_v49 = vadd.f32 %v2677_v62, %v817_v58  ;;  %v808_v4 = vand.u32 2147483647, %v3633_v9  ;;  %2692 = vrcp.f32 %v3712_v46 }
  0xff   : > { %v762_v60 = vsel %vm3725_vm4, %v3618_v61, %v758_v36  ;;  %v801_v39 = vsub.f32 1.0, %v800_v33  ;;  %vm804_vm6 = vweird.f32 %v3633_v9  ;;  %v810_v53 = vand.u32 2147483648, %v3633_v9  ;;  %v3736_v12 = vpop.eup %2688 }
 0x100   : > { %v786_v31 = vsub.f32 1.0, %v785_v6  ;;  %v895_v20 = vmul.f32 %v863_v13, %v752_v29  ;;  %v822_v14 = vsel %vm821_vm5, %v2677_v62, %v818_v49  ;;  %v795_v24 = vand.u32 2147483648, %v3660_v27 }
 0x101   : > { %v987_v57 = vadd.f32 %v3577_v63, %v3572_v8  ;;  %v827_v58 = vsel %vm3716_vm3, %v826_v37, %v822_v14  ;;  %vm790_vm7 = vweird.f32 %v2685_v15  ;;  %v793_v36 = vand.u32 2147483647, %v3660_v27 }
 0x102   : > { %v787_v61 = vmul.f32 %v2685_v15, %v786_v31  ;;  %v767_v33 = vsel %vm3685_vm0, %v3662_v22, %v762_v60  ;;  %v944_v6 = vmul.f32 1.442695, %v894_v25  ;;  %vm789_vm8 = vweird.f32 %v3660_v27 }
 0x103   : > { %v868_v62 = vsub.f32 %v3635_v26, %v3316_v5  ;;  %988 = vadd.xlane.f32.xlu0 %v987_v57  ;;  %v3750_v13 = vpop.eup %2690  ;;  %v802_v29 = vmul.f32 %v3672_v1, %v801_v39  ;;  %v869_v37 = vsub.f32 %v3635_v26, %v3318_v16  ;;  %v981_v45 = vadd.f32 %v3605_v56, %v3583_v41  ;;  %vm791_vm9 = vmor %vm789_vm8, %vm790_vm7 }
 0x104   : > { %v788_v54 = vadd.f32 %v2685_v15, %v787_v61  ;;  %v2693_v23 = vpop.eup %2692  ;;  %v946_v22 = vmul.f32 1.442695, %v895_v20  ;;  %v904_v25 = vmul.f32 %v872_v17, %v827_v58  ;;  %v796_v27 = vor.u32 1.1754944e-38, %v795_v24 }
 0x105   : > { %v975_v5 = vadd.f32 %v3646_v0, %v3641_v44  ;;  %v905_v49 = vmul.f32 %v873_v3, %v827_v58  ;;  %vm794_vm10 = vcmp.eq.f32.partialorder %v793_v36, 8.507059e+37  ;;  %v830_v39 = vmul.f32 %v2693_v23, %v3712_v46  ;;  %982 = vadd.xlane.f32.xlu1 %v981_v45 }
 0x106   : > { %v792_v60 = vsel %vm791_vm9, %v2685_v15, %v788_v54  ;;  %2694 = vpow2.f32 %v944_v6  ;;  %vm805_vm11 = vweird.f32 %v3672_v1  ;;  %v996_v26 = vadd.f32 %v3655_v48, %v3652_v18 }
 0x107   : > { %v797_v16 = vsel %vm794_vm10, %v796_v27, %v792_v60  ;;  %976 = vadd.xlane.f32.xlu2 %v975_v5  ;;  %v803_v17 = vadd.f32 %v3672_v1, %v802_v29  ;;  %v831_v20 = vsub.f32 1.0, %v830_v39  ;;  %v838_v14 = vand.u32 2147483647, %v3712_v46  ;;  %vm3779_vm13 = vmor %vm804_vm6, %vm805_vm11 }
 0x108   : > { %v900_v31 = vmul.f32 %v868_v62, %v797_v16  ;;  %2696 = vpow2.f32 %v946_v22  ;;  %v964_v3 = vmul.f32 1.442695, %v904_v25  ;;  %v901_v15 = vmul.f32 %v869_v37, %v797_v16 }
 0x109   : > { %v840_v24 = vand.u32 2147483648, %v3712_v46  ;;  %v966_v57 = vmul.f32 1.442695, %v905_v49  ;;  %v832_v58 = vmul.f32 %v2693_v23, %v831_v20  ;;  %vm835_vm12 = vweird.f32 %v2693_v23 }
 0x10a   : > { %v990_v61 = vadd.f32 %v3714_v28, %v3701_v59  ;;  %v896_v36 = vmul.f32 %v864_v2, %v767_v33  ;;  %v897_v6 = vmul.f32 %v865_v38, %v767_v33  ;;  %vm3783_vm14 = vcmp.eq.f32.partialorder %v808_v4, 8.507059e+37 }
 0x10b   : > { %v811_v54 = vor.u32 1.1754944e-38, %v810_v53  ;;  %997 = vadd.xlane.f32.xlu0 %v996_v26  ;;  %v807_v19 = vsel %vm3779_vm13, %v3672_v1, %v803_v17  ;;  %v956_v30 = vmul.f32 1.442695, %v900_v31  ;;  %v833_v51 = vadd.f32 %v2693_v23, %v832_v58 }
 0x10c   : > { %vm834_vm15 = vweird.f32 %v3712_v46  ;;  %v3791_v2 = vpop.eup %2694  ;;  %2698 = vpow2.f32 %v964_v3  ;;  %v958_v9 = vmul.f32 1.442695, %v901_v15  ;;  %v841_v38 = vor.u32 1.1754944e-38, %v840_v24 }
 0x10d   : > { %vm836_vm0 = vmor %vm834_vm15, %vm835_vm12  ;;  %v984_v4 = vadd.f32 %v3497_v42, %v3454_v52  ;;  %2700 = vpow2.f32 %v966_v57  ;;  %vm839_vm1 = vcmp.eq.f32.partialorder %v838_v14, 8.507059e+37  ;;  %v874_v1 = vsub.f32 %v3695_v10, %v3320_v55  ;;  %991 = vadd.xlane.f32.xlu1 %v990_v61 }
 0x10e   : > { %v837_v53 = vsel %vm836_vm0, %v2693_v23, %v833_v51  ;;  %v3798_v33 = vpop.eup %2696  ;;  %v948_v46 = vmul.f32 1.442695, %v896_v36  ;;  %v875_v45 = vsub.f32 %v3695_v10, %v3324_v21  ;;  %v1005_v22 = vadd.f32 %v3750_v13, %v3736_v12 }
 0x10f   : > { %v842_v37 = vsel %vm839_vm1, %v841_v38, %v837_v53  ;;  %985 = vadd.xlane.f32.xlu2 %v984_v4  ;;  %v950_v25 = vmul.f32 1.442695, %v897_v6  ;;  %v812_v23 = vsel %vm3783_vm14, %v811_v54, %v807_v19  ;;  %2702 = vpow2.f32 %v956_v30 }
 0x110   : > { %v906_v27 = vmul.f32 %v874_v1, %v842_v37  ;;  %v870_v55 = vsub.f32 %v3623_v11, %v3306_v40  ;;  %2704 = vpow2.f32 %v958_v9  ;;  %v907_v5 = vmul.f32 %v875_v45, %v842_v37 }
 0x111   : > { %v871_v49 = vsub.f32 %v3623_v11, %v3308_v34  ;;  %v999_v21 = vadd.f32 %v3798_v33, %v3791_v2  ;;  %2706 = vpow2.f32 %v948_v46  ;;  %v993_v40 = vadd.f32 %v3683_v50, %v3664_v7 }
 0x112   : > { %v3812_v10 = vpop.eup %2698  ;;  %v902_v60 = vmul.f32 %v870_v55, %v812_v23  ;;  %2708 = vpow2.f32 %v950_v25  ;;  %v968_v26 = vmul.f32 1.442695, %v906_v27  ;;  %v970_v17 = vmul.f32 1.442695, %v907_v5 }
 0x113   : > { %1006 = vadd.xlane.f32.xlu0 %v1005_v22  ;;  %v3814_v39 = vpop.eup %2700  ;;  %v903_v16 = vmul.f32 %v871_v49, %v812_v23 }
 0x114   : > { %v960_v11 = vmul.f32 1.442695, %v902_v60  ;;  %v1014_v20 = vadd.f32 %v3814_v39, %v3812_v10  ;;  %2710 = vpow2.f32 %v968_v26 }
 0x115   : > { %v3818_v31 = vpop.eup %2702  ;;  %1000 = vadd.xlane.f32.xlu1 %v999_v21  ;;  %v962_v14 = vmul.f32 1.442695, %v903_v16  ;;  %2712 = vpow2.f32 %v970_v17 }
 0x116   : > { %v3820_v34 = vpop.eup %2704  ;;  %2714 = vpow2.f32 %v960_v11 }
 0x117   : > { %994 = vadd.xlane.f32.xlu2 %v993_v40  ;;  %v3824_v3 = vpop.eup %2706  ;;  %v1008_v24 = vadd.f32 %v3820_v34, %v3818_v31  ;;  %2716 = vpow2.f32 %v962_v14 }
 0x118   : > { %v3826_v15 = vpop.eup %2708 }
 0x119   : > { %v1002_v57 = vadd.f32 %v3826_v15, %v3824_v3 }
 0x11a   : > { %v3832_v58 = vpop.eup %2710 }
 0x11b   : > { %1015 = vadd.xlane.f32.xlu0 %v1014_v20  ;;  %v3834_v61 = vpop.eup %2712 }
 0x11c   : > { %v3836_v36 = vpop.eup %2714  ;;  %v1017_v62 = vadd.f32 %v3834_v61, %v3832_v58 }
 0x11d   : > { %1009 = vadd.xlane.f32.xlu1 %v1008_v24  ;;  %v3838_v6 = vpop.eup %2716 }
 0x11e   : > { %v1011_v29 = vadd.f32 %v3838_v6, %v3836_v36 }
 0x11f   : > { %1003 = vadd.xlane.f32.xlu2 %v1002_v57 }
 0x125   : > { %1018 = vadd.xlane.f32.xlu1 %v1017_v62 }
 0x127   : > { %1012 = vadd.xlane.f32.xlu2 %v1011_v29 }
 0x14f   : > { %v980_v54 = vpop.xlane.xlu0 %979 }
 0x150   : > { %2718 = vrcp.f32 %v980_v54  ;;  %v1061_v53 = vand.u32 2147483648, %v980_v54  ;;  %v1059_v46 = vand.u32 2147483647, %v980_v54  ;;  %vm1055_vm3 = vweird.f32 %v980_v54 }
 0x152   : > { %v974_v19 = vpop.xlane.xlu1 %973  ;;  %v1062_v27 = vor.u32 1.1754944e-38, %v1061_v53  ;;  %vm1060_vm6 = vcmp.eq.f32.partialorder %v1059_v46, 8.507059e+37 }
 0x153   : > { %2720 = vrcp.f32 %v974_v19  ;;  %v1031_v45 = vand.u32 2147483648, %v974_v19  ;;  %v1029_v23 = vand.u32 2147483647, %v974_v19  ;;  %vm1025_vm7 = vweird.f32 %v974_v19 }
 0x155   : > { %v1032_v21 = vor.u32 1.1754944e-38, %v1031_v45  ;;  %vm1030_vm9 = vcmp.eq.f32.partialorder %v1029_v23, 8.507059e+37 }
 0x156   : > { %v2719_v30 = vpop.eup %2718 }
 0x157   : > { %v1051_v51 = vmul.f32 %v2719_v30, %v980_v54  ;;  %vm1056_vm2 = vweird.f32 %v2719_v30 }
 0x158   : > { %vm1057_vm5 = vmor %vm1055_vm3, %vm1056_vm2 }
 0x159   : > { %v2721_v9 = vpop.eup %2720  ;;  %v1052_v38 = vsub.f32 1.0, %v1051_v51 }
 0x15a   : > { %v1021_v4 = vmul.f32 %v2721_v9, %v974_v19  ;;  %vm1026_vm4 = vweird.f32 %v2721_v9 }
 0x15b   : > { %v1053_v1 = vmul.f32 %v2719_v30, %v1052_v38  ;;  %vm1027_vm8 = vmor %vm1025_vm7, %vm1026_vm4 }
 0x15c   : > { %v1022_v37 = vsub.f32 1.0, %v1021_v4 }
 0x15d   : > { %v1054_v22 = vadd.f32 %v2719_v30, %v1053_v1 }
 0x15e   : > { %v1023_v25 = vmul.f32 %v2721_v9, %v1022_v37 }
 0x15f   : > { %v1058_v55 = vsel %vm1057_vm5, %v2719_v30, %v1054_v22 }
 0x160   : > { %v1024_v5 = vadd.f32 %v2721_v9, %v1023_v25  ;;  %v1063_v49 = vsel %vm1060_vm6, %v1062_v27, %v1058_v55 }
 0x161   : > { %v1064_v60 = vmul.f32 0.1, %v1063_v49 }
 0x162   : > { %v1028_v16 = vsel %vm1027_vm8, %v2721_v9, %v1024_v5 }
 0x163   : > { %v1033_v26 = vsel %vm1030_vm9, %v1032_v21, %v1028_v16  ;;  %v1264_v17 = vmul.f32 %v3460_v43, %v1064_v60  ;;  %v1265_v40 = vmul.f32 %v3467_v47, %v1064_v60 }
 0x164   : > { %v1034_v11 = vmul.f32 0.1, %v1033_v26 }
 0x165   : > { %1296 = vst [vmem:[#allocation2 + $0x50] sm:$0xff] %v1264_v17 }
 0x166   : > { %v1260_v20 = vmul.f32 %v3474_v35, %v1034_v11  ;;  %v1261_v14 = vmul.f32 %v3482_v32, %v1034_v11  ;;  %1297 = vst [vmem:[#allocation2 + $0x68] sm:$0xff] %v1265_v40 }
 0x168   : > { %1292 = vst [vmem:[#allocation2 + $0xb0] sm:$0xff] %v1260_v20 }
 0x169   : > { %1293 = vst [vmem:[#allocation2] sm:$0xff] %v1261_v14 }
 0x176   : > { %v989_v24 = vpop.xlane.xlu0 %988 }
 0x177   : > { %2722 = vrcp.f32 %v989_v24  ;;  %v1104_v29 = vand.u32 2147483647, %v989_v24  ;;  %v1106_v54 = vand.u32 2147483648, %v989_v24  ;;  %vm1100_vm10 = vweird.f32 %v989_v24 }
 0x178   : > { %v983_v57 = vpop.xlane.xlu1 %982 }
 0x179   : > { %2724 = vrcp.f32 %v983_v57  ;;  %v1074_v30 = vand.u32 2147483647, %v983_v57  ;;  %v1076_v35 = vand.u32 2147483648, %v983_v57  ;;  %vm3850_vm11 = vcmp.eq.f32.partialorder %v1104_v29, 8.507059e+37 }
 0x17a   : > { %v977_v62 = vpop.xlane.xlu2 %976  ;;  %vm1070_vm12 = vweird.f32 %v983_v57  ;;  %v1107_v4 = vor.u32 1.1754944e-38, %v1106_v54 }
 0x17b   : > { %2726 = vrcp.f32 %v977_v62  ;;  %v1044_v9 = vand.u32 2147483647, %v977_v62  ;;  %vm1040_vm13 = vweird.f32 %v977_v62  ;;  %v1046_v46 = vand.u32 2147483648, %v977_v62 }
 0x17c   : > { %vm3861_vm15 = vcmp.eq.f32.partialorder %v1074_v30, 8.507059e+37  ;;  %v1077_v5 = vor.u32 1.1754944e-38, %v1076_v35 }
 0x17d   : > { %v2723_v43 = vpop.eup %2722  ;;  %vm3866_vm0 = vcmp.eq.f32.partialorder %v1044_v9, 8.507059e+37  ;;  %v1047_v40 = vor.u32 1.1754944e-38, %v1046_v46 }
 0x17e   : > { %v1096_v19 = vmul.f32 %v2723_v43, %v989_v24  ;;  %v3848_v47 = vpop.xlane.xlu0 %997  ;;  %vm1101_vm14 = vweird.f32 %v2723_v43 }
 0x17f   : > { %2728 = vrcp.f32 %v3848_v47  ;;  %v2725_v51 = vpop.eup %2724  ;;  %v1151_v45 = vand.u32 2147483648, %v3848_v47  ;;  %v1149_v16 = vand.u32 2147483647, %v3848_v47  ;;  %vm1102_vm2 = vmor %vm1100_vm10, %vm1101_vm14  ;;  %vm1145_vm4 = vweird.f32 %v3848_v47 }
 0x180   : > { %v1097_v38 = vsub.f32 1.0, %v1096_v19  ;;  %v1066_v1 = vmul.f32 %v2725_v51, %v983_v57  ;;  %v3855_v37 = vpop.xlane.xlu1 %991  ;;  %vm1071_vm1 = vweird.f32 %v2725_v51 }
 0x181   : > { %v2727_v53 = vpop.eup %2726  ;;  %2730 = vrcp.f32 %v3855_v37  ;;  %v3875_v11 = vor.u32 1.1754944e-38, %v1151_v45  ;;  %vm1072_vm5 = vmor %vm1070_vm12, %vm1071_vm1  ;;  %vm3888_vm6 = vcmp.eq.f32.partialorder %v1149_v16, 8.507059e+37  ;;  %vm1115_vm12 = vweird.f32 %v3855_v37 }
 0x182   : > { %v1036_v22 = vmul.f32 %v2727_v53, %v977_v62  ;;  %v1098_v25 = vmul.f32 %v2723_v43, %v1097_v38  ;;  %v3858_v23 = vpop.xlane.xlu2 %985  ;;  %v1067_v27 = vsub.f32 1.0, %v1066_v1  ;;  %vm1041_vm3 = vweird.f32 %v2727_v53 }
 0x183   : > { %2732 = vrcp.f32 %v3858_v23  ;;  %v1089_v30 = vand.u32 2147483647, %v3858_v23  ;;  %v1091_v35 = vand.u32 2147483648, %v3858_v23  ;;  %vm1042_vm7 = vmor %vm1040_vm13, %vm1041_vm3  ;;  %vm1085_vm8 = vweird.f32 %v3858_v23 }
 0x184   : > { %v1037_v49 = vsub.f32 1.0, %v1036_v22  ;;  %v1099_v60 = vadd.f32 %v2723_v43, %v1098_v25  ;;  %v1068_v17 = vmul.f32 %v2725_v51, %v1067_v27  ;;  %v1121_v22 = vand.u32 2147483648, %v3855_v37 }
 0x185   : > { %v3871_v26 = vpop.eup %2728  ;;  %vm3928_vm14 = vcmp.eq.f32.partialorder %v1089_v30, 8.507059e+37 }
 0x186   : > { %v1038_v20 = vmul.f32 %v2727_v53, %v1037_v49  ;;  %v1103_v14 = vsel %vm1102_vm2, %v2723_v43, %v1099_v60  ;;  %v1141_v29 = vmul.f32 %v3871_v26, %v3848_v47  ;;  %v1069_v54 = vadd.f32 %v2725_v51, %v1068_v17  ;;  %v3892_v45 = vpop.xlane.xlu0 %1006 }
 0x187   : > { %v1108_v19 = vsel %vm3850_vm11, %v1107_v4, %v1103_v14  ;;  %v3884_v24 = vpop.eup %2730  ;;  %v1119_v43 = vand.u32 2147483647, %v3855_v37  ;;  %vm1146_vm9 = vweird.f32 %v3871_v26  ;;  %2734 = vrcp.f32 %v3892_v45 }
 0x188   : > { %v1039_v9 = vadd.f32 %v2727_v53, %v1038_v20  ;;  %v1109_v38 = vmul.f32 0.1, %v1108_v19  ;;  %v1142_v1 = vsub.f32 1.0, %v1141_v29  ;;  %v1073_v4 = vsel %vm1072_vm5, %v2725_v51, %v1069_v54  ;;  %vm1147_vm13 = vmor %vm1145_vm4, %vm1146_vm9 }
 0x189   : > { %v2733_v32 = vpop.eup %2732  ;;  %v1111_v57 = vmul.f32 %v3884_v24, %v3855_v37  ;;  %v1078_v25 = vsel %vm3861_vm15, %v1077_v5, %v1073_v4  ;;  %vm1116_vm10 = vweird.f32 %v3884_v24  ;;  %v1122_v47 = vor.u32 1.1754944e-38, %v1121_v22 }
 0x18a   : > { %v1043_v27 = vsel %vm1042_vm7, %v2727_v53, %v1039_v9  ;;  %v1270_v49 = vmul.f32 %v3572_v8, %v1109_v38  ;;  %v1271_v51 = vmul.f32 %v3577_v63, %v1109_v38  ;;  %v3905_v60 = vpop.xlane.xlu2 %994  ;;  %v1079_v62 = vmul.f32 0.1, %v1078_v25  ;;  %v3913_v8 = vpop.xlane.xlu1 %1000  ;;  %vm1117_vm15 = vmor %vm1115_vm12, %vm1116_vm10 }
 0x18b   : > { %v1048_v16 = vsel %vm3866_vm0, %v1047_v40, %v1043_v27  ;;  %v1081_v17 = vmul.f32 %v2733_v32, %v3858_v23  ;;  %v1112_v14 = vsub.f32 1.0, %v1111_v57  ;;  %v1143_v55 = vmul.f32 %v3871_v26, %v1142_v1 }
 0x18c   : > { %v1049_v20 = vmul.f32 0.1, %v1048_v16  ;;  %1302 = vst [vmem:[#allocation2 + $0xe8] sm:$0xff] %v1270_v49  ;;  %2736 = vrcp.f32 %v3905_v60  ;;  %v1266_v63 = vmul.f32 %v3583_v41, %v1079_v62  ;;  %v1267_v53 = vmul.f32 %v3605_v56, %v1079_v62 }
 0x18d   : > { %1303 = vst [vmem:[#allocation2 + $0xb8] sm:$0xff] %v1271_v51  ;;  %v1082_v5 = vsub.f32 1.0, %v1081_v17  ;;  %v1113_v29 = vmul.f32 %v3884_v24, %v1112_v14  ;;  %v1144_v54 = vadd.f32 %v3871_v26, %v1143_v55  ;;  %vm1086_vm11 = vweird.f32 %v2733_v32  ;;  %v3934_v9 = vpop.eup %2734 }
 0x18e   : > { %v1262_v21 = vmul.f32 %v3641_v44, %v1049_v20  ;;  %v1263_v40 = vmul.f32 %v3646_v0, %v1049_v20  ;;  %1298 = vst [vmem:[#allocation2 + $0x30] sm:$0xff] %v1266_v63  ;;  %2738 = vrcp.f32 %v3913_v8  ;;  %v1092_v56 = vor.u32 1.1754944e-38, %v1091_v35  ;;  %vm1087_vm1 = vmor %vm1085_vm8, %vm1086_vm11 }
 0x18f   : > { %v1083_v19 = vmul.f32 %v2733_v32, %v1082_v5  ;;  %1299 = vst [vmem:[#allocation2 + $0x48] sm:$0xff] %v1267_v53  ;;  %v1114_v44 = vadd.f32 %v3884_v24, %v1113_v29  ;;  %v1148_v0 = vsel %vm1147_vm13, %v3871_v26, %v1144_v54  ;;  %vm1120_vm0 = vcmp.eq.f32.partialorder %v1119_v43, 8.507059e+37 }
 0x190   : > { %1294 = vst [vmem:[#allocation2 + $0xd8] sm:$0xff] %v1262_v21  ;;  %v1153_v30 = vsel %vm3888_vm6, %v3875_v11, %v1148_v0  ;;  %vm1130_vm2 = vweird.f32 %v3905_v60  ;;  %v1134_v1 = vand.u32 2147483647, %v3905_v60  ;;  %v1136_v46 = vand.u32 2147483648, %v3905_v60 }
 0x191   : > { %v1084_v37 = vadd.f32 %v2733_v32, %v1083_v19  ;;  %1295 = vst [vmem:[#allocation2 + $0x18] sm:$0xff] %v1263_v40  ;;  %v1118_v26 = vsel %vm1117_vm15, %v3884_v24, %v1114_v44  ;;  %v1154_v35 = vmul.f32 0.1, %v1153_v30  ;;  %vm1160_vm3 = vweird.f32 %v3913_v8 }
 0x192   : > { %v2737_v38 = vpop.eup %2736  ;;  %v1123_v43 = vsel %vm1120_vm0, %v1122_v47, %v1118_v26  ;;  %v3959_v17 = vpop.xlane.xlu2 %1003  ;;  %v1166_v63 = vand.u32 2147483648, %v3913_v8  ;;  %vm1191_vm5 = vweird.f32 %v3934_v9  ;;  %v1196_v5 = vand.u32 2147483648, %v3892_v45 }
 0x193   : > { %v1088_v4 = vsel %vm1087_vm1, %v2733_v32, %v1084_v37  ;;  %v1126_v57 = vmul.f32 %v2737_v38, %v3905_v60  ;;  %v1124_v22 = vmul.f32 0.1, %v1123_v43  ;;  %v1276_v23 = vmul.f32 %v3652_v18, %v1154_v35 }
 0x194   : > { %v1093_v11 = vsel %vm3928_vm14, %v1092_v56, %v1088_v4  ;;  %v1277_v25 = vmul.f32 %v3655_v48, %v1154_v35  ;;  %v2739_v24 = vpop.eup %2738  ;;  %v1186_v32 = vmul.f32 %v3934_v9, %v3892_v45  ;;  %vm1131_vm4 = vweird.f32 %v2737_v38 }
 0x195   : > { %v1094_v27 = vmul.f32 0.1, %v1093_v11  ;;  %v1127_v49 = vsub.f32 1.0, %v1126_v57  ;;  %v1272_v51 = vmul.f32 %v3701_v59, %v1124_v22  ;;  %v1273_v62 = vmul.f32 %v3714_v28, %v1124_v22  ;;  %1308 = vst [vmem:[#allocation2 + $0x38] sm:$0xff] %v1276_v23  ;;  %vm1132_vm6 = vmor %vm1130_vm2, %vm1131_vm4 }
 0x196   : > { %v1156_v16 = vmul.f32 %v2739_v24, %v3913_v8  ;;  %1309 = vst [vmem:[#allocation2 + $0x58] sm:$0xff] %v1277_v25  ;;  %v1187_v14 = vsub.f32 1.0, %v1186_v32  ;;  %v1194_v59 = vand.u32 2147483647, %v3892_v45  ;;  %2740 = vrcp.f32 %v3959_v17 }
 0x197   : > { %v1268_v18 = vmul.f32 %v3454_v52, %v1094_v27  ;;  %v1269_v48 = vmul.f32 %v3497_v42, %v1094_v27  ;;  %v1128_v20 = vmul.f32 %v2737_v38, %v1127_v49  ;;  %1304 = vst [vmem:[#allocation2 + $0x60] sm:$0xff] %v1272_v51  ;;  %v3969_v52 = vpop.xlane.xlu1 %1009  ;;  %v1137_v42 = vor.u32 1.1754944e-38, %v1136_v46 }
 0x198   : > { %v1157_v55 = vsub.f32 1.0, %v1156_v16  ;;  %v1188_v53 = vmul.f32 %v3934_v9, %v1187_v14  ;;  %vm1161_vm7 = vweird.f32 %v2739_v24  ;;  %v1164_v40 = vand.u32 2147483647, %v3913_v8  ;;  %1305 = vst [vmem:[#allocation2 + $0xf0] sm:$0xff] %v1273_v62 }
 0x199   : > { %1300 = vst [vmem:[#allocation2 + $0x80] sm:$0xff] %v1268_v18  ;;  %v1129_v28 = vadd.f32 %v2737_v38, %v1128_v20  ;;  %vm1135_vm8 = vcmp.eq.f32.partialorder %v1134_v1, 8.507059e+37  ;;  %vm1190_vm9 = vweird.f32 %v3892_v45  ;;  %v1197_v56 = vor.u32 1.1754944e-38, %v1196_v5  ;;  %vm1162_vm11 = vmor %vm1160_vm3, %vm1161_vm7  ;;  %v3983_v45 = vpop.xlane.xlu0 %1015 }
 0x19a   : > { %1301 = vst [vmem:[#allocation2 + $0x88] sm:$0xff] %v1269_v48  ;;  %v1158_v21 = vmul.f32 %v2739_v24, %v1157_v55  ;;  %v1189_v54 = vadd.f32 %v3934_v9, %v1188_v53  ;;  %vm1192_vm10 = vmor %vm1190_vm9, %vm1191_vm5  ;;  %2742 = vrcp.f32 %v3969_v52  ;;  %v1167_v44 = vor.u32 1.1754944e-38, %v1166_v63 }
 0x19b   : > { %v1133_v29 = vsel %vm1132_vm6, %v2737_v38, %v1129_v28  ;;  %vm1195_vm12 = vcmp.eq.f32.partialorder %v1194_v59, 8.507059e+37  ;;  %vm1165_vm13 = vcmp.eq.f32.partialorder %v1164_v40, 8.507059e+37  ;;  %2744 = vrcp.f32 %v3983_v45 }
 0x19c   : > { %v1138_v19 = vsel %vm1135_vm8, %v1137_v42, %v1133_v29  ;;  %v1159_v41 = vadd.f32 %v2739_v24, %v1158_v21  ;;  %v1193_v0 = vsel %vm1192_vm10, %v3934_v9, %v1189_v54  ;;  %v2741_v30 = vpop.eup %2740  ;;  %v3990_v9 = vpop.xlane.xlu2 %1012  ;;  %v1179_v22 = vand.u32 2147483647, %v3959_v17 }
 0x19d   : > { %v1139_v60 = vmul.f32 0.1, %v1138_v19  ;;  %v1198_v47 = vsel %vm1195_vm12, %v1197_v56, %v1193_v0  ;;  %v1171_v8 = vmul.f32 %v2741_v30, %v3959_v17  ;;  %v1181_v23 = vand.u32 2147483648, %v3959_v17 }
 0x19e   : > { %v1163_v37 = vsel %vm1162_vm11, %v2739_v24, %v1159_v41  ;;  %v1199_v1 = vmul.f32 0.1, %v1198_v47  ;;  %vm1176_vm14 = vweird.f32 %v2741_v30  ;;  %v1209_v27 = vand.u32 2147483647, %v3969_v52 }
 0x19f   : > { %v1274_v38 = vmul.f32 %v3664_v7, %v1139_v60  ;;  %v1275_v26 = vmul.f32 %v3683_v50, %v1139_v60  ;;  %v1168_v35 = vsel %vm1165_vm13, %v1167_v44, %v1163_v37  ;;  %v1172_v11 = vsub.f32 1.0, %v1171_v8  ;;  %v3998_v25 = vpop.xlane.xlu1 %1018 }
 0x1a0   : > { %v1169_v4 = vmul.f32 0.1, %v1168_v35  ;;  %v1282_v43 = vmul.f32 %v3736_v12, %v1199_v1  ;;  %v2743_v57 = vpop.eup %2742  ;;  %v1283_v50 = vmul.f32 %v3750_v13, %v1199_v1  ;;  %2746 = vrcp.f32 %v3990_v9 }
 0x1a1   : > { %1306 = vst [vmem:[#allocation2 + $0x8] sm:$0xff] %v1274_v38  ;;  %v1201_v12 = vmul.f32 %v2743_v57, %v3969_v52  ;;  %v1173_v24 = vmul.f32 %v2741_v30, %v1172_v11  ;;  %v1211_v13 = vand.u32 2147483648, %v3969_v52  ;;  %vm1175_vm15 = vweird.f32 %v3959_v17  ;;  %v2745_v49 = vpop.eup %2744 }
 0x1a2   : > { %1307 = vst [vmem:[#allocation2 + $0x78] sm:$0xff] %v1275_v26  ;;  %v1278_v46 = vmul.f32 %v3791_v2, %v1169_v4  ;;  %v1279_v7 = vmul.f32 %v3798_v33, %v1169_v4  ;;  %2748 = vrcp.f32 %v3998_v25  ;;  %vm1177_vm0 = vmor %vm1175_vm15, %vm1176_vm14  ;;  %vm1180_vm1 = vcmp.eq.f32.partialorder %v1179_v22, 8.507059e+37 }
 0x1a3   : > { %1314 = vst [vmem:[#allocation2 + $0x70] sm:$0xff] %v1282_v43  ;;  %v1202_v2 = vsub.f32 1.0, %v1201_v12  ;;  %v1174_v33 = vadd.f32 %v2741_v30, %v1173_v24  ;;  %v1182_v32 = vor.u32 1.1754944e-38, %v1181_v23  ;;  %vm1206_vm2 = vweird.f32 %v2743_v57 }
 0x1a4   : > { %1310 = vst [vmem:[#allocation2 + $0x40] sm:$0xff] %v1278_v46  ;;  %vm1205_vm3 = vweird.f32 %v3969_v52  ;;  %vm4006_vm4 = vcmp.eq.f32.partialorder %v1209_v27, 8.507059e+37  ;;  %v1231_v18 = vmul.f32 %v2745_v49, %v3983_v45  ;;  %v1212_v17 = vor.u32 1.1754944e-38, %v1211_v13 }
 0x1a5   : > { %1311 = vst [vmem:[#allocation2 + $0xc8] sm:$0xff] %v1279_v7  ;;  %v1203_v51 = vmul.f32 %v2743_v57, %v1202_v2  ;;  %v1178_v62 = vsel %vm1177_vm0, %v2741_v30, %v1174_v33  ;;  %vm1235_vm5 = vweird.f32 %v3983_v45  ;;  %vm1207_vm6 = vmor %vm1205_vm3, %vm1206_vm2  ;;  %v1239_v59 = vand.u32 2147483647, %v3983_v45 }
 0x1a6   : > { %1315 = vst [vmem:[#allocation2 + $0xc0] sm:$0xff] %v1283_v50  ;;  %v1183_v48 = vsel %vm1180_vm1, %v1182_v32, %v1178_v62  ;;  %v2747_v14 = vpop.eup %2746  ;;  %v1232_v63 = vsub.f32 1.0, %v1231_v18  ;;  %v1241_v28 = vand.u32 2147483648, %v3983_v45  ;;  %vm1236_vm7 = vweird.f32 %v2745_v49 }
 0x1a7   : > { %v1204_v20 = vadd.f32 %v2743_v57, %v1203_v51  ;;  %v1184_v55 = vmul.f32 0.1, %v1183_v48  ;;  %v1216_v5 = vmul.f32 %v2747_v14, %v3990_v9  ;;  %vm1220_vm8 = vweird.f32 %v3990_v9  ;;  %vm1237_vm10 = vmor %vm1235_vm5, %vm1236_vm7 }
 0x1a8   : > { %v2749_v52 = vpop.eup %2748  ;;  %v1233_v29 = vmul.f32 %v2745_v49, %v1232_v63  ;;  %v1224_v41 = vand.u32 2147483647, %v3990_v9  ;;  %v1242_v44 = vor.u32 1.1754944e-38, %v1241_v28  ;;  %vm1221_vm9 = vweird.f32 %v2747_v14 }
 0x1a9   : > { %v1208_v53 = vsel %vm1207_vm6, %v2743_v57, %v1204_v20  ;;  %v1280_v42 = vmul.f32 %v3824_v3, %v1184_v55  ;;  %v1281_v21 = vmul.f32 %v3826_v15, %v1184_v55  ;;  %v1217_v19 = vsub.f32 1.0, %v1216_v5  ;;  %vm1222_vm13 = vmor %vm1220_vm8, %vm1221_vm9 }
 0x1aa   : > { %v1213_v40 = vsel %vm4006_vm4, %v1212_v17, %v1208_v53  ;;  %v1246_v56 = vmul.f32 %v2749_v52, %v3998_v25  ;;  %v1234_v60 = vadd.f32 %v2745_v49, %v1233_v29  ;;  %v1226_v0 = vand.u32 2147483648, %v3990_v9 }
 0x1ab   : > { %v1214_v54 = vmul.f32 0.1, %v1213_v40  ;;  %1312 = vst [vmem:[#allocation2 + $0xe0] sm:$0xff] %v1280_v42  ;;  %v1218_v37 = vmul.f32 %v2747_v14, %v1217_v19  ;;  %vm1240_vm11 = vcmp.eq.f32.partialorder %v1239_v59, 8.507059e+37  ;;  %v1254_v38 = vand.u32 2147483647, %v3998_v25 }
 0x1ac   : > { %1313 = vst [vmem:[#allocation2 + $0x90] sm:$0xff] %v1281_v21  ;;  %v1247_v47 = vsub.f32 1.0, %v1246_v56  ;;  %v1238_v30 = vsel %vm1237_vm10, %v2745_v49, %v1234_v60  ;;  %v1256_v26 = vand.u32 2147483648, %v3998_v25  ;;  %vm1251_vm12 = vweird.f32 %v2749_v52 }
 0x1ad   : > { %v1284_v3 = vmul.f32 %v3818_v31, %v1214_v54  ;;  %v1285_v15 = vmul.f32 %v3820_v34, %v1214_v54  ;;  %v1243_v35 = vsel %vm1240_vm11, %v1242_v44, %v1238_v30  ;;  %v1219_v1 = vadd.f32 %v2747_v14, %v1218_v37 }
 0x1ae   : > { %v1248_v4 = vmul.f32 %v2749_v52, %v1247_v47  ;;  %v1244_v31 = vmul.f32 0.1, %v1243_v35  ;;  %v1227_v34 = vor.u32 1.1754944e-38, %v1226_v0  ;;  %vm1225_vm14 = vcmp.eq.f32.partialorder %v1224_v41, 8.507059e+37 }
 0x1af   : > { %1316 = vst [vmem:[#allocation2 + $0xa8] sm:$0xff] %v1284_v3  ;;  %v1223_v45 = vsel %vm1222_vm13, %v2747_v14, %v1219_v1  ;;  %vm1250_vm15 = vweird.f32 %v3998_v25  ;;  %v1257_v7 = vor.u32 1.1754944e-38, %v1256_v26  ;;  %vm1255_vm1 = vcmp.eq.f32.partialorder %v1254_v38, 8.507059e+37 }
 0x1b0   : > { %1317 = vst [vmem:[#allocation2 + $0xd0] sm:$0xff] %v1285_v15  ;;  %v1249_v8 = vadd.f32 %v2749_v52, %v1248_v4  ;;  %v1288_v43 = vmul.f32 %v3812_v10, %v1244_v31  ;;  %v1289_v57 = vmul.f32 %v3814_v39, %v1244_v31  ;;  %v1228_v46 = vsel %vm1225_vm14, %v1227_v34, %v1223_v45  ;;  %vm1252_vm0 = vmor %vm1250_vm15, %vm1251_vm12 }
 0x1b1   : > { %v1229_v50 = vmul.f32 0.1, %v1228_v46 }
 0x1b2   : > { %v1253_v11 = vsel %vm1252_vm0, %v2749_v52, %v1249_v8  ;;  %1320 = vst [vmem:[#allocation2 + $0xa0] sm:$0xff] %v1288_v43 }
 0x1b3   : > { %v1258_v22 = vsel %vm1255_vm1, %v1257_v7, %v1253_v11  ;;  %1321 = vst [vmem:[#allocation2 + $0xf8] sm:$0xff] %v1289_v57  ;;  %v1286_v9 = vmul.f32 %v3836_v36, %v1229_v50  ;;  %v1287_v23 = vmul.f32 %v3838_v6, %v1229_v50 }
 0x1b4   : > { %v1259_v12 = vmul.f32 0.1, %v1258_v22 }
 0x1b5   : > { %1318 = vst [vmem:[#allocation2 + $0x10] sm:$0xff] %v1286_v9 }
 0x1b6   : > { %v1290_v25 = vmul.f32 %v3832_v58, %v1259_v12  ;;  %v1291_v10 = vmul.f32 %v3834_v61, %v1259_v12  ;;  %1319 = vst [vmem:[#allocation2 + $0x28] sm:$0xff] %v1287_v23 }
 0x1b8   : > { %1322 = vst [vmem:[#allocation2 + $0x20] sm:$0xff] %v1290_v25 }
 0x1b9   : > { %1323 = vst [vmem:[#allocation2 + $0x98] sm:$0xff] %v1291_v10 }
 0x1ba PF: > { %v1340_v39 = vld [vmem:[%s2976_s23] sm:$0xff]  ;;  %vm1394_vm2 = vcmask 1043456   ;;  %vm1345_vm3 = vcmask 31744   ;;  %v1325_v61 = vld [vmem:[%s2981_s27 + $0x8] sm:$0xff]  ;;  %v1326_v2 = vld [vmem:[%s2981_s27 + $0x10] sm:$0xff] }
 0x1bb   : > { %1342 = vst [vmem:[#allocation1] ss:$2 sm:$0xff] %v1340_v39  ;;  %v1324_v36 = vld [vmem:[%s2981_s27] sm:$0xff]  ;;  %v1333_v27 = vld [vmem:[%s2981_s27 + $0x48] sm:$0xff]  ;;  %v1334_v13 = vld [vmem:[%s2981_s27 + $0x50] sm:$0xff] }
 0x1bc   : > { %v1332_v58 = vld [vmem:[%s2981_s27 + $0x40] sm:$0xff]  ;;  %v1327_v33 = vld [vmem:[%s2981_s27 + $0x18] sm:$0xff]  ;;  %v1329_v62 = vld [vmem:[%s2981_s27 + $0x28] sm:$0xff] }
 0x1bd   : > { %v1335_v49 = vld [vmem:[%s2981_s27 + $0x58] sm:$0xff]  ;;  %v1328_v32 = vld [vmem:[%s2981_s27 + $0x20] sm:$0xff]  ;;  %v1337_v16 = vld [vmem:[%s2981_s27 + $0x68] sm:$0xff] }
 0x1be   : > { %v1336_v51 = vld [vmem:[%s2981_s27 + $0x60] sm:$0xff]  ;;  %v1330_v18 = vld [vmem:[%s2981_s27 + $0x30] sm:$0xff]  ;;  %v1331_v20 = vld [vmem:[%s2981_s27 + $0x38] sm:$0xff] }
 0x1bf   : > { %v1338_v48 = vld [vmem:[%s2981_s27 + $0x70] sm:$0xff]  ;;  %v1339_v17 = vld [vmem:[%s2981_s27 + $0x78] sm:$0xff] }
 0x1c2   : > { %v1343_v6 = vld.sshfl [vmem:[#allocation1] sm:$0xff pattern:$0x75316420]  ;;  %v1344_v24 = vld.sshfl [vmem:[#allocation1 + $0x8] sm:$0xff pattern:$0x75316420] }
 0x1c3   : > { %2537 = vmatpush.msk.msra.mxu0 %vm1394_vm2, %v1343_v6  ;;  %2554 = vmatpush.msk.msra.mxu1 %vm1394_vm2, %v1344_v24 }
 0x1c4   : > { %2538 = vmatmul.msk.f32.vlgmr.msra.gmra.mxu0 %vm1345_vm3, %v1324_v36  ;;  %2555 = vmatmul.msk.f32.vlgmr.msra.gmra.mxu1 %vm1345_vm3, %v1324_v36 }
 0x1c5   : > { %2574 = vmatpush.msk.msra.mxu2 %vm1394_vm2, %v1343_v6  ;;  %2575 = vmatpush.msk.msra.mxu3 %vm1394_vm2, %v1344_v24 }
 0x1c6   : > { %2546 = vmatmul.msk.f32.vlgmr.msra.gmra.mxu2 %vm1345_vm3, %v1332_v58  ;;  %2563 = vmatmul.msk.f32.vlgmr.msra.gmra.mxu3 %vm1345_vm3, %v1332_v58 }
 0x1cc   : > { %2539 = vmatmul.msk.f32.gmra.mxu0 %vm1345_vm3, %v1325_v61  ;;  %2556 = vmatmul.msk.f32.gmra.mxu1 %vm1345_vm3, %v1325_v61 }
 0x1ce   : > { %2547 = vmatmul.msk.f32.gmra.mxu2 %vm1345_vm3, %v1333_v27  ;;  %2564 = vmatmul.msk.f32.gmra.mxu3 %vm1345_vm3, %v1333_v27 }
 0x1d4   : > { %2540 = vmatmul.msk.f32.gmra.mxu0 %vm1345_vm3, %v1326_v2  ;;  %2557 = vmatmul.msk.f32.gmra.mxu1 %vm1345_vm3, %v1326_v2 }
 0x1d6   : > { %2548 = vmatmul.msk.f32.gmra.mxu2 %vm1345_vm3, %v1334_v13  ;;  %2565 = vmatmul.msk.f32.gmra.mxu3 %vm1345_vm3, %v1334_v13 }
 0x1dc   : > { %2541 = vmatmul.msk.f32.gmra.mxu0 %vm1345_vm3, %v1327_v33  ;;  %2558 = vmatmul.msk.f32.gmra.mxu1 %vm1345_vm3, %v1327_v33 }
 0x1de   : > { %2549 = vmatmul.msk.f32.gmra.mxu2 %vm1345_vm3, %v1335_v49  ;;  %2566 = vmatmul.msk.f32.gmra.mxu3 %vm1345_vm3, %v1335_v49 }
 0x1e4   : > { %2542 = vmatmul.msk.f32.gmra.mxu0 %vm1345_vm3, %v1328_v32  ;;  %2559 = vmatmul.msk.f32.gmra.mxu1 %vm1345_vm3, %v1328_v32 }
 0x1e6   : > { %2550 = vmatmul.msk.f32.gmra.mxu2 %vm1345_vm3, %v1336_v51  ;;  %2567 = vmatmul.msk.f32.gmra.mxu3 %vm1345_vm3, %v1336_v51 }
 0x1ec   : > { %2543 = vmatmul.msk.f32.gmra.mxu0 %vm1345_vm3, %v1329_v62  ;;  %2560 = vmatmul.msk.f32.gmra.mxu1 %vm1345_vm3, %v1329_v62 }
 0x1ee   : > { %2551 = vmatmul.msk.f32.gmra.mxu2 %vm1345_vm3, %v1337_v16  ;;  %2568 = vmatmul.msk.f32.gmra.mxu3 %vm1345_vm3, %v1337_v16 }
 0x1f4   : > { %2544 = vmatmul.msk.f32.gmra.mxu0 %vm1345_vm3, %v1330_v18  ;;  %2561 = vmatmul.msk.f32.gmra.mxu1 %vm1345_vm3, %v1330_v18 }
 0x1f6   : > { %2552 = vmatmul.msk.f32.gmra.mxu2 %vm1345_vm3, %v1338_v48  ;;  %2569 = vmatmul.msk.f32.gmra.mxu3 %vm1345_vm3, %v1338_v48 }
 0x1fc   : > { %2545 = vmatmul.msk.f32.gmra.mxu0 %vm1345_vm3, %v1331_v20  ;;  %2562 = vmatmul.msk.f32.gmra.mxu1 %vm1345_vm3, %v1331_v20 }
 0x1fe   : > { %2553 = vmatmul.msk.f32.gmra.mxu2 %vm1345_vm3, %v1339_v17  ;;  %2570 = vmatmul.msk.f32.gmra.mxu3 %vm1345_vm3, %v1339_v17 }
 0x241   : > { %v4089_v14 = vpop.f32.mrf.mxu0  ;;  %v4091_v55 = vpop.f32.mrf.mxu1 }
 0x242   : > { %v1529_v63 = vmax.f32 %v4089_v14, %v4091_v55 }
 0x244   : > { %1530 = vmax.xlane.f32.xlu0 %v1529_v63 }
 0x249   : > { %v4095_v59 = vpop.f32.mrf.mxu0  ;;  %v4097_v28 = vpop.f32.mrf.mxu1 }
 0x24a   : > { %v1532_v53 = vmax.f32 %v4095_v59, %v4097_v28  ;;  %v4101_v5 = vpop.f32.mrf.mxu2  ;;  %v4103_v52 = vpop.f32.mrf.mxu3 }
 0x24b   : > { %v1553_v34 = vmax.f32 %v4101_v5, %v4103_v52 }
 0x24c   : > { %1533 = vmax.xlane.f32.xlu0 %v1532_v53 }
 0x251   : > { %v4105_v42 = vpop.f32.mrf.mxu0  ;;  %v4107_v21 = vpop.f32.mrf.mxu1 }
 0x252   : > { %v1535_v40 = vmax.f32 %v4105_v42, %v4107_v21  ;;  %v4111_v29 = vpop.f32.mrf.mxu2  ;;  %v4113_v54 = vpop.f32.mrf.mxu3 }
 0x253   : > { %v1556_v11 = vmax.f32 %v4111_v29, %v4113_v54 }
 0x254   : > { %1536 = vmax.xlane.f32.xlu1 %v1535_v40 }
 0x259   : > { %v4115_v19 = vpop.f32.mrf.mxu0  ;;  %v4117_v41 = vpop.f32.mrf.mxu1 }
 0x25a   : > { %v1538_v56 = vmax.f32 %v4115_v19, %v4117_v41  ;;  %v4121_v60 = vpop.f32.mrf.mxu2  ;;  %v4123_v44 = vpop.f32.mrf.mxu3 }
 0x25b   : > { %v1559_v25 = vmax.f32 %v4121_v60, %v4123_v44 }
 0x25c   : > { %1539 = vmax.xlane.f32.xlu1 %v1538_v56 }
 0x261   : > { %v4125_v0 = vpop.f32.mrf.mxu0  ;;  %v4127_v3 = vpop.f32.mrf.mxu1 }
 0x262   : > { %v1541_v15 = vmax.f32 %v4125_v0, %v4127_v3  ;;  %v4131_v37 = vpop.f32.mrf.mxu2  ;;  %v4133_v47 = vpop.f32.mrf.mxu3 }
 0x263   : > { %v1562_v50 = vmax.f32 %v4131_v37, %v4133_v47 }
 0x264   : > { %1542 = vmax.xlane.f32.xlu2 %v1541_v15 }
 0x269   : > { %v4135_v30 = vpop.f32.mrf.mxu0  ;;  %v4137_v38 = vpop.f32.mrf.mxu1 }
 0x26a   : > { %v1544_v26 = vmax.f32 %v4135_v30, %v4137_v38  ;;  %v4141_v35 = vpop.f32.mrf.mxu2  ;;  %v4143_v1 = vpop.f32.mrf.mxu3 }
 0x26b   : > { %v1565_v12 = vmax.f32 %v4141_v35, %v4143_v1 }
 0x26c   : > { %1545 = vmax.xlane.f32.xlu2 %v1544_v26 }
 0x271   : > { %v4145_v4 = vpop.f32.mrf.mxu0  ;;  %v4147_v31 = vpop.f32.mrf.mxu1 }
 0x272   : > { %v1547_v45 = vmax.f32 %v4145_v4, %v4147_v31  ;;  %v4153_v8 = vpop.f32.mrf.mxu2  ;;  %v4155_v43 = vpop.f32.mrf.mxu3 }
 0x273   : > { %v1568_v6 = vmax.f32 %v4153_v8, %v4155_v43 }
 0x274   : > { %1554 = vmax.xlane.f32.xlu2 %v1553_v34  ;;  %1548 = vmax.xlane.f32.xlu0 %v1547_v45 }
 0x279   : > { %v4157_v57 = vpop.f32.mrf.mxu0  ;;  %v4159_v46 = vpop.f32.mrf.mxu1 }
 0x27a   : > { %v1550_v7 = vmax.f32 %v4157_v57, %v4159_v46  ;;  %v4167_v22 = vpop.f32.mrf.mxu2  ;;  %v4169_v9 = vpop.f32.mrf.mxu3 }
 0x27b   : > { %v1571_v23 = vmax.f32 %v4167_v22, %v4169_v9 }
 0x27c   : > { %1563 = vmax.xlane.f32.xlu2 %v1562_v50  ;;  %1557 = vmax.xlane.f32.xlu0 %v1556_v11 }
 0x27d   : > { %1551 = vmax.xlane.f32.xlu1 %v1550_v7 }
 0x282   : > { %v4177_v10 = vpop.f32.mrf.mxu2  ;;  %v4179_v39 = vpop.f32.mrf.mxu3 }
 0x283   : > { %v1574_v36 = vmax.f32 %v4177_v10, %v4179_v39 }
 0x284   : > { %1572 = vmax.xlane.f32.xlu2 %v1571_v23  ;;  %1566 = vmax.xlane.f32.xlu0 %v1565_v12 }
 0x285   : > { %1560 = vmax.xlane.f32.xlu1 %v1559_v25 }
 0x28c   : > { %1575 = vmax.xlane.f32.xlu0 %v1574_v36 }
 0x28d   : > { %1569 = vmax.xlane.f32.xlu1 %v1568_v6 }
 0x2b7   : > { %v1531_v24 = vpop.xlane.xlu0 %1530 }
 0x2b8   : > { %v1577_v58 = vsub.f32 1.0, %v1531_v24  ;;  %v1849_v53 = vsub.f32 %v4089_v14, %v1531_v24  ;;  %v1850_v15 = vsub.f32 %v4091_v55, %v1531_v24 }
 0x2ba   : > { %v1593_v61 = vadd.f32 1e-05, %v1577_v58 }
 0x2bc   : > { %2750 = vrcp.f32 %v1593_v61  ;;  %v1620_v51 = vand.u32 2147483648, %v1593_v61  ;;  %v1618_v16 = vand.u32 2147483647, %v1593_v61  ;;  %vm1614_vm5 = vweird.f32 %v1593_v61 }
 0x2be   : > { %v1621_v63 = vor.u32 1.1754944e-38, %v1620_v51  ;;  %vm1619_vm7 = vcmp.eq.f32.partialorder %v1618_v16, 8.507059e+37 }
 0x2bf   : > { %v1534_v27 = vpop.xlane.xlu0 %1533 }
 0x2c0   : > { %v1578_v2 = vsub.f32 1.0, %v1534_v27 }
 0x2c2   : > { %v2751_v13 = vpop.eup %2750  ;;  %v1594_v33 = vadd.f32 1e-05, %v1578_v2 }
 0x2c3   : > { %v1610_v49 = vmul.f32 %v2751_v13, %v1593_v61  ;;  %vm1615_vm4 = vweird.f32 %v2751_v13  ;;  %v1851_v61 = vsub.f32 %v4095_v59, %v1534_v27 }
 0x2c4   : > { %2752 = vrcp.f32 %v1594_v33  ;;  %vm1616_vm6 = vmor %vm1614_vm5, %vm1615_vm4  ;;  %v1633_v11 = vand.u32 2147483647, %v1594_v33  ;;  %v1635_v23 = vand.u32 2147483648, %v1594_v33  ;;  %vm1629_vm9 = vweird.f32 %v1594_v33 }
 0x2c5   : > { %v1611_v32 = vsub.f32 1.0, %v1610_v49  ;;  %v1852_v49 = vsub.f32 %v4097_v28, %v1534_v27 }
 0x2c6   : > { %v1636_v24 = vor.u32 1.1754944e-38, %v1635_v23  ;;  %vm1634_vm11 = vcmp.eq.f32.partialorder %v1633_v11, 8.507059e+37 }
 0x2c7   : > { %v1612_v62 = vmul.f32 %v2751_v13, %v1611_v32  ;;  %v4185_v18 = vpop.xlane.xlu1 %1536 }
 0x2c8   : > { %v1579_v48 = vsub.f32 1.0, %v4185_v18  ;;  %v1854_v23 = vsub.f32 %v4107_v21, %v4185_v18 }
 0x2c9   : > { %v1613_v20 = vadd.f32 %v2751_v13, %v1612_v62 }
 0x2ca   : > { %v2753_v17 = vpop.eup %2752  ;;  %v1595_v40 = vadd.f32 1e-05, %v1579_v48 }
 0x2cb   : > { %v1617_v56 = vsel %vm1616_vm6, %v2751_v13, %v1613_v20  ;;  %v1625_v26 = vmul.f32 %v2753_v17, %v1594_v33  ;;  %vm1630_vm8 = vweird.f32 %v2753_v17 }
 0x2cc   : > { %v1622_v34 = vsel %vm1619_vm7, %v1621_v63, %v1617_v56  ;;  %2754 = vrcp.f32 %v1595_v40  ;;  %vm1631_vm10 = vmor %vm1629_vm9, %vm1630_vm8  ;;  %v1648_v20 = vand.u32 2147483647, %v1595_v40  ;;  %v1650_v63 = vand.u32 2147483648, %v1595_v40 }
 0x2cd   : > { %v1881_v45 = vmul.f32 %v1849_v53, %v1622_v34  ;;  %v1882_v7 = vmul.f32 %v1850_v15, %v1622_v34  ;;  %v1626_v50 = vsub.f32 1.0, %v1625_v26  ;;  %vm1644_vm13 = vweird.f32 %v1595_v40 }
 0x2ce   : > { %vm1649_vm15 = vcmp.eq.f32.partialorder %v1648_v20, 8.507059e+37 }
 0x2cf   : > { %v1913_v12 = vmul.f32 1.442695, %v1881_v45  ;;  %v1915_v25 = vmul.f32 1.442695, %v1882_v7  ;;  %v1627_v36 = vmul.f32 %v2753_v17, %v1626_v50  ;;  %v4190_v6 = vpop.xlane.xlu1 %1539  ;;  %v1651_v45 = vor.u32 1.1754944e-38, %v1650_v63 }
 0x2d0   : > { %v1580_v14 = vsub.f32 1.0, %v4190_v6  ;;  %v1853_v7 = vsub.f32 %v4105_v42, %v4185_v18 }
 0x2d1   : > { %2756 = vpow2.f32 %v1913_v12  ;;  %v1628_v58 = vadd.f32 %v2753_v17, %v1627_v36 }
 0x2d2   : > { %v2755_v55 = vpop.eup %2754  ;;  %2758 = vpow2.f32 %v1915_v25  ;;  %v1596_v2 = vadd.f32 1e-05, %v1580_v14 }
 0x2d3   : > { %v1632_v13 = vsel %vm1631_vm10, %v2753_v17, %v1628_v58  ;;  %v1640_v32 = vmul.f32 %v2755_v55, %v1595_v40  ;;  %vm1645_vm12 = vweird.f32 %v2755_v55 }
 0x2d4   : > { %v1637_v51 = vsel %vm1634_vm11, %v1636_v24, %v1632_v13  ;;  %2760 = vrcp.f32 %v1596_v2  ;;  %vm1646_vm14 = vmor %vm1644_vm13, %vm1645_vm12  ;;  %v1665_v58 = vand.u32 2147483648, %v1596_v2  ;;  %v1663_v21 = vand.u32 2147483647, %v1596_v2 }
 0x2d5   : > { %v1883_v62 = vmul.f32 %v1851_v61, %v1637_v51  ;;  %v1884_v16 = vmul.f32 %v1852_v49, %v1637_v51  ;;  %v1641_v48 = vsub.f32 1.0, %v1640_v32  ;;  %vm1659_vm1 = vweird.f32 %v1596_v2 }
 0x2d6   : > { %v1666_v20 = vor.u32 1.1754944e-38, %v1665_v58  ;;  %vm1664_vm3 = vcmp.eq.f32.partialorder %v1663_v21, 8.507059e+37 }
 0x2d7   : > { %v4195_v33 = vpop.eup %2756  ;;  %v1917_v53 = vmul.f32 1.442695, %v1883_v62  ;;  %v1919_v56 = vmul.f32 1.442695, %v1884_v16  ;;  %v1642_v15 = vmul.f32 %v2755_v55, %v1641_v48  ;;  %v4197_v59 = vpop.xlane.xlu2 %1542 }
 0x2d8   : > { %v4199_v17 = vpop.eup %2758  ;;  %v1581_v28 = vsub.f32 1.0, %v4197_v59  ;;  %v1858_v21 = vsub.f32 %v4127_v3, %v4197_v59 }
 0x2d9   : > { %2762 = vpow2.f32 %v1917_v53  ;;  %v1643_v27 = vadd.f32 %v2755_v55, %v1642_v15  ;;  %v1977_v26 = vadd.f32 %v4199_v17, %v4195_v33  ;;  %v1856_v15 = vsub.f32 %v4117_v41, %v4190_v6 }
 0x2da   : > { %v2761_v34 = vpop.eup %2760  ;;  %2764 = vpow2.f32 %v1919_v56  ;;  %v4206_v50 = vadd.f32 1e-05, %v1581_v28 }
 0x2db   : > { %v1647_v11 = vsel %vm1646_vm14, %v2755_v55, %v1643_v27  ;;  %v1655_v12 = vmul.f32 %v2761_v34, %v1596_v2  ;;  %1978 = vadd.xlane.f32.xlu1 %v1977_v26  ;;  %vm1660_vm0 = vweird.f32 %v2761_v34  ;;  %v1855_v2 = vsub.f32 %v4115_v19, %v4190_v6 }
 0x2dc   : > { %v1652_v40 = vsel %vm1649_vm15, %v1651_v45, %v1647_v11  ;;  %2766 = vrcp.f32 %v4206_v50  ;;  %vm1661_vm2 = vmor %vm1659_vm1, %vm1660_vm0  ;;  %v1680_v26 = vand.u32 2147483648, %v4206_v50  ;;  %v1678_v19 = vand.u32 2147483647, %v4206_v50 }
 0x2dd   : > { %v1885_v25 = vmul.f32 %v1853_v7, %v1652_v40  ;;  %v1886_v36 = vmul.f32 %v1854_v23, %v1652_v40  ;;  %v1656_v14 = vsub.f32 1.0, %v1655_v12  ;;  %vm1674_vm5 = vweird.f32 %v4206_v50 }
 0x2de   : > { %vm1679_vm7 = vcmp.eq.f32.partialorder %v1678_v19, 8.507059e+37 }
 0x2df   : > { %v4211_v24 = vpop.eup %2762  ;;  %v1921_v61 = vmul.f32 1.442695, %v1885_v25  ;;  %v1923_v42 = vmul.f32 1.442695, %v1886_v36  ;;  %v1657_v13 = vmul.f32 %v2761_v34, %v1656_v14  ;;  %v4213_v55 = vpop.xlane.xlu2 %1545 }
 0x2e0   : > { %v4215_v49 = vpop.eup %2764  ;;  %v1582_v18 = vsub.f32 1.0, %v4213_v55 }
 0x2e1   : > { %2768 = vpow2.f32 %v1921_v61  ;;  %v1658_v32 = vadd.f32 %v2761_v34, %v1657_v13  ;;  %v1980_v51 = vadd.f32 %v4215_v49, %v4211_v24  ;;  %v1681_v13 = vor.u32 1.1754944e-38, %v1680_v26 }
 0x2e2   : > { %v2767_v62 = vpop.eup %2766  ;;  %2770 = vpow2.f32 %v1923_v42  ;;  %v4220_v16 = vadd.f32 1e-05, %v1582_v18 }
 0x2e3   : > { %v1662_v48 = vsel %vm1661_vm2, %v2761_v34, %v1658_v32  ;;  %v1670_v63 = vmul.f32 %v2767_v62, %v4206_v50  ;;  %1981 = vadd.xlane.f32.xlu2 %v1980_v51  ;;  %vm1675_vm4 = vweird.f32 %v2767_v62  ;;  %v1857_v34 = vsub.f32 %v4125_v0, %v4197_v59 }
 0x2e4   : > { %2772 = vrcp.f32 %v4220_v16  ;;  %v1667_v53 = vsel %vm1664_vm3, %v1666_v20, %v1662_v48  ;;  %v1693_v25 = vand.u32 2147483647, %v4220_v16  ;;  %vm1676_vm6 = vmor %vm1674_vm5, %vm1675_vm4  ;;  %v1695_v36 = vand.u32 2147483648, %v4220_v16 }
 0x2e5   : > { %v1671_v56 = vsub.f32 1.0, %v1670_v63  ;;  %v1887_v23 = vmul.f32 %v1855_v2, %v1667_v53  ;;  %v1888_v12 = vmul.f32 %v1856_v15, %v1667_v53  ;;  %v1859_v32 = vsub.f32 %v4135_v30, %v4213_v55 }
 0x2e6   : > { %vm1689_vm8 = vweird.f32 %v4220_v16  ;;  %vm4261_vm9 = vcmp.eq.f32.partialorder %v1693_v25, 8.507059e+37  ;;  %v1696_v59 = vor.u32 1.1754944e-38, %v1695_v36 }
 0x2e7   : > { %v4228_v28 = vpop.eup %2768  ;;  %v1672_v27 = vmul.f32 %v2767_v62, %v1671_v56  ;;  %v4233_v45 = vpop.xlane.xlu2 %1554  ;;  %v1925_v18 = vmul.f32 1.442695, %v1887_v23  ;;  %v1927_v20 = vmul.f32 1.442695, %v1888_v12 }
 0x2e8   : > { %v4235_v7 = vpop.xlane.xlu0 %1548  ;;  %v4237_v11 = vpop.eup %2770  ;;  %v1585_v41 = vsub.f32 1.0, %v4233_v45  ;;  %v1865_v30 = vsub.f32 %v4101_v5, %v4233_v45  ;;  %v1866_v53 = vsub.f32 %v4103_v52, %v4233_v45 }
 0x2e9   : > { %v1583_v6 = vsub.f32 1.0, %v4235_v7  ;;  %v1673_v40 = vadd.f32 %v2767_v62, %v1672_v27  ;;  %v1983_v61 = vadd.f32 %v4237_v11, %v4228_v28  ;;  %v1861_v23 = vsub.f32 %v4145_v4, %v4235_v7 }
 0x2ea   : > { %v2773_v0 = vpop.eup %2772  ;;  %v4246_v14 = vadd.f32 1e-05, %v1585_v41  ;;  %v5098_v4 = vsub.f32 %v4147_v31, %v4235_v7 }
 0x2eb   : > { %v4248_v58 = vadd.f32 1e-05, %v1583_v6  ;;  %v1677_v42 = vsel %vm1676_vm6, %v2767_v62, %v1673_v40  ;;  %v1685_v50 = vmul.f32 %v2773_v0, %v4220_v16  ;;  %1984 = vadd.xlane.f32.xlu0 %v1983_v61  ;;  %v1860_v62 = vsub.f32 %v4137_v38, %v4213_v55 }
 0x2ec   : > { %2774 = vrcp.f32 %v4246_v14  ;;  %v1682_v51 = vsel %vm1679_vm7, %v1681_v13, %v1677_v42  ;;  %vm1690_vm10 = vweird.f32 %v2773_v0  ;;  %v1738_v55 = vand.u32 2147483647, %v4246_v14 }
 0x2ed   : > { %v1686_v48 = vsub.f32 1.0, %v1685_v50  ;;  %2776 = vrcp.f32 %v4248_v58  ;;  %v1889_v38 = vmul.f32 %v1857_v34, %v1682_v51  ;;  %v1890_v27 = vmul.f32 %v1858_v21, %v1682_v51  ;;  %vm4282_vm11 = vmor %vm1689_vm8, %vm1690_vm10 }
 0x2ee   : > { %2778 = vpow2.f32 %v1925_v18  ;;  %v1740_v34 = vand.u32 2147483648, %v4246_v14  ;;  %v1708_v61 = vand.u32 2147483647, %v4248_v58  ;;  %vm1734_vm12 = vweird.f32 %v4246_v14 }
 0x2ef   : > { %v1687_v63 = vmul.f32 %v2773_v0, %v1686_v48  ;;  %v4270_v56 = vpop.xlane.xlu2 %1563  ;;  %2780 = vpow2.f32 %v1927_v20  ;;  %v1929_v13 = vmul.f32 1.442695, %v1889_v38  ;;  %vm4298_vm13 = vcmp.eq.f32.partialorder %v1738_v55, 8.507059e+37 }
 0x2f0   : > { %v4272_v2 = vpop.xlane.xlu0 %1557  ;;  %v1588_v15 = vsub.f32 1.0, %v4270_v56  ;;  %v1931_v50 = vmul.f32 1.442695, %v1890_v27  ;;  %vm1704_vm14 = vweird.f32 %v4248_v58  ;;  %v1741_v20 = vor.u32 1.1754944e-38, %v1740_v34  ;;  %v4315_v27 = vpop.xlane.xlu1 %1551 }
 0x2f1   : > { %v1688_v26 = vadd.f32 %v2773_v0, %v1687_v63  ;;  %v1586_v19 = vsub.f32 1.0, %v4272_v2  ;;  %v1710_v63 = vand.u32 2147483648, %v4248_v58  ;;  %vm4311_vm0 = vcmp.eq.f32.partialorder %v1708_v61, 8.507059e+37 }
 0x2f2   : > { %v2775_v41 = vpop.eup %2774  ;;  %v4289_v40 = vadd.f32 1e-05, %v1588_v15 }
 0x2f3   : > { %v1692_v25 = vsel %vm4282_vm11, %v2773_v0, %v1688_v26  ;;  %v1730_v36 = vmul.f32 %v2775_v41, %v4246_v14  ;;  %v4295_v42 = vadd.f32 1e-05, %v1586_v19  ;;  %v2777_v16 = vpop.eup %2776  ;;  %vm1735_vm15 = vweird.f32 %v2775_v41 }
 0x2f4   : > { %2782 = vrcp.f32 %v4289_v40  ;;  %v1700_v0 = vmul.f32 %v2777_v16, %v4248_v58  ;;  %v4305_v51 = vpop.eup %2778  ;;  %v1697_v48 = vsel %vm4261_vm9, %v1696_v59, %v1692_v25  ;;  %v1783_v3 = vand.u32 2147483647, %v4289_v40  ;;  %vm1736_vm2 = vmor %vm1734_vm12, %vm1735_vm15 }
 0x2f5   : > { %v1731_v18 = vsub.f32 1.0, %v1730_v36  ;;  %2784 = vrcp.f32 %v4295_v42  ;;  %v4317_v26 = vpop.eup %2780  ;;  %v1891_v6 = vmul.f32 %v1859_v32, %v1697_v48  ;;  %vm1705_vm1 = vweird.f32 %v2777_v16 }
 0x2f6   : > { %v1701_v55 = vsub.f32 1.0, %v1700_v0  ;;  %2786 = vpow2.f32 %v1929_v13  ;;  %v1892_v61 = vmul.f32 %v1860_v62, %v1697_v48  ;;  %v1711_v13 = vor.u32 1.1754944e-38, %v1710_v63  ;;  %vm1706_vm3 = vmor %vm1704_vm14, %vm1705_vm1 }
 0x2f7   : > { %v1732_v38 = vmul.f32 %v2775_v41, %v1731_v18  ;;  %2788 = vpow2.f32 %v1931_v50  ;;  %v1584_v18 = vsub.f32 1.0, %v4315_v27  ;;  %v1785_v19 = vand.u32 2147483648, %v4289_v40 }
 0x2f8   : > { %v1702_v25 = vmul.f32 %v2777_v16, %v1701_v55  ;;  %vm1779_vm4 = vweird.f32 %v4289_v40  ;;  %v1867_v14 = vsub.f32 %v4111_v29, %v4272_v2  ;;  %vm4341_vm5 = vcmp.eq.f32.partialorder %v1783_v3, 8.507059e+37 }
 0x2f9   : > { %v1733_v34 = vadd.f32 %v2775_v41, %v1732_v38  ;;  %v4339_v62 = vadd.f32 1e-05, %v1584_v18  ;;  %v1935_v21 = vmul.f32 1.442695, %v1892_v61  ;;  %vm1749_vm6 = vweird.f32 %v4295_v42 }
 0x2fa   : > { %v2783_v36 = vpop.eup %2782  ;;  %v1703_v12 = vadd.f32 %v2777_v16, %v1702_v25  ;;  %v1753_v3 = vand.u32 2147483647, %v4295_v42  ;;  %v1755_v15 = vand.u32 2147483648, %v4295_v42 }
 0x2fb   : > { %v1737_v0 = vsel %vm1736_vm2, %v2775_v41, %v1733_v34  ;;  %v1775_v59 = vmul.f32 %v2783_v36, %v4289_v40  ;;  %v4330_v32 = vpop.eup %2784  ;;  %v1933_v41 = vmul.f32 1.442695, %v1891_v6  ;;  %2790 = vrcp.f32 %v4339_v62  ;;  %v4362_v34 = vpop.xlane.xlu2 %1572 }
 0x2fc   : > { %v1742_v38 = vsel %vm4298_vm13, %v1741_v20, %v1737_v0  ;;  %v1707_v50 = vsel %vm1706_vm3, %v2777_v16, %v1703_v12  ;;  %v4345_v55 = vpop.eup %2786  ;;  %v1745_v20 = vmul.f32 %v4330_v32, %v4295_v42  ;;  %v1786_v16 = vor.u32 1.1754944e-38, %v1785_v19  ;;  %v4385_v40 = vpop.xlane.xlu0 %1566 }
 0x2fd   : > { %v1776_v48 = vsub.f32 1.0, %v1775_v59  ;;  %v1897_v58 = vmul.f32 %v1865_v30, %v1742_v38  ;;  %v1712_v12 = vsel %vm4311_vm0, %v1711_v13, %v1707_v50  ;;  %v4357_v59 = vpop.eup %2788  ;;  %v1898_v5 = vmul.f32 %v1866_v53, %v1742_v38 }
 0x2fe   : > { %vm1780_vm7 = vweird.f32 %v2783_v36  ;;  %v1746_v6 = vsub.f32 1.0, %v1745_v20  ;;  %2792 = vpow2.f32 %v1933_v41  ;;  %vm1750_vm8 = vweird.f32 %v4330_v32 }
 0x2ff   : > { %v1777_v30 = vmul.f32 %v2783_v36, %v1776_v48  ;;  %v1868_v19 = vsub.f32 %v4113_v54, %v4272_v2  ;;  %v1945_v25 = vmul.f32 1.442695, %v1897_v58  ;;  %v1893_v61 = vmul.f32 %v1861_v23, %v1712_v12  ;;  %vm1781_vm9 = vmor %vm1779_vm4, %vm1780_vm7 }
 0x300   : > { %v1747_v45 = vmul.f32 %v4330_v32, %v1746_v6  ;;  %2794 = vpow2.f32 %v1935_v21  ;;  %vm4374_vm10 = vcmp.eq.f32.partialorder %v1753_v3, 8.507059e+37  ;;  %v1986_v13 = vadd.f32 %v4317_v26, %v4305_v51  ;;  %vm4393_vm11 = vmor %vm1749_vm6, %vm1750_vm8 }
 0x301   : > { %v1778_v52 = vadd.f32 %v2783_v36, %v1777_v30  ;;  %v1591_v54 = vsub.f32 1.0, %v4362_v34  ;;  %v2791_v18 = vpop.eup %2790  ;;  %v1947_v0 = vmul.f32 1.442695, %v1898_v5  ;;  %v1894_v23 = vmul.f32 %v5098_v4, %v1712_v12 }
 0x302   : > { %v1748_v41 = vadd.f32 %v4330_v32, %v1747_v45  ;;  %v1756_v21 = vor.u32 1.1754944e-38, %v1755_v15  ;;  %v1715_v31 = vmul.f32 %v2791_v18, %v4339_v62  ;;  %1987 = vadd.xlane.f32.xlu1 %v1986_v13  ;;  %2796 = vpow2.f32 %v1945_v25 }
 0x303   : > { %v1782_v38 = vsel %vm1781_vm9, %v2783_v36, %v1778_v52  ;;  %v4398_v7 = vadd.f32 1e-05, %v1591_v54  ;;  %v1937_v36 = vmul.f32 1.442695, %v1893_v61  ;;  %v1723_v58 = vand.u32 2147483647, %v4339_v62  ;;  %v4421_v52 = vpop.xlane.xlu1 %1560 }
 0x304   : > { %v1787_v50 = vsel %vm4341_vm5, %v1786_v16, %v1782_v38  ;;  %v1752_v63 = vsel %vm4393_vm11, %v4330_v32, %v1748_v41  ;;  %v4404_v20 = vpop.eup %2792  ;;  %v5101_v42 = vsub.f32 %v4131_v37, %v4270_v56  ;;  %v1716_v16 = vsub.f32 1.0, %v1715_v31 }
 0x305   : > { %v1725_v3 = vand.u32 2147483648, %v4339_v62  ;;  %2798 = vrcp.f32 %v4398_v7  ;;  %v1939_v5 = vmul.f32 1.442695, %v1894_v23  ;;  %v1757_v30 = vsel %vm4374_vm10, %v1756_v21, %v1752_v63 }
 0x306   : > { %v1903_v12 = vmul.f32 %v5101_v42, %v1787_v50  ;;  %2800 = vpow2.f32 %v1947_v0  ;;  %v1863_v32 = vsub.f32 %v4157_v57, %v4315_v27  ;;  %v4415_v6 = vpop.eup %2794  ;;  %v5102_v15 = vsub.f32 %v4133_v47, %v4270_v56 }
 0x307   : > { %v1717_v25 = vmul.f32 %v2791_v18, %v1716_v16  ;;  %vm1720_vm12 = vweird.f32 %v2791_v18  ;;  %v1589_v61 = vsub.f32 1.0, %v4385_v40  ;;  %2802 = vpow2.f32 %v1937_v36 }
 0x308   : > { %v1904_v37 = vmul.f32 %v5102_v15, %v1787_v50  ;;  %vm1719_vm13 = vweird.f32 %v4339_v62  ;;  %vm4424_vm14 = vcmp.eq.f32.partialorder %v1723_v58, 8.507059e+37  ;;  %v1864_v57 = vsub.f32 %v4159_v46, %v4315_v27  ;;  %v4433_v54 = vpop.eup %2796  ;;  %v4449_v50 = vpop.xlane.xlu0 %1575 }
 0x309   : > { %v1957_v53 = vmul.f32 1.442695, %v1903_v12  ;;  %v1899_v47 = vmul.f32 %v1867_v14, %v1757_v30  ;;  %v1718_v56 = vadd.f32 %v2791_v18, %v1717_v25  ;;  %v1726_v13 = vor.u32 1.1754944e-38, %v1725_v3  ;;  %vm1721_vm15 = vmor %vm1719_vm13, %vm1720_vm12 }
 0x30a   : > { %2804 = vpow2.f32 %v1939_v5  ;;  %v1877_v62 = vsub.f32 %v4167_v22, %v4362_v34  ;;  %v4437_v0 = vadd.f32 1e-05, %v1589_v61  ;;  %v1587_v4 = vsub.f32 1.0, %v4421_v52 }
 0x30b   : > { %v2799_v23 = vpop.eup %2798  ;;  %v1959_v46 = vmul.f32 1.442695, %v1904_v37  ;;  %v1900_v27 = vmul.f32 %v1868_v19, %v1757_v30  ;;  %v1722_v38 = vsel %vm1721_vm15, %v2791_v18, %v1718_v56  ;;  %v1878_v29 = vsub.f32 %v4169_v9, %v4362_v34 }
 0x30c   : > { %v4442_v2 = vpop.eup %2800  ;;  %v1727_v14 = vsel %vm4424_vm14, %v1726_v13, %v1722_v38  ;;  %v1820_v41 = vmul.f32 %v2799_v23, %v4398_v7  ;;  %vm1824_vm0 = vweird.f32 %v4398_v7  ;;  %2806 = vrcp.f32 %v4437_v0 }
 0x30d   : > { %2808 = vpow2.f32 %v1957_v53  ;;  %v1949_v48 = vmul.f32 1.442695, %v1899_v47  ;;  %v1828_v19 = vand.u32 2147483647, %v4398_v7  ;;  %v1830_v18 = vand.u32 2147483648, %v4398_v7  ;;  %v4453_v21 = vpop.eup %2802  ;;  %v4474_v47 = vpop.xlane.xlu1 %1569 }
 0x30e   : > { %v1895_v31 = vmul.f32 %v1863_v32, %v1727_v14  ;;  %v1821_v36 = vsub.f32 1.0, %v1820_v41  ;;  %v4455_v63 = vadd.f32 1e-05, %v1587_v4  ;;  %v1989_v58 = vadd.f32 %v4357_v59, %v4345_v55 }
 0x30f   : > { %2810 = vpow2.f32 %v1959_v46  ;;  %v1951_v42 = vmul.f32 1.442695, %v1900_v27  ;;  %v1896_v12 = vmul.f32 %v1864_v57, %v1727_v14  ;;  %v1592_v16 = vsub.f32 1.0, %v4449_v50 }
 0x310   : > { %v4460_v3 = vpop.eup %2804  ;;  %v1822_v5 = vmul.f32 %v2799_v23, %v1821_v36  ;;  %vm1825_vm1 = vweird.f32 %v2799_v23  ;;  %v1873_v30 = vsub.f32 %v4141_v35, %v4385_v40  ;;  %2812 = vrcp.f32 %v4455_v63  ;;  %1990 = vadd.xlane.f32.xlu2 %v1989_v58 }
 0x311   : > { %2814 = vpow2.f32 %v1949_v48  ;;  %vm4465_vm2 = vcmp.eq.f32.partialorder %v1828_v19, 8.507059e+37  ;;  %v1831_v15 = vor.u32 1.1754944e-38, %v1830_v18  ;;  %v4469_v37 = vadd.f32 1e-05, %v1592_v16  ;;  %vm1826_vm3 = vmor %vm1824_vm0, %vm1825_vm1 }
 0x312   : > { %v2807_v25 = vpop.eup %2806  ;;  %v1941_v61 = vmul.f32 1.442695, %v1895_v31  ;;  %v1823_v45 = vadd.f32 %v2799_v23, %v1822_v5  ;;  %v1798_v57 = vand.u32 2147483647, %v4437_v0  ;;  %v1874_v53 = vsub.f32 %v4143_v1, %v4385_v40 }
 0x313   : > { %v4476_v56 = vpop.eup %2808  ;;  %2816 = vpow2.f32 %v1951_v42  ;;  %v1943_v13 = vmul.f32 1.442695, %v1896_v12  ;;  %v1790_v4 = vmul.f32 %v2807_v25, %v4437_v0  ;;  %v1869_v46 = vsub.f32 %v4121_v60, %v4421_v52 }
 0x314   : > { %v1827_v27 = vsel %vm1826_vm3, %v2799_v23, %v1823_v45  ;;  %v1800_v38 = vand.u32 2147483648, %v4437_v0  ;;  %v1870_v1 = vsub.f32 %v4123_v44, %v4421_v52  ;;  %2818 = vrcp.f32 %v4469_v37 }
 0x315   : > { %v4488_v14 = vpop.eup %2810  ;;  %v1832_v41 = vsel %vm4465_vm2, %v1831_v15, %v1827_v27  ;;  %v1791_v7 = vsub.f32 1.0, %v1790_v4  ;;  %vm1794_vm4 = vweird.f32 %v4437_v0  ;;  %v1590_v48 = vsub.f32 1.0, %v4474_v47 }
 0x316   : > { %v2813_v19 = vpop.eup %2812  ;;  %2820 = vpow2.f32 %v1941_v61  ;;  %vm4494_vm5 = vcmp.eq.f32.partialorder %v1798_v57, 8.507059e+37  ;;  %v1768_v18 = vand.u32 2147483647, %v4455_v63  ;;  %v1770_v31 = vand.u32 2147483648, %v4455_v63 }
 0x317   : > { %v4500_v36 = vpop.eup %2814  ;;  %2822 = vpow2.f32 %v1943_v13  ;;  %v1792_v58 = vmul.f32 %v2807_v25, %v1791_v7  ;;  %vm1795_vm6 = vweird.f32 %v2807_v25  ;;  %v1760_v42 = vmul.f32 %v2813_v19, %v4455_v63 }
 0x318   : > { %v1909_v12 = vmul.f32 %v1877_v62, %v1832_v41  ;;  %v1801_v16 = vor.u32 1.1754944e-38, %v1800_v38  ;;  %vm1764_vm7 = vweird.f32 %v4455_v63  ;;  %v4507_v5 = vadd.f32 1e-05, %v1590_v48  ;;  %vm1796_vm8 = vmor %vm1794_vm4, %vm1795_vm6 }
 0x319   : > { %v4509_v32 = vpop.eup %2816  ;;  %v1793_v15 = vadd.f32 %v2807_v25, %v1792_v58  ;;  %v1761_v61 = vsub.f32 1.0, %v1760_v42  ;;  %v1879_v45 = vsub.f32 %v4177_v10, %v4449_v50  ;;  %v1992_v57 = vadd.f32 %v4415_v6, %v4404_v20 }
 0x31a   : > { %v2819_v13 = vpop.eup %2818  ;;  %vm4517_vm9 = vcmp.eq.f32.partialorder %v1768_v18, 8.507059e+37  ;;  %v1771_v62 = vor.u32 1.1754944e-38, %v1770_v31  ;;  %vm1839_vm10 = vweird.f32 %v4469_v37  ;;  %v1843_v4 = vand.u32 2147483647, %v4469_v37 }
 0x31b   : > { %v1797_v27 = vsel %vm1796_vm8, %v2807_v25, %v1793_v15  ;;  %v1762_v38 = vmul.f32 %v2813_v19, %v1761_v61  ;;  %vm1765_vm11 = vweird.f32 %v2813_v19  ;;  %v1835_v10 = vmul.f32 %v2819_v13, %v4469_v37  ;;  %1993 = vadd.xlane.f32.xlu0 %v1992_v57 }
 0x31c   : > { %v4524_v7 = vpop.eup %2820  ;;  %v1910_v0 = vmul.f32 %v1878_v29, %v1832_v41  ;;  %v1969_v48 = vmul.f32 1.442695, %v1909_v12  ;;  %v1802_v18 = vsel %vm4494_vm5, %v1801_v16, %v1797_v27  ;;  %2824 = vrcp.f32 %v4507_v5  ;;  %vm1766_vm12 = vmor %vm1764_vm7, %vm1765_vm11 }
 0x31d   : > { %v4532_v31 = vpop.eup %2822  ;;  %v1905_v25 = vmul.f32 %v1873_v30, %v1802_v18  ;;  %v1906_v58 = vmul.f32 %v1874_v53, %v1802_v18  ;;  %v1763_v42 = vadd.f32 %v2813_v19, %v1762_v38  ;;  %v1836_v15 = vsub.f32 1.0, %v1835_v10 }
 0x31e   : > { %vm1840_vm13 = vweird.f32 %v2819_v13  ;;  %v1845_v9 = vand.u32 2147483648, %v4469_v37  ;;  %v2001_v34 = vadd.f32 %v4442_v2, %v4433_v54  ;;  %v1995_v29 = vadd.f32 %v4460_v3, %v4453_v21 }
 0x31f   : > { %v1961_v41 = vmul.f32 1.442695, %v1905_v25  ;;  %v1963_v23 = vmul.f32 1.442695, %v1906_v58  ;;  %v1767_v12 = vsel %vm1766_vm12, %v2813_v19, %v1763_v42  ;;  %v1837_v35 = vmul.f32 %v2819_v13, %v1836_v15  ;;  %vm1841_vm14 = vmor %vm1839_vm10, %vm1840_vm13 }
 0x320   : > { %2826 = vpow2.f32 %v1969_v48  ;;  %v1971_v40 = vmul.f32 1.442695, %v1910_v0  ;;  %v1772_v30 = vsel %vm4517_vm9, %v1771_v62, %v1767_v12  ;;  %1996 = vadd.xlane.f32.xlu1 %v1995_v29  ;;  %v1998_v63 = vadd.f32 %v4532_v31, %v4524_v7 }
 0x321   : > { %2828 = vpow2.f32 %v1961_v41  ;;  %v1901_v53 = vmul.f32 %v1869_v46, %v1772_v30  ;;  %v1902_v16 = vmul.f32 %v1870_v1, %v1772_v30  ;;  %v1838_v19 = vadd.f32 %v2819_v13, %v1837_v35 }
 0x322   : > { %v2825_v61 = vpop.eup %2824  ;;  %2830 = vpow2.f32 %v1963_v23  ;;  %vm1844_vm15 = vcmp.eq.f32.partialorder %v1843_v4, 8.507059e+37  ;;  %v1846_v57 = vor.u32 1.1754944e-38, %v1845_v9  ;;  %v1880_v22 = vsub.f32 %v4179_v39, %v4449_v50  ;;  %1999 = vadd.xlane.f32.xlu2 %v1998_v63 }
 0x323   : > { %v1953_v62 = vmul.f32 1.442695, %v1901_v53  ;;  %v1955_v60 = vmul.f32 1.442695, %v1902_v16  ;;  %v1842_v46 = vsel %vm1841_vm14, %v2819_v13, %v1838_v19  ;;  %v1805_v27 = vmul.f32 %v2825_v61, %v4507_v5  ;;  %2002 = vadd.xlane.f32.xlu0 %v2001_v34 }
 0x324   : > { %2832 = vpow2.f32 %v1971_v40  ;;  %v1847_v44 = vsel %vm1844_vm15, %v1846_v57, %v1842_v46  ;;  %v2004_v52 = vadd.f32 %v4509_v32, %v4500_v36  ;;  %v1813_v39 = vand.u32 2147483647, %v4507_v5 }
 0x325   : > { %2834 = vpow2.f32 %v1953_v62  ;;  %v1911_v37 = vmul.f32 %v1879_v45, %v1847_v44  ;;  %v1912_v1 = vmul.f32 %v1880_v22, %v1847_v44  ;;  %v1806_v4 = vsub.f32 1.0, %v1805_v27 }
 0x326   : > { %v4562_v38 = vpop.eup %2826  ;;  %2836 = vpow2.f32 %v1955_v60  ;;  %v1815_v50 = vand.u32 2147483648, %v4507_v5  ;;  %v2010_v13 = vadd.f32 %v4488_v14, %v4476_v56  ;;  %vm1810_vm0 = vweird.f32 %v2825_v61 }
 0x327   : > { %v4568_v10 = vpop.eup %2828  ;;  %v1973_v0 = vmul.f32 1.442695, %v1911_v37  ;;  %v1975_v48 = vmul.f32 1.442695, %v1912_v1  ;;  %v1807_v18 = vmul.f32 %v2825_v61, %v1806_v4  ;;  %vm1809_vm1 = vweird.f32 %v4507_v5 }
 0x328   : > { %v4570_v25 = vpop.eup %2830  ;;  %2005 = vadd.xlane.f32.xlu1 %v2004_v52  ;;  %vm1811_vm2 = vmor %vm1809_vm1, %vm1810_vm0  ;;  %v1816_v42 = vor.u32 1.1754944e-38, %v1815_v50  ;;  %v1875_v15 = vsub.f32 %v4153_v8, %v4474_v47  ;;  %vm1814_vm3 = vcmp.eq.f32.partialorder %v1813_v39, 8.507059e+37  ;;  %v1876_v29 = vsub.f32 %v4155_v43, %v4474_v47 }
 0x329   : > { %5111 = vst [vmem:[#allocation3_spill] sm:$0xff] %v4570_v25  ;;  %v1808_v45 = vadd.f32 %v2825_v61, %v1807_v18  ;;  %2838 = vpow2.f32 %v1973_v0  ;;  %v2013_v23 = vadd.f32 %v4570_v25, %v4568_v10  ;;  %v2309_v25 = vld [vmem:[#allocation2 + $0x60] sm:$0xff] }
 0x32a   : > { %v4573_v58 = vpop.eup %2832  ;;  %2840 = vpow2.f32 %v1975_v48 }
 0x32b   : > { %v4577_v9 = vpop.eup %2834  ;;  %v1812_v34 = vsel %vm1811_vm2, %v2825_v61, %v1808_v45  ;;  %2011 = vadd.xlane.f32.xlu0 %v2010_v13  ;;  %v2019_v63 = vadd.f32 %v4573_v58, %v4562_v38 }
 0x32c   : > { %v4581_v41 = vpop.eup %2836  ;;  %v1817_v5 = vsel %vm1814_vm3, %v1816_v42, %v1812_v34  ;;  %v2297_v34 = vld [vmem:[#allocation2 + $0xb0] sm:$0xff] }
 0x32d   : > { %v1907_v12 = vmul.f32 %v1875_v15, %v1817_v5  ;;  %v1908_v35 = vmul.f32 %v1876_v29, %v1817_v5  ;;  %v2007_v8 = vadd.f32 %v4581_v41, %v4577_v9  ;;  %v2298_v29 = vld [vmem:[#allocation2] sm:$0xff] }
 0x32f   : > { %v1965_v40 = vmul.f32 1.442695, %v1907_v12  ;;  %v1967_v30 = vmul.f32 1.442695, %v1908_v35  ;;  %2008 = vadd.xlane.f32.xlu2 %v2007_v8  ;;  %v4589_v53 = vpop.eup %2838 }
 0x330   : > { %5112 = vst [vmem:[#allocation4_spill] sm:$0xff] %v4589_v53  ;;  %2014 = vadd.xlane.f32.xlu1 %v2013_v23  ;;  %v4591_v43 = vpop.eup %2840 }
 0x331   : > { %5113 = vst [vmem:[#allocation5_spill] sm:$0xff] %v4591_v43  ;;  %2842 = vpow2.f32 %v1965_v40  ;;  %v2022_v47 = vadd.f32 %v4591_v43, %v4589_v53 }
 0x332   : > { %2844 = vpow2.f32 %v1967_v30 }
 0x333   : > { %2020 = vadd.xlane.f32.xlu0 %v2019_v63 }
 0x337   : > { %v4595_v16 = vpop.eup %2842 }
 0x338   : > { %5114 = vst [vmem:[#allocation6_spill] sm:$0xff] %v4595_v16  ;;  %v4597_v19 = vpop.eup %2844  ;;  %2023 = vadd.xlane.f32.xlu1 %v2022_v47 }
 0x339   : > { %5115 = vst [vmem:[#allocation7_spill] sm:$0xff] %v4597_v19  ;;  %v2016_v61 = vadd.f32 %v4597_v19, %v4595_v16 }
 0x33b   : > { %2017 = vadd.xlane.f32.xlu2 %v2016_v61 }
 0x34e   : > { %v1979_v57 = vpop.xlane.xlu1 %1978 }
 0x34f   : > { %2846 = vrcp.f32 %v1979_v57  ;;  %v2036_v27 = vand.u32 2147483648, %v1979_v57  ;;  %v2034_v52 = vand.u32 2147483647, %v1979_v57  ;;  %vm2030_vm5 = vweird.f32 %v1979_v57 }
 0x351   : > { %v2037_v4 = vor.u32 1.1754944e-38, %v2036_v27  ;;  %vm2035_vm7 = vcmp.eq.f32.partialorder %v2034_v52, 8.507059e+37  ;;  %v2300_v27 = vld [vmem:[#allocation2 + $0x18] sm:$0xff] }
 0x355   : > { %v2847_v22 = vpop.eup %2846 }
 0x356   : > { %v2026_v62 = vmul.f32 %v2847_v22, %v1979_v57  ;;  %v1982_v60 = vpop.xlane.xlu2 %1981  ;;  %vm2031_vm4 = vweird.f32 %v2847_v22 }
 0x357   : > { %2848 = vrcp.f32 %v1982_v60  ;;  %vm2032_vm6 = vmor %vm2030_vm5, %vm2031_vm4  ;;  %v2051_v18 = vand.u32 2147483648, %v1982_v60  ;;  %v2049_v15 = vand.u32 2147483647, %v1982_v60  ;;  %vm2045_vm9 = vweird.f32 %v1982_v60 }
 0x358   : > { %v2027_v46 = vsub.f32 1.0, %v2026_v62 }
 0x359   : > { %v2052_v35 = vor.u32 1.1754944e-38, %v2051_v18  ;;  %vm2050_vm11 = vcmp.eq.f32.partialorder %v2049_v15, 8.507059e+37 }
 0x35a   : > { %v2028_v44 = vmul.f32 %v2847_v22, %v2027_v46  ;;  %v2299_v46 = vld [vmem:[#allocation2 + $0xd8] sm:$0xff] }
 0x35c   : > { %v2029_v37 = vadd.f32 %v2847_v22, %v2028_v44 }
 0x35d   : > { %v2849_v1 = vpop.eup %2848 }
 0x35e   : > { %v2041_v39 = vmul.f32 %v2849_v1, %v1982_v60  ;;  %v2033_v50 = vsel %vm2032_vm6, %v2847_v22, %v2029_v37  ;;  %v1985_v13 = vpop.xlane.xlu0 %1984  ;;  %vm2046_vm8 = vweird.f32 %v2849_v1 }
 0x35f   : > { %v2038_v0 = vsel %vm2035_vm7, %v2037_v4, %v2033_v50  ;;  %2850 = vrcp.f32 %v1985_v13  ;;  %vm2047_vm10 = vmor %vm2045_vm9, %vm2046_vm8  ;;  %v2064_v52 = vand.u32 2147483647, %v1985_v13  ;;  %vm2060_vm13 = vweird.f32 %v1985_v13 }
 0x360   : > { %v2042_v48 = vsub.f32 1.0, %v2041_v39  ;;  %v2039_v45 = vmul.f32 0.9, %v2038_v0 }
 0x361   : > { %vm2065_vm15 = vcmp.eq.f32.partialorder %v2064_v52, 8.507059e+37 }
 0x362   : > { %v2043_v42 = vmul.f32 %v2849_v1, %v2042_v48  ;;  %v2265_v5 = vmul.f32 %v4195_v33, %v2039_v45  ;;  %v2266_v23 = vmul.f32 %v4199_v17, %v2039_v45  ;;  %v2066_v33 = vand.u32 2147483648, %v1985_v13  ;;  %v2301_v45 = vld [vmem:[#allocation2 + $0x50] sm:$0xff] }
 0x364   : > { %v2044_v12 = vadd.f32 %v2849_v1, %v2043_v42  ;;  %v2329_v8 = vadd.f32 %v2297_v34, %v2265_v5  ;;  %v2330_v40 = vadd.f32 %v2298_v29, %v2266_v23  ;;  %v2302_v42 = vld [vmem:[#allocation2 + $0x68] sm:$0xff] }
 0x365   : > { %v2851_v30 = vpop.eup %2850 }
 0x366   : > { %v2048_v63 = vsel %vm2047_vm10, %v2849_v1, %v2044_v12  ;;  %v2056_v47 = vmul.f32 %v2851_v30, %v1985_v13  ;;  %v2361_v61 = vmax.f32 %v2329_v8, %v2330_v40  ;;  %vm2061_vm12 = vweird.f32 %v2851_v30 }
 0x367   : > { %v2053_v57 = vsel %vm2050_vm11, %v2052_v35, %v2048_v63  ;;  %vm2062_vm14 = vmor %vm2060_vm13, %vm2061_vm12  ;;  %v2067_v1 = vor.u32 1.1754944e-38, %v2066_v33 }
 0x368   : > { %v2054_v22 = vmul.f32 0.9, %v2053_v57  ;;  %v2057_v62 = vsub.f32 1.0, %v2056_v47  ;;  %2362 = vmax.xlane.f32.xlu2 %v2361_v61  ;;  %v2303_v57 = vld [vmem:[#allocation2 + $0x30] sm:$0xff] }
 0x36a   : > { %v2267_v17 = vmul.f32 %v4211_v24, %v2054_v22  ;;  %v2268_v60 = vmul.f32 %v4215_v49, %v2054_v22  ;;  %v2058_v44 = vmul.f32 %v2851_v30, %v2057_v62  ;;  %v2304_v22 = vld [vmem:[#allocation2 + $0x48] sm:$0xff] }
 0x36c   : > { %v2331_v37 = vadd.f32 %v2299_v46, %v2267_v17  ;;  %v2332_v4 = vadd.f32 %v2300_v27, %v2268_v60  ;;  %v2059_v39 = vadd.f32 %v2851_v30, %v2058_v44 }
 0x36e   : > { %v2364_v50 = vmax.f32 %v2331_v37, %v2332_v4  ;;  %v2063_v0 = vsel %vm2062_vm14, %v2851_v30, %v2059_v39 }
 0x36f   : > { %v2068_v48 = vsel %vm2065_vm15, %v2067_v1, %v2063_v0 }
 0x370   : > { %2365 = vmax.xlane.f32.xlu0 %v2364_v50  ;;  %v2069_v18 = vmul.f32 0.9, %v2068_v48 }
 0x372   : > { %v2269_v24 = vmul.f32 %v4228_v28, %v2069_v18  ;;  %v2270_v49 = vmul.f32 %v4237_v11, %v2069_v18 }
 0x374   : > { %v2333_v15 = vadd.f32 %v2301_v45, %v2269_v24  ;;  %v2334_v34 = vadd.f32 %v2302_v42, %v2270_v49 }
 0x375   : > { %v1988_v5 = vpop.xlane.xlu1 %1987 }
 0x376   : > { %v2367_v29 = vmax.f32 %v2333_v15, %v2334_v34  ;;  %2852 = vrcp.f32 %v1988_v5  ;;  %v2081_v35 = vand.u32 2147483648, %v1988_v5  ;;  %v2079_v40 = vand.u32 2147483647, %v1988_v5 }
 0x377   : > { %vm2075_vm1 = vweird.f32 %v1988_v5 }
 0x378   : > { %2368 = vmax.xlane.f32.xlu1 %v2367_v29  ;;  %v2082_v28 = vor.u32 1.1754944e-38, %v2081_v35  ;;  %vm2080_vm3 = vcmp.eq.f32.partialorder %v2079_v40, 8.507059e+37 }
 0x37c   : > { %v2853_v13 = vpop.eup %2852 }
 0x37d   : > { %v2071_v23 = vmul.f32 %v2853_v13, %v1988_v5  ;;  %vm2076_vm0 = vweird.f32 %v2853_v13 }
 0x37e   : > { %vm2077_vm2 = vmor %vm2075_vm1, %vm2076_vm0 }
 0x37f   : > { %v2072_v12 = vsub.f32 1.0, %v2071_v23 }
 0x381   : > { %v2073_v8 = vmul.f32 %v2853_v13, %v2072_v12 }
 0x383   : > { %v1991_v30 = vpop.xlane.xlu2 %1990  ;;  %v2074_v63 = vadd.f32 %v2853_v13, %v2073_v8  ;;  %v2305_v8 = vld [vmem:[#allocation2 + $0x80] sm:$0xff] }
 0x384   : > { %2854 = vrcp.f32 %v1991_v30  ;;  %v2096_v39 = vand.u32 2147483648, %v1991_v30  ;;  %vm2090_vm5 = vweird.f32 %v1991_v30  ;;  %v2094_v50 = vand.u32 2147483647, %v1991_v30 }
 0x385   : > { %v2078_v11 = vsel %vm2077_vm2, %v2853_v13, %v2074_v63 }
 0x386   : > { %v2083_v47 = vsel %vm2080_vm3, %v2082_v28, %v2078_v11  ;;  %v2097_v48 = vor.u32 1.1754944e-38, %v2096_v39  ;;  %vm2095_vm7 = vcmp.eq.f32.partialorder %v2094_v50, 8.507059e+37 }
 0x387   : > { %v2084_v61 = vmul.f32 0.9, %v2083_v47  ;;  %v2306_v47 = vld [vmem:[#allocation2 + $0x88] sm:$0xff] }
 0x389   : > { %v2271_v46 = vmul.f32 %v4305_v51, %v2084_v61  ;;  %v2272_v27 = vmul.f32 %v4317_v26, %v2084_v61 }
 0x38a   : > { %v2855_v62 = vpop.eup %2854 }
 0x38b   : > { %v2086_v33 = vmul.f32 %v2855_v62, %v1991_v30  ;;  %v2335_v17 = vadd.f32 %v2303_v57, %v2271_v46  ;;  %v2336_v60 = vadd.f32 %v2304_v22, %v2272_v27  ;;  %vm2091_vm4 = vweird.f32 %v2855_v62 }
 0x38c   : > { %vm2092_vm6 = vmor %vm2090_vm5, %vm2091_vm4 }
 0x38d   : > { %v2087_v44 = vsub.f32 1.0, %v2086_v33  ;;  %v2370_v37 = vmax.f32 %v2335_v17, %v2336_v60 }
 0x38e   : > { %v1994_v52 = vpop.xlane.xlu0 %1993 }
 0x38f   : > { %v2088_v4 = vmul.f32 %v2855_v62, %v2087_v44  ;;  %2856 = vrcp.f32 %v1994_v52  ;;  %2371 = vmax.xlane.f32.xlu2 %v2370_v37  ;;  %v2109_v23 = vand.u32 2147483647, %v1994_v52  ;;  %v2111_v12 = vand.u32 2147483648, %v1994_v52 }
 0x390   : > { %vm2105_vm8 = vweird.f32 %v1994_v52 }
 0x391   : > { %v2089_v1 = vadd.f32 %v2855_v62, %v2088_v4  ;;  %vm4643_vm10 = vcmp.eq.f32.partialorder %v2109_v23, 8.507059e+37  ;;  %v2112_v22 = vor.u32 1.1754944e-38, %v2111_v12 }
 0x393   : > { %v4609_v0 = vpop.xlane.xlu1 %1996  ;;  %v2093_v51 = vsel %vm2092_vm6, %v2855_v62, %v2089_v1 }
 0x394   : > { %2858 = vrcp.f32 %v4609_v0  ;;  %v2098_v24 = vsel %vm2095_vm7, %v2097_v48, %v2093_v51  ;;  %v2124_v39 = vand.u32 2147483647, %v4609_v0  ;;  %vm2120_vm0 = vweird.f32 %v4609_v0 }
 0x395   : > { %v4612_v26 = vpop.eup %2856  ;;  %v4614_v18 = vpop.xlane.xlu2 %1999  ;;  %v2099_v15 = vmul.f32 0.9, %v2098_v24 }
 0x396   : > { %v2101_v45 = vmul.f32 %v4612_v26, %v1994_v52  ;;  %v4617_v42 = vpop.xlane.xlu0 %2002  ;;  %vm2106_vm9 = vweird.f32 %v4612_v26  ;;  %v2141_v17 = vand.u32 2147483648, %v4614_v18  ;;  %vm4725_vm2 = vcmp.eq.f32.partialorder %v2124_v39, 8.507059e+37 }
 0x397   : > { %2860 = vrcp.f32 %v4617_v42  ;;  %v2273_v13 = vmul.f32 %v4345_v55, %v2099_v15  ;;  %v2274_v30 = vmul.f32 %v4357_v59, %v2099_v15  ;;  %v2126_v55 = vand.u32 2147483648, %v4609_v0  ;;  %vm4654_vm11 = vmor %vm2105_vm8, %vm2106_vm9 }
 0x398   : > { %v2102_v49 = vsub.f32 1.0, %v2101_v45  ;;  %2862 = vrcp.f32 %v4614_v18  ;;  %v2156_v33 = vand.u32 2147483648, %v4617_v42  ;;  %v2154_v4 = vand.u32 2147483647, %v4617_v42 }
 0x399   : > { %v2337_v57 = vadd.f32 %v2305_v8, %v2273_v13  ;;  %v2338_v60 = vadd.f32 %v2306_v47, %v2274_v30  ;;  %v4660_v1 = vor.u32 1.1754944e-38, %v2126_v55  ;;  %v4681_v8 = vor.u32 1.1754944e-38, %v2141_v17 }
 0x39a   : > { %v4621_v34 = vpop.eup %2858  ;;  %v2103_v29 = vmul.f32 %v4612_v26, %v2102_v49  ;;  %vm2150_vm12 = vweird.f32 %v4617_v42  ;;  %vm4710_vm15 = vcmp.eq.f32.partialorder %v2154_v4, 8.507059e+37  ;;  %v2307_v4 = vld [vmem:[#allocation2 + $0xe8] sm:$0xff]  ;;  %vm2135_vm6 = vweird.f32 %v4614_v18 }
 0x39b   : > { %v4624_v5 = vpop.xlane.xlu1 %2005  ;;  %v2116_v35 = vmul.f32 %v4621_v34, %v4609_v0  ;;  %v2373_v45 = vmax.f32 %v2337_v57, %v2338_v60  ;;  %vm2121_vm14 = vweird.f32 %v4621_v34 }
 0x39c   : > { %2864 = vrcp.f32 %v4624_v5  ;;  %v2104_v61 = vadd.f32 %v4612_v26, %v2103_v29  ;;  %v2171_v13 = vand.u32 2147483648, %v4624_v5  ;;  %v5133_v0 = vand.u32 2147483647, %v4624_v5 }
 0x39d   : > { %v4630_v40 = vpop.eup %2860  ;;  %v2117_v62 = vsub.f32 1.0, %v2116_v35  ;;  %v4679_v35 = vor.u32 1.1754944e-38, %v2156_v33  ;;  %2374 = vmax.xlane.f32.xlu0 %v2373_v45 }
 0x39e   : > { %v4633_v63 = vpop.eup %2862  ;;  %v2146_v28 = vmul.f32 %v4630_v40, %v4617_v42  ;;  %v4638_v11 = vpop.xlane.xlu0 %2011  ;;  %v2108_v24 = vsel %vm4654_vm11, %v4612_v26, %v2104_v61  ;;  %vm2151_vm13 = vweird.f32 %v4630_v40 }
 0x39f   : > { %2866 = vrcp.f32 %v4638_v11  ;;  %v2131_v46 = vmul.f32 %v4633_v63, %v4614_v18  ;;  %v2118_v49 = vmul.f32 %v4621_v34, %v2117_v62  ;;  %v2201_v15 = vand.u32 2147483648, %v4638_v11  ;;  %vm4768_vm8 = vmor %vm2150_vm12, %vm2151_vm13 }
 0x3a0   : > { %v2147_v27 = vsub.f32 1.0, %v2146_v28  ;;  %v2113_v47 = vsel %vm4643_vm10, %v2112_v22, %v2108_v24  ;;  %v2199_v61 = vand.u32 2147483647, %v4638_v11  ;;  %vm2195_vm3 = vweird.f32 %v4638_v11  ;;  %vm4796_vm10 = vmor %vm2120_vm0, %vm2121_vm14 }
 0x3a1   : > { %v2132_v50 = vsub.f32 1.0, %v2131_v46  ;;  %v4698_v62 = vadd.f32 %v4621_v34, %v2118_v49  ;;  %v4700_v46 = vor.u32 1.1754944e-38, %v2201_v15  ;;  %v2308_v49 = vld [vmem:[#allocation2 + $0xb8] sm:$0xff]  ;;  %vm2136_vm4 = vweird.f32 %v4633_v63 }
 0x3a2   : > { %v4651_v44 = vpop.eup %2864  ;;  %v4662_v51 = vpop.xlane.xlu2 %2008  ;;  %v2148_v12 = vmul.f32 %v4630_v40, %v2147_v27  ;;  %v4702_v27 = vor.u32 1.1754944e-38, %v2171_v13  ;;  %vm4745_vm5 = vcmp.eq.f32.partialorder %v2199_v61, 8.507059e+37  ;;  %vm4813_vm14 = vcmp.eq.f32.partialorder %v5133_v0, 8.507059e+37  ;;  %v2310_v13 = vld [vmem:[#allocation2 + $0xf0] sm:$0xff] }
 0x3a3   : > { %v2161_v48 = vmul.f32 %v4651_v44, %v4624_v5  ;;  %2868 = vrcp.f32 %v4662_v51  ;;  %v4667_v52 = vpop.xlane.xlu1 %2014  ;;  %v2133_v30 = vmul.f32 %v4633_v63, %v2132_v50  ;;  %v2186_v59 = vand.u32 2147483648, %v4662_v51 }
 0x3a4   : > { %2870 = vrcp.f32 %v4667_v52  ;;  %v4708_v33 = vadd.f32 %v4630_v40, %v2148_v12  ;;  %v2114_v50 = vmul.f32 0.9, %v2113_v47  ;;  %v2216_v29 = vand.u32 2147483648, %v4667_v52 }
 0x3a5   : > { %v4676_v23 = vpop.eup %2866  ;;  %v2162_v28 = vsub.f32 1.0, %v2161_v48  ;;  %v4718_v48 = vadd.f32 %v4633_v63, %v2133_v30  ;;  %v4737_v57 = vor.u32 1.1754944e-38, %v2186_v59  ;;  %vm2166_vm7 = vweird.f32 %v4651_v44 }
 0x3a6   : > { %v2191_v26 = vmul.f32 %v4676_v23, %v4638_v11  ;;  %v4687_v55 = vpop.xlane.xlu0 %2020  ;;  %vm2196_vm1 = vweird.f32 %v4676_v23  ;;  %v2275_v30 = vmul.f32 %v4404_v20, %v2114_v50  ;;  %vm2180_vm0 = vweird.f32 %v4662_v51  ;;  %v2314_v11 = vld [vmem:[#allocation2 + $0x58] sm:$0xff] }
 0x3a7   : > { %2872 = vrcp.f32 %v4687_v55  ;;  %v2163_v45 = vmul.f32 %v4651_v44, %v2162_v28  ;;  %v2244_v12 = vand.u32 2147483647, %v4687_v55  ;;  %v2276_v28 = vmul.f32 %v4415_v6, %v2114_v50 }
 0x3a8   : > { %v2192_v60 = vsub.f32 1.0, %v2191_v26  ;;  %v2246_v26 = vand.u32 2147483648, %v4687_v55  ;;  %v2339_v6 = vadd.f32 %v2307_v4, %v2275_v30  ;;  %vm2240_vm11 = vweird.f32 %v4687_v55 }
 0x3a9   : > { %v4705_v22 = vpop.eup %2868  ;;  %v2340_v50 = vadd.f32 %v2308_v49, %v2276_v28  ;;  %v4759_v16 = vadd.f32 %v4651_v44, %v2163_v45  ;;  %vm2210_vm13 = vweird.f32 %v4667_v52 }
 0x3aa   : > { %v2176_v24 = vmul.f32 %v4705_v22, %v4662_v51  ;;  %v4723_v15 = vpop.eup %2870  ;;  %v2193_v53 = vmul.f32 %v4676_v23, %v2192_v60  ;;  %v2214_v60 = vand.u32 2147483647, %v4667_v52  ;;  %v4761_v4 = vor.u32 1.1754944e-38, %v2246_v26 }
 0x3ab   : > { %v4734_v47 = vpop.xlane.xlu1 %2023  ;;  %v2206_v39 = vmul.f32 %v4723_v15, %v4667_v52  ;;  %v2376_v49 = vmax.f32 %v2339_v6, %v2340_v50 }
 0x3ac   : > { %v2177_v37 = vsub.f32 1.0, %v2176_v24  ;;  %2874 = vrcp.f32 %v4734_v47  ;;  %v2194_v42 = vadd.f32 %v4676_v23, %v2193_v53 }
 0x3ad   : > { %v4742_v43 = vpop.eup %2872  ;;  %v2207_v19 = vsub.f32 1.0, %v2206_v39  ;;  %v4780_v39 = vor.u32 1.1754944e-38, %v2216_v29  ;;  %2377 = vmax.xlane.f32.xlu1 %v2376_v49 }
 0x3ae   : > { %v2236_v59 = vmul.f32 %v4742_v43, %v4687_v55  ;;  %v2178_v24 = vmul.f32 %v4705_v22, %v2177_v37  ;;  %v4756_v61 = vpop.xlane.xlu2 %2017  ;;  %v5128_v37 = vand.u32 2147483647, %v4614_v18  ;;  %vm2241_vm12 = vweird.f32 %v4742_v43 }
 0x3af   : > { %2876 = vrcp.f32 %v4756_v61  ;;  %v2208_v26 = vmul.f32 %v4723_v15, %v2207_v19  ;;  %v2231_v6 = vand.u32 2147483648, %v4756_v61  ;;  %v2229_v50 = vand.u32 2147483647, %v4756_v61 }
 0x3b0   : > { %vm4774_vm9 = vcmp.eq.f32.partialorder %v5128_v37, 8.507059e+37  ;;  %v2237_v45 = vsub.f32 1.0, %v2236_v59  ;;  %v2153_v19 = vsel %vm4768_vm8, %v4630_v40, %v4708_v33  ;;  %v4802_v59 = vadd.f32 %v4705_v22, %v2178_v24 }
 0x3b1   : > { %v2158_v40 = vsel %vm4710_vm15, %v4679_v35, %v2153_v19  ;;  %v4819_v24 = vadd.f32 %v4723_v15, %v2208_v26  ;;  %v2123_v35 = vsel %vm4796_vm10, %v4621_v34, %v4698_v62  ;;  %vm4830_vm15 = vmor %vm2195_vm3, %vm2196_vm1  ;;  %vm4837_vm8 = vcmp.eq.f32.partialorder %v2244_v12, 8.507059e+37  ;;  %v2313_v62 = vld [vmem:[#allocation2 + $0x38] sm:$0xff]  ;;  %v2325_v26 = vld [vmem:[#allocation2 + $0xa0] sm:$0xff] }
 0x3b2   : > { %v2238_v29 = vmul.f32 %v4742_v43, %v2237_v45  ;;  %v4809_v33 = vpop.eup %2874  ;;  %v2159_v45 = vmul.f32 0.9, %v2158_v40  ;;  %v4842_v40 = vor.u32 1.1754944e-38, %v2231_v6  ;;  %v2128_v53 = vsel %vm4725_vm2, %v4660_v1, %v2123_v35  ;;  %vm4866_vm2 = vmor %vm2135_vm6, %vm2136_vm4 }
 0x3b3   : > { %v2251_v34 = vmul.f32 %v4809_v33, %v4734_v47  ;;  %v2129_v37 = vmul.f32 0.9, %v2128_v53  ;;  %v2198_v6 = vsel %vm4830_vm15, %v4676_v23, %v2194_v42  ;;  %vm4876_vm10 = vcmp.eq.f32.partialorder %v2214_v60, 8.507059e+37  ;;  %v2317_v23 = vld [vmem:[#allocation2 + $0xe0] sm:$0xff] }
 0x3b4   : > { %v4835_v19 = vadd.f32 %v4742_v43, %v2238_v29  ;;  %5140 = vst [vmem:[#allocation8_spill] sm:$0xff] %v4842_v40  ;;  %v2281_v12 = vmul.f32 %v4433_v54, %v2159_v45  ;;  %v2282_v29 = vmul.f32 %v4442_v2, %v2159_v45  ;;  %v2203_v1 = vsel %vm4745_vm5, %v4700_v46, %v2198_v6 }
 0x3b5   : > { %v4849_v0 = vpop.eup %2876  ;;  %v2252_v40 = vsub.f32 1.0, %v2251_v34  ;;  %v5143_v2 = vand.u32 2147483647, %v4662_v51  ;;  %v2277_v45 = vmul.f32 %v4453_v21, %v2129_v37  ;;  %v2278_v18 = vmul.f32 %v4460_v3, %v2129_v37  ;;  %v2319_v37 = vld [vmem:[#allocation2 + $0x70] sm:$0xff] }
 0x3b6   : > { %v2221_v49 = vmul.f32 %v4849_v0, %v4756_v61  ;;  %vm2226_vm1 = vweird.f32 %v4849_v0  ;;  %v2345_v20 = vadd.f32 %v2313_v62, %v2281_v12  ;;  %v2346_v46 = vadd.f32 %v2314_v11, %v2282_v29 }
 0x3b7   : > { %vm4872_vm3 = vcmp.eq.f32.partialorder %v5143_v2, 8.507059e+37  ;;  %vm2225_vm4 = vweird.f32 %v4756_v61  ;;  %v2253_v17 = vmul.f32 %v4809_v33, %v2252_v40  ;;  %v2204_v34 = vmul.f32 0.9, %v2203_v1  ;;  %v2320_v40 = vld [vmem:[#allocation2 + $0xc0] sm:$0xff]  ;;  %v2312_v1 = vld [vmem:[#allocation2 + $0x78] sm:$0xff]  ;;  %v2316_v2 = vld [vmem:[#allocation2 + $0xc8] sm:$0xff] }
 0x3b8   : > { %v2222_v35 = vsub.f32 1.0, %v2221_v49  ;;  %v2138_v60 = vsel %vm4866_vm2, %v4633_v63, %v4718_v48  ;;  %vm5148_vm5 = vweird.f32 %v4624_v5  ;;  %vm2256_vm15 = vweird.f32 %v4809_v33  ;;  %vm4904_vm2 = vmor %vm2240_vm11, %vm2241_vm12  ;;  %v5167_v5 = vld [vmem:[#allocation3_spill] sm:$0xff] }
 0x3b9   : > { %vm4892_vm6 = vmor %vm5148_vm5, %vm2166_vm7  ;;  %v2385_v21 = vmax.f32 %v2345_v20, %v2346_v46  ;;  %v2341_v3 = vadd.f32 %v2309_v25, %v2277_v45  ;;  %v2342_v49 = vadd.f32 %v2310_v13, %v2278_v18  ;;  %v2143_v11 = vsel %vm4774_vm9, %v4681_v8, %v2138_v60  ;;  %v2311_v13 = vld [vmem:[#allocation2 + $0x8] sm:$0xff]  ;;  %v2326_v18 = vld [vmem:[#allocation2 + $0xf8] sm:$0xff] }
 0x3ba   : > { %v2223_v63 = vmul.f32 %v4849_v0, %v2222_v35  ;;  %v4910_v48 = vadd.f32 %v4809_v33, %v2253_v17  ;;  %v2287_v25 = vmul.f32 %v4476_v56, %v2204_v34  ;;  %v2288_v53 = vmul.f32 %v4488_v14, %v2204_v34 }
 0x3bb   : > { %vm4914_vm7 = vcmp.eq.f32.partialorder %v2229_v50, 8.507059e+37  ;;  %vm2255_vm9 = vweird.f32 %v4734_v47  ;;  %2386 = vmax.xlane.f32.xlu1 %v2385_v21  ;;  %v2379_v8 = vmax.f32 %v2341_v3, %v2342_v49  ;;  %v2144_v55 = vmul.f32 0.9, %v2143_v11  ;;  %v2321_v49 = vld [vmem:[#allocation2 + $0xa8] sm:$0xff] }
 0x3bc   : > { %v2168_v12 = vsel %vm4892_vm6, %v4651_v44, %v4759_v16  ;;  %v2243_v56 = vsel %vm4904_vm2, %v4742_v43, %v4835_v19  ;;  %vm5155_vm11 = vweird.f32 %v4705_v22  ;;  %v2224_v50 = vadd.f32 %v4849_v0, %v2223_v63 }
 0x3bd   : > { %vm4931_vm12 = vmor %vm2180_vm0, %vm5155_vm11  ;;  %v2351_v29 = vadd.f32 %v2319_v37, %v2287_v25  ;;  %v2352_v6 = vadd.f32 %v2320_v40, %v2288_v53  ;;  %v2173_v16 = vsel %vm4813_vm14, %v4702_v27, %v2168_v12  ;;  %vm5158_vm5 = vweird.f32 %v4723_v15  ;;  %2380 = vmax.xlane.f32.xlu2 %v2379_v8  ;;  %v2315_v27 = vld [vmem:[#allocation2 + $0x40] sm:$0xff]  ;;  %v2322_v37 = vld [vmem:[#allocation2 + $0xd0] sm:$0xff] }
 0x3be   : > { %vm4943_vm6 = vmor %vm2210_vm13, %vm5158_vm5  ;;  %v2279_v44 = vmul.f32 %v4524_v7, %v2144_v55  ;;  %v2280_v51 = vmul.f32 %v4532_v31, %v2144_v55  ;;  %v2174_v19 = vmul.f32 0.9, %v2173_v16  ;;  %v2248_v54 = vsel %vm4837_vm8, %v4761_v4, %v2243_v56  ;;  %v5168_v25 = vld [vmem:[#allocation8_spill] sm:$0xff] }
 0x3bf   : > { %v2394_v30 = vmax.f32 %v2351_v29, %v2352_v6  ;;  %v2249_v20 = vmul.f32 0.9, %v2248_v54  ;;  %v2183_v52 = vsel %vm4931_vm12, %v4705_v22, %v4802_v59  ;;  %v2213_v7 = vsel %vm4943_vm6, %v4723_v15, %v4819_v24  ;;  %vm4974_vm13 = vmor %vm2225_vm4, %vm2226_vm1  ;;  %v5170_v6 = vld [vmem:[#allocation7_spill] sm:$0xff]  ;;  %v2324_v16 = vld [vmem:[#allocation2 + $0x28] sm:$0xff] }
 0x3c0   : > { %v2343_v31 = vadd.f32 %v2311_v13, %v2279_v44  ;;  %v2344_v46 = vadd.f32 %v2312_v1, %v2280_v51  ;;  %v2283_v45 = vmul.f32 %v4500_v36, %v2174_v19  ;;  %v2284_v4 = vmul.f32 %v4509_v32, %v2174_v19  ;;  %vm2257_vm0 = vmor %vm2255_vm9, %vm2256_vm15  ;;  %v2323_v1 = vld [vmem:[#allocation2 + $0x10] sm:$0xff]  ;;  %v5171_v44 = vld [vmem:[#allocation4_spill] sm:$0xff] }
 0x3c1   : > { %v2293_v35 = vmul.f32 %v4562_v38, %v2249_v20  ;;  %v2294_v17 = vmul.f32 %v4573_v58, %v2249_v20  ;;  %v2188_v22 = vsel %vm4872_vm3, %v4737_v57, %v2183_v52  ;;  %v2218_v15 = vsel %vm4876_vm10, %v4780_v39, %v2213_v7  ;;  %v2318_v57 = vld [vmem:[#allocation2 + $0x90] sm:$0xff] }
 0x3c2   : > { %v2382_v32 = vmax.f32 %v2343_v31, %v2344_v46  ;;  %v2347_v38 = vadd.f32 %v2315_v27, %v2283_v45  ;;  %v2348_v59 = vadd.f32 %v2316_v2, %v2284_v4  ;;  %v2189_v58 = vmul.f32 0.9, %v2188_v22  ;;  %v5172_v19 = vld [vmem:[#allocation5_spill] sm:$0xff] }
 0x3c3   : > { %v2357_v24 = vadd.f32 %v2325_v26, %v2293_v35  ;;  %v2358_v34 = vadd.f32 %v2326_v18, %v2294_v17  ;;  %v2219_v60 = vmul.f32 0.9, %v2218_v15  ;;  %v2228_v39 = vsel %vm4974_vm13, %v4849_v0, %v2224_v50  ;;  %2395 = vmax.xlane.f32.xlu1 %v2394_v30  ;;  %v5169_v50 = vld [vmem:[#allocation6_spill] sm:$0xff] }
 0x3c4   : > { %v5163_v42 = vand.u32 2147483647, %v4734_v47  ;;  %2383 = vmax.xlane.f32.xlu0 %v2382_v32  ;;  %v2388_v62 = vmax.f32 %v2347_v38, %v2348_v59  ;;  %v2285_v21 = vmul.f32 %v4577_v9, %v2189_v58  ;;  %v2286_v3 = vmul.f32 %v4581_v41, %v2189_v58 }
 0x3c5   : > { %v5166_v0 = vand.u32 2147483648, %v4734_v47  ;;  %v2289_v11 = vmul.f32 %v4568_v10, %v2219_v60  ;;  %v2290_v63 = vmul.f32 %v5167_v5, %v2219_v60  ;;  %v2233_v9 = vsel %vm4914_vm7, %v5168_v25, %v2228_v39 }
 0x3c6   : > { %vm4983_vm14 = vcmp.eq.f32.partialorder %v5163_v42, 8.507059e+37  ;;  %2389 = vmax.xlane.f32.xlu2 %v2388_v62  ;;  %v2349_v41 = vadd.f32 %v2317_v23, %v2285_v21  ;;  %v2350_v53 = vadd.f32 %v2318_v57, %v2286_v3  ;;  %v2234_v8 = vmul.f32 0.9, %v2233_v9 }
 0x3c7   : > { %v2262_v40 = vor.u32 1.1754944e-38, %v5166_v0  ;;  %v2258_v55 = vsel %vm2257_vm0, %v4809_v33, %v4910_v48  ;;  %v2403_v12 = vmax.f32 %v2357_v24, %v2358_v34  ;;  %v2353_v56 = vadd.f32 %v2321_v49, %v2289_v11  ;;  %v2327_v33 = vld [vmem:[#allocation2 + $0x20] sm:$0xff]  ;;  %v2328_v48 = vld [vmem:[#allocation2 + $0x98] sm:$0xff] }
 0x3c8   : > { %v2354_v14 = vadd.f32 %v2322_v37, %v2290_v63  ;;  %v2391_v10 = vmax.f32 %v2349_v41, %v2350_v53  ;;  %v2291_v29 = vmul.f32 %v5169_v50, %v2234_v8  ;;  %v2292_v13 = vmul.f32 %v5170_v6, %v2234_v8 }
 0x3c9   : > { %v2263_v47 = vsel %vm4983_vm14, %v2262_v40, %v2258_v55  ;;  %vm2430_vm8 = vcmask 0  }
 0x3ca   : > { %v2264_v28 = vmul.f32 0.9, %v2263_v47  ;;  %v2397_v43 = vmax.f32 %v2353_v56, %v2354_v14  ;;  %v2355_v30 = vadd.f32 %v2323_v1, %v2291_v29  ;;  %v2356_v27 = vadd.f32 %v2324_v16, %v2292_v13 }
 0x3cb   : > { %2404 = vmax.xlane.f32.xlu1 %v2403_v12 }
 0x3cc   : > { %v2295_v51 = vmul.f32 %v5171_v44, %v2264_v28  ;;  %v2296_v54 = vmul.f32 %v5172_v19, %v2264_v28  ;;  %2392 = vmax.xlane.f32.xlu0 %v2391_v10  ;;  %v2400_v52 = vmax.f32 %v2355_v30, %v2356_v27 }
 0x3ce   : > { %2398 = vmax.xlane.f32.xlu2 %v2397_v43  ;;  %v2359_v2 = vadd.f32 %v2327_v33, %v2295_v51  ;;  %v2360_v20 = vadd.f32 %v2328_v48, %v2296_v54 }
 0x3d0   : > { %v2406_v7 = vmax.f32 %v2359_v2, %v2360_v20 }
 0x3d4   : > { %2401 = vmax.xlane.f32.xlu0 %v2400_v52 }
 0x3d6   : > { %2407 = vmax.xlane.f32.xlu2 %v2406_v7 }
 0x3db   : > { %v2363_v31 = vpop.xlane.xlu2 %2362 }
 0x3e3   : > { %v2366_v45 = vpop.xlane.xlu0 %2365 }
 0x3e4   : > { %v2409_v18 = vadd.f32 %v2366_v45, %v2363_v31 }
 0x3eb   : > { %v2369_v46 = vpop.xlane.xlu1 %2368 }
 0x3ec   : > { %v2410_v35 = vadd.f32 %v2409_v18, %v2369_v46 }
 0x402   : > { %v2372_v4 = vpop.xlane.xlu2 %2371 }
 0x403   : > { %v2411_v22 = vadd.f32 %v2410_v35, %v2372_v4 }
 0x410   : > { %v2375_v17 = vpop.xlane.xlu0 %2374 }
 0x411   : > { %v2412_v36 = vadd.f32 %v2411_v22, %v2375_v17 }
 0x420   : > { %v2378_v26 = vpop.xlane.xlu1 %2377 }
 0x421   : > { %v2413_v32 = vadd.f32 %v2412_v36, %v2378_v26 }
 0x42e   : > { %v2387_v38 = vpop.xlane.xlu1 %2386 }
 0x430   : > { %v2381_v15 = vpop.xlane.xlu2 %2380 }
 0x431   : > { %v2414_v59 = vadd.f32 %v2413_v32, %v2381_v15 }
 0x436   : > { %v2396_v60 = vpop.xlane.xlu1 %2395 }
 0x437   : > { %v2384_v58 = vpop.xlane.xlu0 %2383 }
 0x438   : > { %v2415_v24 = vadd.f32 %v2414_v59, %v2384_v58 }
 0x439   : > { %v2390_v34 = vpop.xlane.xlu2 %2389 }
 0x43a   : > { %v2416_v23 = vadd.f32 %v2415_v24, %v2387_v38 }
 0x43c   : > { %v2417_v57 = vadd.f32 %v2416_v23, %v2390_v34 }
 0x43e   : > { %v2405_v37 = vpop.xlane.xlu1 %2404 }
 0x43f   : > { %v2393_v39 = vpop.xlane.xlu0 %2392 }
 0x440   : > { %v2418_v42 = vadd.f32 %v2417_v57, %v2393_v39 }
 0x441   : > { %v2399_v61 = vpop.xlane.xlu2 %2398 }
 0x442   : > { %v2419_v62 = vadd.f32 %v2418_v42, %v2396_v60 }
 0x444   : > { %v2420_v21 = vadd.f32 %v2419_v62, %v2399_v61 }
 0x447   : > { %v2402_v3 = vpop.xlane.xlu0 %2401 }
 0x448   : > { %v2421_v49 = vadd.f32 %v2420_v21, %v2402_v3 }
 0x449   : > { %v2408_v40 = vpop.xlane.xlu2 %2407 }
 0x44a   : > { %v2422_v0 = vadd.f32 %v2421_v49, %v2405_v37 }
 0x44c   : > { %v2423_v11 = vadd.f32 %v2422_v0, %v2408_v40 }
 0x44e   : > { %v2424_v5 = vrot.slane %v2423_v11, 4 }
 0x450   : > { %v2425_v63 = vadd.f32 %v2424_v5, %v2423_v11 }
 0x452   : > { %v2426_v25 = vrot.slane %v2425_v63, 2 }
 0x454   : > { %v2427_v9 = vadd.f32 %v2426_v25, %v2425_v63 }
 0x456   : > { %v2428_v41 = vrot.slane %v2427_v9, 1 }
 0x458   : > { %v2429_v53 = vadd.f32 %v2428_v41, %v2427_v9 }
 0x45a   : > { %2431 = vst.msk [vmem:[%s197_s5] sm:$0x1] %vm2430_vm8, %v2429_v53 }
 0x45b PF: > { %s12_s13 = sadd.s32 1, %s2916_s13   ;;  %s5173_s9 = smov %s2908_s11 }
 0x45c   : > { %p9_p9 = scmp.ge.s32.totalorder %s12_s13, 6   ;;  %s5174_s10 = smov %s2912_s12 }
 0x45d   : > { %s5175_s11 = smov %s5178_s14  ;;  %s5176_s12 = smov %s5182_s15 }
 0x45e   :  { %11 = sbr.rel (!%p9_p9) target bundleno = 3 (0x3), region = 65 }

</bundles_post_ra>
